<compile_context>
chip_gen: v5e
topology: v5e:2x2
jax: 0.10.0
libtpu: 0.0.40
codegen_flags: <defaults>
</compile_context>

<pallas_src>
import functools
import numpy as np
import jax
import jax.numpy as jnp
from jax.experimental import pallas as pl
from jax.experimental.pallas import tpu as pltpu

MATMUL_DTYPE = jnp.bfloat16   # MXU operand dtype (f32 accumulation everywhere)
ACT_DTYPE = jnp.bfloat16      # inter-kernel activation / residual-stream dtype in HBM
LN_EPS = 1e-5


# ----------------------------- VMEM budgeting ------------------------------

@functools.lru_cache(maxsize=1)
def _vmem_budget():
    """Returns (scoped vmem_limit_bytes, per-step tile budget).  Derived from the
    actual chip so the same code tiles for 128 MiB (v5e/v6e) and 64 MiB (v7x)."""
    cap = 64 * 1024 * 1024
    try:
        cap = int(pltpu.get_tpu_info().vmem_capacity_bytes)
    except Exception:
        pass
    limit = int(min(cap * 3 // 4, 112 * 1024 * 1024))
    return limit, int(limit * 0.7)


# ----------------------------- Pallas kernels ------------------------------

def _attn_block_kernel(x_ref, g_ref, b_ref, qkvw_ref, qkvb_ref,
                       projw_ref, projb_ref, bias_ref, *rest,
                       num_heads, has_mask):
    """Fused LayerNorm + window MHSA + proj + residual on a batch of windows.

    x_ref: (Wb, N, C) raw (pre-norm) windowed tokens.  Output = x + attn(LN(x)).
    The attention scale is already folded into the Q columns of qkv_w / qkv_b.
    """
    if has_mask:
        mask_ref, o_ref = rest
    else:
        mask_ref, o_ref = None, rest[0]

    wb, n_tok, c = x_ref.shape
    hd = c // num_heads

    x = x_ref[...].astype(jnp.float32)                         # (Wb, N, C)
    xf = x.reshape(wb * n_tok, c)

    # --- LayerNorm (norm1), f32 statistics ---
    mean = jnp.mean(xf, axis=-1, keepdims=True)
    var = jnp.mean(jnp.square(xf - mean), axis=-1, keepdims=True)
    y = (xf - mean) * jax.lax.rsqrt(var + LN_EPS)
    y = y * g_ref[...] + b_ref[...]

    # --- QKV projection on the whole (Wb*N, C) slab: one big MXU matmul ---
    qkv = jnp.dot(y.astype(MATMUL_DTYPE), qkvw_ref[...].astype(MATMUL_DTYPE),
                  preferred_element_type=jnp.float32) + qkvb_ref[...]
    qkv = qkv.reshape(wb, n_tok, 3 * c)

    bias = bias_ref[...].astype(jnp.float32)                   # (H, N, N)
    mask = mask_ref[...].astype(jnp.float32) if has_mask else None   # (Wb, N, N)

    # Per-head attention, batched over the window axis with single-batch-dim einsums
    # (the pattern known to lower cleanly on Mosaic).  Head outputs are collected and
    # projected with a single K=C matmul below instead of per-head K=hd matmuls.
    # TODO(synk): once multi-batch-dim dot_general lowering is confirmed on Mosaic,
    # replace this loop with a head-batched einsum to drop the per-head lane slices.
    heads = []
    for h in range(num_heads):                                  # static, small
        q = qkv[:, :, h * hd:(h + 1) * hd]                      # scale already folded
        k = qkv[:, :, c + h * hd:c + (h + 1) * hd]
        v = qkv[:, :, 2 * c + h * hd:2 * c + (h + 1) * hd]
        s = jnp.einsum('wqd,wkd->wqk', q.astype(MATMUL_DTYPE), k.astype(MATMUL_DTYPE),
                       preferred_element_type=jnp.float32)      # (Wb, N, N)
        s = s + bias[h][None]
        if mask is not None:
            s = s + mask
        s = s - jnp.max(s, axis=-1, keepdims=True)
        p = jnp.exp(s)
        p = p * pl.reciprocal(jnp.sum(p, axis=-1, keepdims=True), approx=True)  # EUP
        heads.append(jnp.einsum('wqk,wkd->wqd',
                                p.astype(MATMUL_DTYPE), v.astype(MATMUL_DTYPE),
                                preferred_element_type=jnp.float32))  # (Wb, N, hd)

    # Stack heads along the lane dim (cheap relayout) -> ONE output projection with K=C.
    o = jnp.concatenate(heads, axis=-1).reshape(wb * n_tok, c)
    out = jnp.dot(o.astype(MATMUL_DTYPE), projw_ref[...].astype(MATMUL_DTYPE),
                  preferred_element_type=jnp.float32) + projb_ref[...]
    o_ref[...] = (x + out.reshape(wb, n_tok, c)).astype(o_ref.dtype)


def _mlp_kernel(x_ref, g_ref, b_ref, w1_ref, b1_ref, w2_ref, b2_ref, o_ref):
    """Fused: out = x + fc2(gelu(fc1(layernorm(x))))."""
    x = x_ref[...].astype(jnp.float32)
    mean = jnp.mean(x, axis=-1, keepdims=True)
    var = jnp.mean(jnp.square(x - mean), axis=-1, keepdims=True)
    y = (x - mean) * jax.lax.rsqrt(var + LN_EPS)
    y = y * g_ref[...] + b_ref[...]
    h = jnp.dot(y.astype(MATMUL_DTYPE), w1_ref[...].astype(MATMUL_DTYPE),
                preferred_element_type=jnp.float32) + b1_ref[...]
    h = 0.5 * h * (1.0 + jax.lax.erf(h * 0.7071067811865476))   # exact (erf) GELU
    z = jnp.dot(h.astype(MATMUL_DTYPE), w2_ref[...].astype(MATMUL_DTYPE),
                preferred_element_type=jnp.float32) + b2_ref[...]
    o_ref[...] = (x + z).astype(o_ref.dtype)


# ----------------------------- tile selection -------------------------------

def _attn_step_bytes(wb, n_tok, c, num_heads, has_mask):
    ab = jnp.dtype(ACT_DTYPE).itemsize
    mb = jnp.dtype(MATMUL_DTYPE).itemsize
    rows = wb * n_tok
    b = rows * c * ab * 2 * 2                    # in + out tiles, double-buffered
    b += rows * (3 * c + 2 * c) * 4              # f32 qkv slab + x / proj temporaries
    b += rows * c * 4                            # stacked head outputs (f32)
    b += wb * n_tok * n_tok * 4 * 3              # live score / prob temporaries
    b += (3 * c * c + c * c) * mb * 2            # qkv_w + proj_w (double-buffered)
    b += num_heads * n_tok * n_tok * 4 * 2       # relative-position bias
    if has_mask:
        b += wb * n_tok * n_tok * 4 * 2          # shift mask
    return b


def _choose_window_batch(total_w, n_w, n_tok, c, num_heads, has_mask, budget_bytes):
    """Windows per grid step: a multiple of nW (so bias/mask blocks are grid-invariant),
    as large as the VMEM budget allows, keeping >= 2 grid steps when possible (v7x
    megacore) and preferring row slabs that are multiples of 256 (v6e/v7x MXU)."""
    cands = [k * n_w for k in range(1, total_w // n_w + 1) if total_w % (k * n_w) == 0]
    fit = [wb for wb in cands
           if _attn_step_bytes(wb, n_tok, c, num_heads, has_mask) <= budget_bytes]
    if not fit:
        fit = [cands[0]]
    multi = [wb for wb in fit if total_w // wb >= 2] or fit
    pref = [wb for wb in multi if (wb * n_tok) % 256 == 0] or multi
    return max(pref)


def _choose_tile_rows(m, c, hid, budget_bytes):
    """Row tile for the MLP kernel from the VMEM budget; never a single full-extent
    block (the wrapper pads the ragged tail), and >= 2 grid steps when possible."""
    ab = jnp.dtype(ACT_DTYPE).itemsize
    mb = jnp.dtype(MATMUL_DTYPE).itemsize
    weight_bytes = 2 * (2 * c * hid * mb + (hid + 3 * c) * 4)
    row_bytes = c * (4 * ab + 12) + 4 * hid      # tiles (dbl-buf) + f32 temps + hidden
    avail = max(budget_bytes - weight_bytes, 8 * row_bytes)
    tm = max(8, min(avail // row_bytes, 4096) // 8 * 8)
    if tm >= 512:
        tm = tm // 256 * 256                     # MXU granule on v6e/v7x
    half = ((m + 1) // 2 + 7) // 8 * 8           # guarantee >= 2 grid steps
    return int(min(tm, max(8, half)))


# ----------------------------- kernel wrappers ------------------------------

def window_attention_block(xw, p, bias, mask, *, num_heads, wb):
    bw, n_tok, c = xw.shape
    assert bw % wb == 0
    has_mask = mask is not None
    vmem_limit, _ = _vmem_budget()
    kernel = functools.partial(_attn_block_kernel, num_heads=num_heads,
                               has_mask=has_mask)
    # TODO(synk): constant-index operands below could use pipeline_mode=pl.Buffered(1)
    # to avoid double-buffering weights (VMEM win on v7x) once broadly supported.
    in_specs = [
        pl.BlockSpec((wb, n_tok, c), lambda i: (i, 0, 0)),
        pl.BlockSpec((1, c), lambda i: (0, 0)),
        pl.BlockSpec((1, c), lambda i: (0, 0)),
        pl.BlockSpec((c, 3 * c), lambda i: (0, 0)),
        pl.BlockSpec((1, 3 * c), lambda i: (0, 0)),
        pl.BlockSpec((c, c), lambda i: (0, 0)),
        pl.BlockSpec((1, c), lambda i: (0, 0)),
        pl.BlockSpec((num_heads, n_tok, n_tok), lambda i: (0, 0, 0)),
    ]
    args = [xw,
            p['ln1_g'].reshape(1, c), p['ln1_b'].reshape(1, c),
            p['qkv_w'], p['qkv_b'].reshape(1, 3 * c),
            p['proj_w'], p['proj_b'].reshape(1, c),
            bias]
    if has_mask:
        in_specs.append(pl.BlockSpec((wb, n_tok, n_tok), lambda i: (0, 0, 0)))
        args.append(mask)
    return pl.pallas_call(
        kernel,
        out_shape=jax.ShapeDtypeStruct((bw, n_tok, c), xw.dtype),
        grid=(bw // wb,),
        in_specs=in_specs,
        out_specs=pl.BlockSpec((wb, n_tok, c), lambda i: (i, 0, 0)),
        compiler_params=pltpu.CompilerParams(
            dimension_semantics=("parallel",),
            vmem_limit_bytes=vmem_limit),
    )(*args)


def mlp_residual(x2d, p):
    m, c = x2d.shape
    hid = p['fc1_w'].shape[1]
    vmem_limit, budget = _vmem_budget()
    tm = _choose_tile_rows(m, c, hid, budget)
    grid = pl.cdiv(m, tm)
    m_pad = grid * tm
    xp = jnp.pad(x2d, ((0, m_pad - m), (0, 0))) if m_pad != m else x2d
    out = pl.pallas_call(
        _mlp_kernel,
        out_shape=jax.ShapeDtypeStruct((m_pad, c), x2d.dtype),
        grid=(grid,),
        in_specs=[
            pl.BlockSpec((tm, c), lambda i: (i, 0)),
            pl.BlockSpec((1, c), lambda i: (0, 0)),
            pl.BlockSpec((1, c), lambda i: (0, 0)),
            pl.BlockSpec((c, hid), lambda i: (0, 0)),
            pl.BlockSpec((1, hid), lambda i: (0, 0)),
            pl.BlockSpec((hid, c), lambda i: (0, 0)),
            pl.BlockSpec((1, c), lambda i: (0, 0)),
        ],
        out_specs=pl.BlockSpec((tm, c), lambda i: (i, 0)),
        compiler_params=pltpu.CompilerParams(
            dimension_semantics=("parallel",),
            vmem_limit_bytes=vmem_limit),
    )(xp, p['ln2_g'].reshape(1, c), p['ln2_b'].reshape(1, c),
      p['fc1_w'], p['fc1_b'].reshape(1, hid), p['fc2_w'], p['fc2_b'].reshape(1, c))
    return out[:m] if m_pad != m else out


# ------------------------------ JAX glue ------------------------------------

def window_partition(x, ws):
    b, h, w, c = x.shape
    x = x.reshape(b, h // ws, ws, w // ws, ws, c)
    return x.transpose(0, 1, 3, 2, 4, 5).reshape(-1, ws * ws, c)


def window_reverse(windows, ws, h, w):
    b = windows.shape[0] // ((h // ws) * (w // ws))
    c = windows.shape[-1]
    x = windows.reshape(b, h // ws, w // ws, ws, ws, c)
    return x.transpose(0, 1, 3, 2, 4, 5).reshape(b, h, w, c)


# TODO(synk): fold the window partition / cyclic shift into the attention BlockSpec
# index_map (manual halo DMA for the shifted case) to remove these XLA permutation
# passes entirely.
def partition_tokens(x_tok, *, x_size, ws, shift):
    """(B, L, C) token layout  ->  (B*nW, N, C) window order with cyclic shift."""
    h, w = x_size
    b, l, c = x_tok.shape
    xi = x_tok.reshape(b, h, w, c)
    if shift > 0:
        xi = jnp.roll(xi, shift=(-shift, -shift), axis=(1, 2))
    return window_partition(xi, ws)


def unpartition_tokens(xw, *, x_size, ws, shift):
    """(B*nW, N, C) window order  ->  (B, L, C) token layout (undoing the shift)."""
    h, w = x_size
    xi = window_reverse(xw, ws, h, w)
    if shift > 0:
        xi = jnp.roll(xi, shift=(shift, shift), axis=(1, 2))
    return xi.reshape(xi.shape[0], h * w, xi.shape[-1])


def repartition_tokens(xw, *, x_size, ws, from_shift, to_shift):
    """Single fused permutation: window order @ from_shift -> window order @ to_shift."""
    h, w = x_size
    xi = window_reverse(xw, ws, h, w)
    d = from_shift - to_shift
    if d != 0:
        xi = jnp.roll(xi, shift=(d, d), axis=(1, 2))
    return window_partition(xi, ws)


def relative_position_index(ws):
    coords = np.stack(np.meshgrid(np.arange(ws), np.arange(ws), indexing="ij"))
    coords_flat = coords.reshape(2, -1)
    rel = coords_flat[:, :, None] - coords_flat[:, None, :]
    rel = rel.transpose(1, 2, 0).copy()
    rel[:, :, 0] += ws - 1
    rel[:, :, 1] += ws - 1
    rel[:, :, 0] *= 2 * ws - 1
    return rel.sum(-1)                                        # (N, N)


def calculate_mask(h, w, ws, ss):
    img_mask = np.zeros((1, h, w, 1), dtype=np.float32)
    h_slices = (slice(0, -ws), slice(-ws, -ss), slice(-ss, None))
    w_slices = (slice(0, -ws), slice(-ws, -ss), slice(-ss, None))
    cnt = 0
    for hs in h_slices:
        for wss in w_slices:
            img_mask[:, hs, wss, :] = cnt
            cnt += 1
    mw = img_mask.reshape(1, h // ws, ws, w // ws, ws, 1)
    mw = mw.transpose(0, 1, 3, 2, 4, 5).reshape(-1, ws * ws)
    attn_mask = mw[:, None, :] - mw[:, :, None]
    attn_mask = np.where(attn_mask != 0, -100.0, 0.0).astype(np.float32)
    return jnp.asarray(attn_mask)                             # (nW, N, N)


def swin_block_windows(xw, p, attn_mask, *, n_w, num_heads):
    """One Swin block operating entirely in window order (B*nW, N, C)."""
    total_w, n_tok, c = xw.shape
    _, budget = _vmem_budget()
    has_mask = attn_mask is not None
    wb = _choose_window_batch(total_w, n_w, n_tok, c, num_heads, has_mask, budget)
    mask = None
    if has_mask:
        mask = jnp.tile(attn_mask, (wb // n_w, 1, 1))          # (wb, N, N) only
    yw = window_attention_block(xw, p, p['attn_bias'], mask,
                                num_heads=num_heads, wb=wb)
    # MLP is per-token -> run directly on the window-ordered tokens (no window_reverse
    # HBM round-trip between the two kernels).
    y2 = mlp_residual(yw.reshape(total_w * n_tok, c), p)
    return y2.reshape(total_w, n_tok, c)


def rstb_forward(x, params, shift_mask, *, x_size, window_size, num_heads):
    h, w = x_size                                              # static Python ints
    b, l, c = x.shape
    # SwinTransformerBlock clamps window_size / shift when the resolution is small.
    ws = min(window_size, min(h, w))
    depth = len(params)
    shifts = [0 if (d % 2 == 0 or min(h, w) <= window_size) else ws // 2
              for d in range(depth)]
    n_w = (h // ws) * (w // ws)

    cur = partition_tokens(x.astype(ACT_DTYPE), x_size=x_size, ws=ws, shift=shifts[0])
    out = None
    for d, p in enumerate(params):
        ss = shifts[d]
        cur = swin_block_windows(cur, p, None if ss == 0 else shift_mask,
                                 n_w=n_w, num_heads=num_heads)
        nxt = shifts[d + 1] if d + 1 < depth else None
        if nxt is None:
            out = unpartition_tokens(cur, x_size=x_size, ws=ws, shift=ss)
        elif nxt != ss:
            cur = repartition_tokens(cur, x_size=x_size, ws=ws,
                                     from_shift=ss, to_shift=nxt)
    return out.astype(x.dtype) + x                             # RSTB residual


# --------------------------- parameter init / prep ---------------------------

def init_params(key, dim, depth, num_heads, window_size, mlp_ratio):
    hidden = int(dim * mlp_ratio)
    params = []
    for _ in range(depth):
        key, *ks = jax.random.split(key, 14)
        params.append(dict(
            ln1_g=1.0 + 0.1 * jax.random.normal(ks[0], (dim,), jnp.float32),
            ln1_b=0.1 * jax.random.normal(ks[1], (dim,), jnp.float32),
            qkv_w=0.1 * jax.random.normal(ks[2], (dim, 3 * dim), jnp.float32),   # (in, out)
            qkv_b=0.1 * jax.random.normal(ks[3], (3 * dim,), jnp.float32),
            rpb=0.02 * jax.random.normal(ks[4], ((2 * window_size - 1) ** 2, num_heads),
                                         jnp.float32),
            proj_w=0.1 * jax.random.normal(ks[5], (dim, dim), jnp.float32),      # (in, out)
            proj_b=0.1 * jax.random.normal(ks[6], (dim,), jnp.float32),
            ln2_g=1.0 + 0.1 * jax.random.normal(ks[7], (dim,), jnp.float32),
            ln2_b=0.1 * jax.random.normal(ks[8], (dim,), jnp.float32),
            fc1_w=0.1 * jax.random.normal(ks[9], (dim, hidden), jnp.float32),    # (in, out)
            fc1_b=0.1 * jax.random.normal(ks[10], (hidden,), jnp.float32),
            fc2_w=0.1 * jax.random.normal(ks[11], (hidden, dim), jnp.float32),   # (in, out)
            fc2_b=0.1 * jax.random.normal(ks[12], (dim,), jnp.float32),
        ))
    return params


def prepare_params(params, window_size, num_heads):
    """One-time prep (outside the per-forward path):
       * gather the relative-position bias table into (num_heads, N, N);
       * fold the attention scale (head_dim**-0.5) into the Q columns of qkv_w/qkv_b;
       * store matmul weights in the MXU operand dtype (halves weight HBM/VMEM)."""
    n_tok = window_size * window_size
    rel_idx = jnp.asarray(relative_position_index(window_size).reshape(-1))
    prepped = []
    for p in params:
        q = {k: v for k, v in p.items() if k != 'rpb'}
        dim = p['qkv_w'].shape[0]
        scale = (dim // num_heads) ** (-0.5)
        q['qkv_w'] = p['qkv_w'].at[:, :dim].multiply(scale)
        q['qkv_b'] = p['qkv_b'].at[:dim].multiply(scale)
        bias = p['rpb'][rel_idx].reshape(n_tok, n_tok, num_heads).transpose(2, 0, 1)
        q['attn_bias'] = bias.astype(jnp.float32)
        for k in ('qkv_w', 'proj_w', 'fc1_w', 'fc2_w'):
            q[k] = q[k].astype(MATMUL_DTYPE)
        prepped.append(q)
    return prepped


# --------------------------------- main --------------------------------------

if __name__ == "__main__":
    B, H, W, C = 2, 8, 8, 32
    window_size, num_heads, depth = 4, 4, 2
    mlp_ratio = 2.0
    L = H * W

    key = jax.random.PRNGKey(0)
    kx, kp = jax.random.split(key)
    x = jax.random.normal(kx, (B, L, C), jnp.float32)          # (B, L=H*W, C) token layout
    params = prepare_params(
        init_params(kp, C, depth, num_heads, window_size, mlp_ratio),
        window_size, num_heads)

    ws_eff = min(window_size, min(H, W))
    shift_mask = calculate_mask(H, W, ws_eff, ws_eff // 2)     # (nW, N, N)

    # x_size / window_size / num_heads are baked statically.
    fwd = jax.jit(functools.partial(rstb_forward,
                                    x_size=(H, W),
                                    window_size=window_size,
                                    num_heads=num_heads))
    out = fwd(x, params, shift_mask)
    out = jax.block_until_ready(out)
    assert out.shape == (B, L, C)
    assert bool(jnp.all(jnp.isfinite(out)))
    print("KERNEL_OK")
</pallas_src>

<mosaic_0001>
module attributes {stable_mosaic.version = 11 : i64} {
  func.func @_attn_block_kernel(%arg0: i32, %arg1: memref<4x16x32xbf16, #tpu.memory_space<vmem>>, %arg2: memref<1x32xf32, #tpu.memory_space<vmem>>, %arg3: memref<1x32xf32, #tpu.memory_space<vmem>>, %arg4: memref<32x96xbf16, #tpu.memory_space<vmem>>, %arg5: memref<1x96xf32, #tpu.memory_space<vmem>>, %arg6: memref<32x32xbf16, #tpu.memory_space<vmem>>, %arg7: memref<1x32xf32, #tpu.memory_space<vmem>>, %arg8: memref<4x16x16xf32, #tpu.memory_space<vmem>>, %arg9: memref<4x16x32xbf16, #tpu.memory_space<vmem>>) attributes {dimension_semantics = [#tpu.dimension_semantics<parallel>], iteration_bounds = array<i64: 2>, scalar_prefetch = 0 : i64, scratch_operands = 0 : i64, tpu.core_type = #tpu.core_type<tc>, window_params = [{transform_indices = @transform_0, window_bounds = array<i64: 4, 16, 32>}, {pipeline_mode = #tpu.pipeline_mode<synchronous>, transform_indices = @transform_1, window_bounds = array<i64: 1, 32>}, {pipeline_mode = #tpu.pipeline_mode<synchronous>, transform_indices = @transform_2, window_bounds = array<i64: 1, 32>}, {pipeline_mode = #tpu.pipeline_mode<synchronous>, transform_indices = @transform_3, window_bounds = array<i64: 32, 96>}, {pipeline_mode = #tpu.pipeline_mode<synchronous>, transform_indices = @transform_4, window_bounds = array<i64: 1, 96>}, {pipeline_mode = #tpu.pipeline_mode<synchronous>, transform_indices = @transform_5, window_bounds = array<i64: 32, 32>}, {pipeline_mode = #tpu.pipeline_mode<synchronous>, transform_indices = @transform_6, window_bounds = array<i64: 1, 32>}, {pipeline_mode = #tpu.pipeline_mode<synchronous>, transform_indices = @transform_7, window_bounds = array<i64: 4, 16, 16>}, {transform_indices = @transform_8, window_bounds = array<i64: 4, 16, 32>}]} {
    %c0 = arith.constant 0 : index
    %c0_0 = arith.constant 0 : index
    %c0_1 = arith.constant 0 : index
    %0 = vector.load %arg1[%c0, %c0_0, %c0_1] : memref<4x16x32xbf16, #tpu.memory_space<vmem>>, vector<4x16x32xbf16>
    %1 = arith.extf %0 : vector<4x16x32xbf16> to vector<4x16x32xf32>
    %2 = vector.shape_cast %1 : vector<4x16x32xf32> to vector<64x32xf32>
    %cst = arith.constant dense<0.000000e+00> : vector<64xf32>
    %3 = vector.multi_reduction <add>, %2, %cst [1] : vector<64x32xf32> to vector<64xf32>
    %4 = vector.shape_cast %3 : vector<64xf32> to vector<64x1xf32>
    %cst_2 = arith.constant 3.200000e+01 : f32
    %5 = vector.broadcast %cst_2 : f32 to vector<64x1xf32>
    %6 = arith.divf %4, %5 : vector<64x1xf32>
    %7 = vector.broadcast %6 : vector<64x1xf32> to vector<64x32xf32>
    %8 = arith.subf %2, %7 : vector<64x32xf32>
    %9 = arith.mulf %8, %8 : vector<64x32xf32>
    %cst_3 = arith.constant dense<0.000000e+00> : vector<64xf32>
    %10 = vector.multi_reduction <add>, %9, %cst_3 [1] : vector<64x32xf32> to vector<64xf32>
    %11 = vector.shape_cast %10 : vector<64xf32> to vector<64x1xf32>
    %cst_4 = arith.constant 3.200000e+01 : f32
    %12 = vector.broadcast %cst_4 : f32 to vector<64x1xf32>
    %13 = arith.divf %11, %12 : vector<64x1xf32>
    %14 = vector.broadcast %6 : vector<64x1xf32> to vector<64x32xf32>
    %15 = arith.subf %2, %14 : vector<64x32xf32>
    %cst_5 = arith.constant 9.99999974E-6 : f32
    %16 = vector.broadcast %cst_5 : f32 to vector<64x1xf32>
    %17 = arith.addf %13, %16 : vector<64x1xf32>
    %18 = math.rsqrt %17 : vector<64x1xf32>
    %19 = vector.broadcast %18 : vector<64x1xf32> to vector<64x32xf32>
    %20 = arith.mulf %15, %19 : vector<64x32xf32>
    %c0_6 = arith.constant 0 : index
    %c0_7 = arith.constant 0 : index
    %21 = vector.load %arg2[%c0_6, %c0_7] : memref<1x32xf32, #tpu.memory_space<vmem>>, vector<1x32xf32>
    %22 = vector.broadcast %21 : vector<1x32xf32> to vector<64x32xf32>
    %23 = arith.mulf %20, %22 : vector<64x32xf32>
    %c0_8 = arith.constant 0 : index
    %c0_9 = arith.constant 0 : index
    %24 = vector.load %arg3[%c0_8, %c0_9] : memref<1x32xf32, #tpu.memory_space<vmem>>, vector<1x32xf32>
    %25 = vector.broadcast %24 : vector<1x32xf32> to vector<64x32xf32>
    %26 = arith.addf %23, %25 : vector<64x32xf32>
    %27 = arith.truncf %26 : vector<64x32xf32> to vector<64x32xbf16>
    %c0_10 = arith.constant 0 : index
    %c0_11 = arith.constant 0 : index
    %28 = vector.load %arg4[%c0_10, %c0_11] : memref<32x96xbf16, #tpu.memory_space<vmem>>, vector<32x96xbf16>
    %cst_12 = arith.constant dense<0.000000e+00> : vector<64x96xf32>
    %29 = tpu.matmul %27, %28, %cst_12 {dimension_numbers = #tpu.dot_dimension_numbers<[1], [0], [0], [1], [0, 0, 1, 1], [], []>} : vector<64x32xbf16>, vector<32x96xbf16>, vector<64x96xf32> -> vector<64x96xf32>
    %c0_13 = arith.constant 0 : index
    %c0_14 = arith.constant 0 : index
    %30 = vector.load %arg5[%c0_13, %c0_14] : memref<1x96xf32, #tpu.memory_space<vmem>>, vector<1x96xf32>
    %31 = vector.broadcast %30 : vector<1x96xf32> to vector<64x96xf32>
    %32 = arith.addf %29, %31 : vector<64x96xf32>
    %33 = vector.shape_cast %32 : vector<64x96xf32> to vector<4x16x96xf32>
    %c0_15 = arith.constant 0 : index
    %c0_16 = arith.constant 0 : index
    %c0_17 = arith.constant 0 : index
    %34 = vector.load %arg8[%c0_15, %c0_16, %c0_17] : memref<4x16x16xf32, #tpu.memory_space<vmem>>, vector<4x16x16xf32>
    %35 = vector.extract_strided_slice %33 {offsets = [0, 0, 0], sizes = [4, 16, 8], strides = [1, 1, 1]} : vector<4x16x96xf32> to vector<4x16x8xf32>
    %36 = vector.extract_strided_slice %33 {offsets = [0, 0, 32], sizes = [4, 16, 8], strides = [1, 1, 1]} : vector<4x16x96xf32> to vector<4x16x8xf32>
    %37 = vector.extract_strided_slice %33 {offsets = [0, 0, 64], sizes = [4, 16, 8], strides = [1, 1, 1]} : vector<4x16x96xf32> to vector<4x16x8xf32>
    %38 = arith.truncf %35 : vector<4x16x8xf32> to vector<4x16x8xbf16>
    %39 = arith.truncf %36 : vector<4x16x8xf32> to vector<4x16x8xbf16>
    "tpu.trace_start"() <{level = 10 : i32, message = "wqd,wkd->wqk"}> : () -> ()
    %cst_18 = arith.constant dense<0.000000e+00> : vector<4x16x16xf32>
    %40 = tpu.matmul %38, %39, %cst_18 {dimension_numbers = #tpu.dot_dimension_numbers<[2], [2], [1], [1], [0, 0, 0, 1, 1, 1], [0], [0]>} : vector<4x16x8xbf16>, vector<4x16x8xbf16>, vector<4x16x16xf32> -> vector<4x16x16xf32>
    "tpu.trace_stop"() : () -> ()
    %41 = vector.extract_strided_slice %34 {offsets = [0, 0, 0], sizes = [1, 16, 16], strides = [1, 1, 1]} : vector<4x16x16xf32> to vector<1x16x16xf32>
    %42 = vector.shape_cast %41 : vector<1x16x16xf32> to vector<16x16xf32>
    %43 = vector.shape_cast %42 : vector<16x16xf32> to vector<1x16x16xf32>
    %44 = vector.broadcast %43 : vector<1x16x16xf32> to vector<4x16x16xf32>
    %45 = arith.addf %40, %44 : vector<4x16x16xf32>
    %cst_19 = arith.constant dense<0xFF800000> : vector<4x16xf32>
    %46 = vector.multi_reduction <maximumf>, %45, %cst_19 [2] : vector<4x16x16xf32> to vector<4x16xf32>
    %47 = vector.shape_cast %46 : vector<4x16xf32> to vector<4x16x1xf32>
    %48 = vector.broadcast %47 : vector<4x16x1xf32> to vector<4x16x16xf32>
    %49 = arith.subf %45, %48 : vector<4x16x16xf32>
    %50 = math.exp %49 : vector<4x16x16xf32>
    %cst_20 = arith.constant dense<0.000000e+00> : vector<4x16xf32>
    %51 = vector.multi_reduction <add>, %50, %cst_20 [2] : vector<4x16x16xf32> to vector<4x16xf32>
    %52 = vector.shape_cast %51 : vector<4x16xf32> to vector<4x16x1xf32>
    %53 = tpu.reciprocal %52 {approx = true} : vector<4x16x1xf32> -> vector<4x16x1xf32>
    %54 = vector.broadcast %53 : vector<4x16x1xf32> to vector<4x16x16xf32>
    %55 = arith.mulf %50, %54 : vector<4x16x16xf32>
    %56 = arith.truncf %55 : vector<4x16x16xf32> to vector<4x16x16xbf16>
    %57 = arith.truncf %37 : vector<4x16x8xf32> to vector<4x16x8xbf16>
    "tpu.trace_start"() <{level = 10 : i32, message = "wqk,wkd->wqd"}> : () -> ()
    %cst_21 = arith.constant dense<0.000000e+00> : vector<4x16x8xf32>
    %58 = tpu.matmul %56, %57, %cst_21 {dimension_numbers = #tpu.dot_dimension_numbers<[2], [1], [1], [2], [0, 0, 0, 1, 1, 2], [0], [0]>} : vector<4x16x16xbf16>, vector<4x16x8xbf16>, vector<4x16x8xf32> -> vector<4x16x8xf32>
    "tpu.trace_stop"() : () -> ()
    %59 = vector.extract_strided_slice %33 {offsets = [0, 0, 8], sizes = [4, 16, 8], strides = [1, 1, 1]} : vector<4x16x96xf32> to vector<4x16x8xf32>
    %60 = vector.extract_strided_slice %33 {offsets = [0, 0, 40], sizes = [4, 16, 8], strides = [1, 1, 1]} : vector<4x16x96xf32> to vector<4x16x8xf32>
    %61 = vector.extract_strided_slice %33 {offsets = [0, 0, 72], sizes = [4, 16, 8], strides = [1, 1, 1]} : vector<4x16x96xf32> to vector<4x16x8xf32>
    %62 = arith.truncf %59 : vector<4x16x8xf32> to vector<4x16x8xbf16>
    %63 = arith.truncf %60 : vector<4x16x8xf32> to vector<4x16x8xbf16>
    "tpu.trace_start"() <{level = 10 : i32, message = "wqd,wkd->wqk"}> : () -> ()
    %cst_22 = arith.constant dense<0.000000e+00> : vector<4x16x16xf32>
    %64 = tpu.matmul %62, %63, %cst_22 {dimension_numbers = #tpu.dot_dimension_numbers<[2], [2], [1], [1], [0, 0, 0, 1, 1, 1], [0], [0]>} : vector<4x16x8xbf16>, vector<4x16x8xbf16>, vector<4x16x16xf32> -> vector<4x16x16xf32>
    "tpu.trace_stop"() : () -> ()
    %65 = vector.extract_strided_slice %34 {offsets = [1, 0, 0], sizes = [1, 16, 16], strides = [1, 1, 1]} : vector<4x16x16xf32> to vector<1x16x16xf32>
    %66 = vector.shape_cast %65 : vector<1x16x16xf32> to vector<16x16xf32>
    %67 = vector.shape_cast %66 : vector<16x16xf32> to vector<1x16x16xf32>
    %68 = vector.broadcast %67 : vector<1x16x16xf32> to vector<4x16x16xf32>
    %69 = arith.addf %64, %68 : vector<4x16x16xf32>
    %cst_23 = arith.constant dense<0xFF800000> : vector<4x16xf32>
    %70 = vector.multi_reduction <maximumf>, %69, %cst_23 [2] : vector<4x16x16xf32> to vector<4x16xf32>
    %71 = vector.shape_cast %70 : vector<4x16xf32> to vector<4x16x1xf32>
    %72 = vector.broadcast %71 : vector<4x16x1xf32> to vector<4x16x16xf32>
    %73 = arith.subf %69, %72 : vector<4x16x16xf32>
    %74 = math.exp %73 : vector<4x16x16xf32>
    %cst_24 = arith.constant dense<0.000000e+00> : vector<4x16xf32>
    %75 = vector.multi_reduction <add>, %74, %cst_24 [2] : vector<4x16x16xf32> to vector<4x16xf32>
    %76 = vector.shape_cast %75 : vector<4x16xf32> to vector<4x16x1xf32>
    %77 = tpu.reciprocal %76 {approx = true} : vector<4x16x1xf32> -> vector<4x16x1xf32>
    %78 = vector.broadcast %77 : vector<4x16x1xf32> to vector<4x16x16xf32>
    %79 = arith.mulf %74, %78 : vector<4x16x16xf32>
    %80 = arith.truncf %79 : vector<4x16x16xf32> to vector<4x16x16xbf16>
    %81 = arith.truncf %61 : vector<4x16x8xf32> to vector<4x16x8xbf16>
    "tpu.trace_start"() <{level = 10 : i32, message = "wqk,wkd->wqd"}> : () -> ()
    %cst_25 = arith.constant dense<0.000000e+00> : vector<4x16x8xf32>
    %82 = tpu.matmul %80, %81, %cst_25 {dimension_numbers = #tpu.dot_dimension_numbers<[2], [1], [1], [2], [0, 0, 0, 1, 1, 2], [0], [0]>} : vector<4x16x16xbf16>, vector<4x16x8xbf16>, vector<4x16x8xf32> -> vector<4x16x8xf32>
    "tpu.trace_stop"() : () -> ()
    %83 = vector.extract_strided_slice %33 {offsets = [0, 0, 16], sizes = [4, 16, 8], strides = [1, 1, 1]} : vector<4x16x96xf32> to vector<4x16x8xf32>
    %84 = vector.extract_strided_slice %33 {offsets = [0, 0, 48], sizes = [4, 16, 8], strides = [1, 1, 1]} : vector<4x16x96xf32> to vector<4x16x8xf32>
    %85 = vector.extract_strided_slice %33 {offsets = [0, 0, 80], sizes = [4, 16, 8], strides = [1, 1, 1]} : vector<4x16x96xf32> to vector<4x16x8xf32>
    %86 = arith.truncf %83 : vector<4x16x8xf32> to vector<4x16x8xbf16>
    %87 = arith.truncf %84 : vector<4x16x8xf32> to vector<4x16x8xbf16>
    "tpu.trace_start"() <{level = 10 : i32, message = "wqd,wkd->wqk"}> : () -> ()
    %cst_26 = arith.constant dense<0.000000e+00> : vector<4x16x16xf32>
    %88 = tpu.matmul %86, %87, %cst_26 {dimension_numbers = #tpu.dot_dimension_numbers<[2], [2], [1], [1], [0, 0, 0, 1, 1, 1], [0], [0]>} : vector<4x16x8xbf16>, vector<4x16x8xbf16>, vector<4x16x16xf32> -> vector<4x16x16xf32>
    "tpu.trace_stop"() : () -> ()
    %89 = vector.extract_strided_slice %34 {offsets = [2, 0, 0], sizes = [1, 16, 16], strides = [1, 1, 1]} : vector<4x16x16xf32> to vector<1x16x16xf32>
    %90 = vector.shape_cast %89 : vector<1x16x16xf32> to vector<16x16xf32>
    %91 = vector.shape_cast %90 : vector<16x16xf32> to vector<1x16x16xf32>
    %92 = vector.broadcast %91 : vector<1x16x16xf32> to vector<4x16x16xf32>
    %93 = arith.addf %88, %92 : vector<4x16x16xf32>
    %cst_27 = arith.constant dense<0xFF800000> : vector<4x16xf32>
    %94 = vector.multi_reduction <maximumf>, %93, %cst_27 [2] : vector<4x16x16xf32> to vector<4x16xf32>
    %95 = vector.shape_cast %94 : vector<4x16xf32> to vector<4x16x1xf32>
    %96 = vector.broadcast %95 : vector<4x16x1xf32> to vector<4x16x16xf32>
    %97 = arith.subf %93, %96 : vector<4x16x16xf32>
    %98 = math.exp %97 : vector<4x16x16xf32>
    %cst_28 = arith.constant dense<0.000000e+00> : vector<4x16xf32>
    %99 = vector.multi_reduction <add>, %98, %cst_28 [2] : vector<4x16x16xf32> to vector<4x16xf32>
    %100 = vector.shape_cast %99 : vector<4x16xf32> to vector<4x16x1xf32>
    %101 = tpu.reciprocal %100 {approx = true} : vector<4x16x1xf32> -> vector<4x16x1xf32>
    %102 = vector.broadcast %101 : vector<4x16x1xf32> to vector<4x16x16xf32>
    %103 = arith.mulf %98, %102 : vector<4x16x16xf32>
    %104 = arith.truncf %103 : vector<4x16x16xf32> to vector<4x16x16xbf16>
    %105 = arith.truncf %85 : vector<4x16x8xf32> to vector<4x16x8xbf16>
    "tpu.trace_start"() <{level = 10 : i32, message = "wqk,wkd->wqd"}> : () -> ()
    %cst_29 = arith.constant dense<0.000000e+00> : vector<4x16x8xf32>
    %106 = tpu.matmul %104, %105, %cst_29 {dimension_numbers = #tpu.dot_dimension_numbers<[2], [1], [1], [2], [0, 0, 0, 1, 1, 2], [0], [0]>} : vector<4x16x16xbf16>, vector<4x16x8xbf16>, vector<4x16x8xf32> -> vector<4x16x8xf32>
    "tpu.trace_stop"() : () -> ()
    %107 = vector.extract_strided_slice %33 {offsets = [0, 0, 24], sizes = [4, 16, 8], strides = [1, 1, 1]} : vector<4x16x96xf32> to vector<4x16x8xf32>
    %108 = vector.extract_strided_slice %33 {offsets = [0, 0, 56], sizes = [4, 16, 8], strides = [1, 1, 1]} : vector<4x16x96xf32> to vector<4x16x8xf32>
    %109 = vector.extract_strided_slice %33 {offsets = [0, 0, 88], sizes = [4, 16, 8], strides = [1, 1, 1]} : vector<4x16x96xf32> to vector<4x16x8xf32>
    %110 = arith.truncf %107 : vector<4x16x8xf32> to vector<4x16x8xbf16>
    %111 = arith.truncf %108 : vector<4x16x8xf32> to vector<4x16x8xbf16>
    "tpu.trace_start"() <{level = 10 : i32, message = "wqd,wkd->wqk"}> : () -> ()
    %cst_30 = arith.constant dense<0.000000e+00> : vector<4x16x16xf32>
    %112 = tpu.matmul %110, %111, %cst_30 {dimension_numbers = #tpu.dot_dimension_numbers<[2], [2], [1], [1], [0, 0, 0, 1, 1, 1], [0], [0]>} : vector<4x16x8xbf16>, vector<4x16x8xbf16>, vector<4x16x16xf32> -> vector<4x16x16xf32>
    "tpu.trace_stop"() : () -> ()
    %113 = vector.extract_strided_slice %34 {offsets = [3, 0, 0], sizes = [1, 16, 16], strides = [1, 1, 1]} : vector<4x16x16xf32> to vector<1x16x16xf32>
    %114 = vector.shape_cast %113 : vector<1x16x16xf32> to vector<16x16xf32>
    %115 = vector.shape_cast %114 : vector<16x16xf32> to vector<1x16x16xf32>
    %116 = vector.broadcast %115 : vector<1x16x16xf32> to vector<4x16x16xf32>
    %117 = arith.addf %112, %116 : vector<4x16x16xf32>
    %cst_31 = arith.constant dense<0xFF800000> : vector<4x16xf32>
    %118 = vector.multi_reduction <maximumf>, %117, %cst_31 [2] : vector<4x16x16xf32> to vector<4x16xf32>
    %119 = vector.shape_cast %118 : vector<4x16xf32> to vector<4x16x1xf32>
    %120 = vector.broadcast %119 : vector<4x16x1xf32> to vector<4x16x16xf32>
    %121 = arith.subf %117, %120 : vector<4x16x16xf32>
    %122 = math.exp %121 : vector<4x16x16xf32>
    %cst_32 = arith.constant dense<0.000000e+00> : vector<4x16xf32>
    %123 = vector.multi_reduction <add>, %122, %cst_32 [2] : vector<4x16x16xf32> to vector<4x16xf32>
    %124 = vector.shape_cast %123 : vector<4x16xf32> to vector<4x16x1xf32>
    %125 = tpu.reciprocal %124 {approx = true} : vector<4x16x1xf32> -> vector<4x16x1xf32>
    %126 = vector.broadcast %125 : vector<4x16x1xf32> to vector<4x16x16xf32>
    %127 = arith.mulf %122, %126 : vector<4x16x16xf32>
    %128 = arith.truncf %127 : vector<4x16x16xf32> to vector<4x16x16xbf16>
    %129 = arith.truncf %109 : vector<4x16x8xf32> to vector<4x16x8xbf16>
    "tpu.trace_start"() <{level = 10 : i32, message = "wqk,wkd->wqd"}> : () -> ()
    %cst_33 = arith.constant dense<0.000000e+00> : vector<4x16x8xf32>
    %130 = tpu.matmul %128, %129, %cst_33 {dimension_numbers = #tpu.dot_dimension_numbers<[2], [1], [1], [2], [0, 0, 0, 1, 1, 2], [0], [0]>} : vector<4x16x16xbf16>, vector<4x16x8xbf16>, vector<4x16x8xf32> -> vector<4x16x8xf32>
    "tpu.trace_stop"() : () -> ()
    %131 = tpu.concatenate %58, %82, %106, %130 in 2 : vector<4x16x8xf32>, vector<4x16x8xf32>, vector<4x16x8xf32>, vector<4x16x8xf32> -> vector<4x16x32xf32>
    %132 = vector.shape_cast %131 : vector<4x16x32xf32> to vector<64x32xf32>
    %133 = arith.truncf %132 : vector<64x32xf32> to vector<64x32xbf16>
    %c0_34 = arith.constant 0 : index
    %c0_35 = arith.constant 0 : index
    %134 = vector.load %arg6[%c0_34, %c0_35] : memref<32x32xbf16, #tpu.memory_space<vmem>>, vector<32x32xbf16>
    %cst_36 = arith.constant dense<0.000000e+00> : vector<64x32xf32>
    %135 = tpu.matmul %133, %134, %cst_36 {dimension_numbers = #tpu.dot_dimension_numbers<[1], [0], [0], [1], [0, 0, 1, 1], [], []>} : vector<64x32xbf16>, vector<32x32xbf16>, vector<64x32xf32> -> vector<64x32xf32>
    %c0_37 = arith.constant 0 : index
    %c0_38 = arith.constant 0 : index
    %136 = vector.load %arg7[%c0_37, %c0_38] : memref<1x32xf32, #tpu.memory_space<vmem>>, vector<1x32xf32>
    %137 = vector.broadcast %136 : vector<1x32xf32> to vector<64x32xf32>
    %138 = arith.addf %135, %137 : vector<64x32xf32>
    %139 = vector.shape_cast %138 : vector<64x32xf32> to vector<4x16x32xf32>
    %140 = arith.addf %1, %139 : vector<4x16x32xf32>
    %141 = arith.truncf %140 : vector<4x16x32xf32> to vector<4x16x32xbf16>
    %c0_39 = arith.constant 0 : index
    %c0_40 = arith.constant 0 : index
    %c0_41 = arith.constant 0 : index
    %142 = vector.load %arg9[%c0_39, %c0_40, %c0_41] : memref<4x16x32xbf16, #tpu.memory_space<vmem>>, vector<4x16x32xbf16>
    tpu.vector_store %arg9[%c0_39, %c0_40, %c0_41], %141 {strides = array<i32>} : memref<4x16x32xbf16, #tpu.memory_space<vmem>>, vector<4x16x32xbf16>,
    return
  }
  func.func @transform_0(%arg0: i32) -> (i32, i32, i32) {
    %c0_i32 = arith.constant 0 : i32
    %c0_i32_0 = arith.constant 0 : i32
    %c0_i32_1 = arith.constant 0 : i32
    return %arg0, %c0_i32, %c0_i32_0 : i32, i32, i32
  }
  func.func @transform_1(%arg0: i32) -> (i32, i32) {
    %c0_i32 = arith.constant 0 : i32
    %c0_i32_0 = arith.constant 0 : i32
    %c0_i32_1 = arith.constant 0 : i32
    return %c0_i32, %c0_i32_0 : i32, i32
  }
  func.func @transform_2(%arg0: i32) -> (i32, i32) {
    %c0_i32 = arith.constant 0 : i32
    %c0_i32_0 = arith.constant 0 : i32
    %c0_i32_1 = arith.constant 0 : i32
    return %c0_i32, %c0_i32_0 : i32, i32
  }
  func.func @transform_3(%arg0: i32) -> (i32, i32) {
    %c0_i32 = arith.constant 0 : i32
    %c0_i32_0 = arith.constant 0 : i32
    %c0_i32_1 = arith.constant 0 : i32
    return %c0_i32, %c0_i32_0 : i32, i32
  }
  func.func @transform_4(%arg0: i32) -> (i32, i32) {
    %c0_i32 = arith.constant 0 : i32
    %c0_i32_0 = arith.constant 0 : i32
    %c0_i32_1 = arith.constant 0 : i32
    return %c0_i32, %c0_i32_0 : i32, i32
  }
  func.func @transform_5(%arg0: i32) -> (i32, i32) {
    %c0_i32 = arith.constant 0 : i32
    %c0_i32_0 = arith.constant 0 : i32
    %c0_i32_1 = arith.constant 0 : i32
    return %c0_i32, %c0_i32_0 : i32, i32
  }
  func.func @transform_6(%arg0: i32) -> (i32, i32) {
    %c0_i32 = arith.constant 0 : i32
    %c0_i32_0 = arith.constant 0 : i32
    %c0_i32_1 = arith.constant 0 : i32
    return %c0_i32, %c0_i32_0 : i32, i32
  }
  func.func @transform_7(%arg0: i32) -> (i32, i32, i32) {
    %c0_i32 = arith.constant 0 : i32
    %c0_i32_0 = arith.constant 0 : i32
    %c0_i32_1 = arith.constant 0 : i32
    %c0_i32_2 = arith.constant 0 : i32
    return %c0_i32, %c0_i32_0, %c0_i32_1 : i32, i32, i32
  }
  func.func @transform_8(%arg0: i32) -> (i32, i32, i32) {
    %c0_i32 = arith.constant 0 : i32
    %c0_i32_0 = arith.constant 0 : i32
    %c0_i32_1 = arith.constant 0 : i32
    return %arg0, %c0_i32, %c0_i32_0 : i32, i32, i32
  }
}

module attributes {stable_mosaic.version = 11 : i64} {
  func.func @_mlp_kernel(%arg0: i32, %arg1: memref<64x32xbf16, #tpu.memory_space<vmem>>, %arg2: memref<1x32xf32, #tpu.memory_space<vmem>>, %arg3: memref<1x32xf32, #tpu.memory_space<vmem>>, %arg4: memref<32x64xbf16, #tpu.memory_space<vmem>>, %arg5: memref<1x64xf32, #tpu.memory_space<vmem>>, %arg6: memref<64x32xbf16, #tpu.memory_space<vmem>>, %arg7: memref<1x32xf32, #tpu.memory_space<vmem>>, %arg8: memref<64x32xbf16, #tpu.memory_space<vmem>>) attributes {dimension_semantics = [#tpu.dimension_semantics<parallel>], iteration_bounds = array<i64: 2>, scalar_prefetch = 0 : i64, scratch_operands = 0 : i64, tpu.core_type = #tpu.core_type<tc>, window_params = [{transform_indices = @transform_0, window_bounds = array<i64: 64, 32>}, {pipeline_mode = #tpu.pipeline_mode<synchronous>, transform_indices = @transform_1, window_bounds = array<i64: 1, 32>}, {pipeline_mode = #tpu.pipeline_mode<synchronous>, transform_indices = @transform_2, window_bounds = array<i64: 1, 32>}, {pipeline_mode = #tpu.pipeline_mode<synchronous>, transform_indices = @transform_3, window_bounds = array<i64: 32, 64>}, {pipeline_mode = #tpu.pipeline_mode<synchronous>, transform_indices = @transform_4, window_bounds = array<i64: 1, 64>}, {pipeline_mode = #tpu.pipeline_mode<synchronous>, transform_indices = @transform_5, window_bounds = array<i64: 64, 32>}, {pipeline_mode = #tpu.pipeline_mode<synchronous>, transform_indices = @transform_6, window_bounds = array<i64: 1, 32>}, {transform_indices = @transform_7, window_bounds = array<i64: 64, 32>}]} {
    %c0 = arith.constant 0 : index
    %c0_0 = arith.constant 0 : index
    %0 = vector.load %arg1[%c0, %c0_0] : memref<64x32xbf16, #tpu.memory_space<vmem>>, vector<64x32xbf16>
    %1 = arith.extf %0 : vector<64x32xbf16> to vector<64x32xf32>
    %cst = arith.constant dense<0.000000e+00> : vector<64xf32>
    %2 = vector.multi_reduction <add>, %1, %cst [1] : vector<64x32xf32> to vector<64xf32>
    %3 = vector.shape_cast %2 : vector<64xf32> to vector<64x1xf32>
    %cst_1 = arith.constant 3.200000e+01 : f32
    %4 = vector.broadcast %cst_1 : f32 to vector<64x1xf32>
    %5 = arith.divf %3, %4 : vector<64x1xf32>
    %6 = vector.broadcast %5 : vector<64x1xf32> to vector<64x32xf32>
    %7 = arith.subf %1, %6 : vector<64x32xf32>
    %8 = arith.mulf %7, %7 : vector<64x32xf32>
    %cst_2 = arith.constant dense<0.000000e+00> : vector<64xf32>
    %9 = vector.multi_reduction <add>, %8, %cst_2 [1] : vector<64x32xf32> to vector<64xf32>
    %10 = vector.shape_cast %9 : vector<64xf32> to vector<64x1xf32>
    %cst_3 = arith.constant 3.200000e+01 : f32
    %11 = vector.broadcast %cst_3 : f32 to vector<64x1xf32>
    %12 = arith.divf %10, %11 : vector<64x1xf32>
    %13 = vector.broadcast %5 : vector<64x1xf32> to vector<64x32xf32>
    %14 = arith.subf %1, %13 : vector<64x32xf32>
    %cst_4 = arith.constant 9.99999974E-6 : f32
    %15 = vector.broadcast %cst_4 : f32 to vector<64x1xf32>
    %16 = arith.addf %12, %15 : vector<64x1xf32>
    %17 = math.rsqrt %16 : vector<64x1xf32>
    %18 = vector.broadcast %17 : vector<64x1xf32> to vector<64x32xf32>
    %19 = arith.mulf %14, %18 : vector<64x32xf32>
    %c0_5 = arith.constant 0 : index
    %c0_6 = arith.constant 0 : index
    %20 = vector.load %arg2[%c0_5, %c0_6] : memref<1x32xf32, #tpu.memory_space<vmem>>, vector<1x32xf32>
    %21 = vector.broadcast %20 : vector<1x32xf32> to vector<64x32xf32>
    %22 = arith.mulf %19, %21 : vector<64x32xf32>
    %c0_7 = arith.constant 0 : index
    %c0_8 = arith.constant 0 : index
    %23 = vector.load %arg3[%c0_7, %c0_8] : memref<1x32xf32, #tpu.memory_space<vmem>>, vector<1x32xf32>
    %24 = vector.broadcast %23 : vector<1x32xf32> to vector<64x32xf32>
    %25 = arith.addf %22, %24 : vector<64x32xf32>
    %26 = arith.truncf %25 : vector<64x32xf32> to vector<64x32xbf16>
    %c0_9 = arith.constant 0 : index
    %c0_10 = arith.constant 0 : index
    %27 = vector.load %arg4[%c0_9, %c0_10] : memref<32x64xbf16, #tpu.memory_space<vmem>>, vector<32x64xbf16>
    %cst_11 = arith.constant dense<0.000000e+00> : vector<64x64xf32>
    %28 = tpu.matmul %26, %27, %cst_11 {dimension_numbers = #tpu.dot_dimension_numbers<[1], [0], [0], [1], [0, 0, 1, 1], [], []>} : vector<64x32xbf16>, vector<32x64xbf16>, vector<64x64xf32> -> vector<64x64xf32>
    %c0_12 = arith.constant 0 : index
    %c0_13 = arith.constant 0 : index
    %29 = vector.load %arg5[%c0_12, %c0_13] : memref<1x64xf32, #tpu.memory_space<vmem>>, vector<1x64xf32>
    %30 = vector.broadcast %29 : vector<1x64xf32> to vector<64x64xf32>
    %31 = arith.addf %28, %30 : vector<64x64xf32>
    %cst_14 = arith.constant 5.000000e-01 : f32
    %32 = vector.broadcast %cst_14 : f32 to vector<64x64xf32>
    %33 = arith.mulf %32, %31 : vector<64x64xf32>
    %cst_15 = arith.constant 0.707106769 : f32
    %34 = vector.broadcast %cst_15 : f32 to vector<64x64xf32>
    %35 = arith.mulf %31, %34 : vector<64x64xf32>
    %36 = math.erf %35 : vector<64x64xf32>
    %cst_16 = arith.constant 1.000000e+00 : f32
    %37 = vector.broadcast %cst_16 : f32 to vector<64x64xf32>
    %38 = arith.addf %37, %36 : vector<64x64xf32>
    %39 = arith.mulf %33, %38 : vector<64x64xf32>
    %40 = arith.truncf %39 : vector<64x64xf32> to vector<64x64xbf16>
    %c0_17 = arith.constant 0 : index
    %c0_18 = arith.constant 0 : index
    %41 = vector.load %arg6[%c0_17, %c0_18] : memref<64x32xbf16, #tpu.memory_space<vmem>>, vector<64x32xbf16>
    %cst_19 = arith.constant dense<0.000000e+00> : vector<64x32xf32>
    %42 = tpu.matmul %40, %41, %cst_19 {dimension_numbers = #tpu.dot_dimension_numbers<[1], [0], [0], [1], [0, 0, 1, 1], [], []>} : vector<64x64xbf16>, vector<64x32xbf16>, vector<64x32xf32> -> vector<64x32xf32>
    %c0_20 = arith.constant 0 : index
    %c0_21 = arith.constant 0 : index
    %43 = vector.load %arg7[%c0_20, %c0_21] : memref<1x32xf32, #tpu.memory_space<vmem>>, vector<1x32xf32>
    %44 = vector.broadcast %43 : vector<1x32xf32> to vector<64x32xf32>
    %45 = arith.addf %42, %44 : vector<64x32xf32>
    %46 = arith.addf %1, %45 : vector<64x32xf32>
    %47 = arith.truncf %46 : vector<64x32xf32> to vector<64x32xbf16>
    %c0_22 = arith.constant 0 : index
    %c0_23 = arith.constant 0 : index
    %48 = vector.load %arg8[%c0_22, %c0_23] : memref<64x32xbf16, #tpu.memory_space<vmem>>, vector<64x32xbf16>
    tpu.vector_store %arg8[%c0_22, %c0_23], %47 {strides = array<i32>} : memref<64x32xbf16, #tpu.memory_space<vmem>>, vector<64x32xbf16>,
    return
  }
  func.func @transform_0(%arg0: i32) -> (i32, i32) {
    %c0_i32 = arith.constant 0 : i32
    %c0_i32_0 = arith.constant 0 : i32
    return %arg0, %c0_i32 : i32, i32
  }
  func.func @transform_1(%arg0: i32) -> (i32, i32) {
    %c0_i32 = arith.constant 0 : i32
    %c0_i32_0 = arith.constant 0 : i32
    %c0_i32_1 = arith.constant 0 : i32
    return %c0_i32, %c0_i32_0 : i32, i32
  }
  func.func @transform_2(%arg0: i32) -> (i32, i32) {
    %c0_i32 = arith.constant 0 : i32
    %c0_i32_0 = arith.constant 0 : i32
    %c0_i32_1 = arith.constant 0 : i32
    return %c0_i32, %c0_i32_0 : i32, i32
  }
  func.func @transform_3(%arg0: i32) -> (i32, i32) {
    %c0_i32 = arith.constant 0 : i32
    %c0_i32_0 = arith.constant 0 : i32
    %c0_i32_1 = arith.constant 0 : i32
    return %c0_i32, %c0_i32_0 : i32, i32
  }
  func.func @transform_4(%arg0: i32) -> (i32, i32) {
    %c0_i32 = arith.constant 0 : i32
    %c0_i32_0 = arith.constant 0 : i32
    %c0_i32_1 = arith.constant 0 : i32
    return %c0_i32, %c0_i32_0 : i32, i32
  }
  func.func @transform_5(%arg0: i32) -> (i32, i32) {
    %c0_i32 = arith.constant 0 : i32
    %c0_i32_0 = arith.constant 0 : i32
    %c0_i32_1 = arith.constant 0 : i32
    return %c0_i32, %c0_i32_0 : i32, i32
  }
  func.func @transform_6(%arg0: i32) -> (i32, i32) {
    %c0_i32 = arith.constant 0 : i32
    %c0_i32_0 = arith.constant 0 : i32
    %c0_i32_1 = arith.constant 0 : i32
    return %c0_i32, %c0_i32_0 : i32, i32
  }
  func.func @transform_7(%arg0: i32) -> (i32, i32) {
    %c0_i32 = arith.constant 0 : i32
    %c0_i32_0 = arith.constant 0 : i32
    return %arg0, %c0_i32 : i32, i32
  }
}

module attributes {stable_mosaic.version = 11 : i64} {
  func.func @_attn_block_kernel(%arg0: i32, %arg1: memref<4x16x32xbf16, #tpu.memory_space<vmem>>, %arg2: memref<1x32xf32, #tpu.memory_space<vmem>>, %arg3: memref<1x32xf32, #tpu.memory_space<vmem>>, %arg4: memref<32x96xbf16, #tpu.memory_space<vmem>>, %arg5: memref<1x96xf32, #tpu.memory_space<vmem>>, %arg6: memref<32x32xbf16, #tpu.memory_space<vmem>>, %arg7: memref<1x32xf32, #tpu.memory_space<vmem>>, %arg8: memref<4x16x16xf32, #tpu.memory_space<vmem>>, %arg9: memref<4x16x16xf32, #tpu.memory_space<vmem>>, %arg10: memref<4x16x32xbf16, #tpu.memory_space<vmem>>) attributes {dimension_semantics = [#tpu.dimension_semantics<parallel>], iteration_bounds = array<i64: 2>, scalar_prefetch = 0 : i64, scratch_operands = 0 : i64, tpu.core_type = #tpu.core_type<tc>, window_params = [{transform_indices = @transform_0, window_bounds = array<i64: 4, 16, 32>}, {pipeline_mode = #tpu.pipeline_mode<synchronous>, transform_indices = @transform_1, window_bounds = array<i64: 1, 32>}, {pipeline_mode = #tpu.pipeline_mode<synchronous>, transform_indices = @transform_2, window_bounds = array<i64: 1, 32>}, {pipeline_mode = #tpu.pipeline_mode<synchronous>, transform_indices = @transform_3, window_bounds = array<i64: 32, 96>}, {pipeline_mode = #tpu.pipeline_mode<synchronous>, transform_indices = @transform_4, window_bounds = array<i64: 1, 96>}, {pipeline_mode = #tpu.pipeline_mode<synchronous>, transform_indices = @transform_5, window_bounds = array<i64: 32, 32>}, {pipeline_mode = #tpu.pipeline_mode<synchronous>, transform_indices = @transform_6, window_bounds = array<i64: 1, 32>}, {pipeline_mode = #tpu.pipeline_mode<synchronous>, transform_indices = @transform_7, window_bounds = array<i64: 4, 16, 16>}, {pipeline_mode = #tpu.pipeline_mode<synchronous>, transform_indices = @transform_8, window_bounds = array<i64: 4, 16, 16>}, {transform_indices = @transform_9, window_bounds = array<i64: 4, 16, 32>}]} {
    %c0 = arith.constant 0 : index
    %c0_0 = arith.constant 0 : index
    %c0_1 = arith.constant 0 : index
    %0 = vector.load %arg1[%c0, %c0_0, %c0_1] : memref<4x16x32xbf16, #tpu.memory_space<vmem>>, vector<4x16x32xbf16>
    %1 = arith.extf %0 : vector<4x16x32xbf16> to vector<4x16x32xf32>
    %2 = vector.shape_cast %1 : vector<4x16x32xf32> to vector<64x32xf32>
    %cst = arith.constant dense<0.000000e+00> : vector<64xf32>
    %3 = vector.multi_reduction <add>, %2, %cst [1] : vector<64x32xf32> to vector<64xf32>
    %4 = vector.shape_cast %3 : vector<64xf32> to vector<64x1xf32>
    %cst_2 = arith.constant 3.200000e+01 : f32
    %5 = vector.broadcast %cst_2 : f32 to vector<64x1xf32>
    %6 = arith.divf %4, %5 : vector<64x1xf32>
    %7 = vector.broadcast %6 : vector<64x1xf32> to vector<64x32xf32>
    %8 = arith.subf %2, %7 : vector<64x32xf32>
    %9 = arith.mulf %8, %8 : vector<64x32xf32>
    %cst_3 = arith.constant dense<0.000000e+00> : vector<64xf32>
    %10 = vector.multi_reduction <add>, %9, %cst_3 [1] : vector<64x32xf32> to vector<64xf32>
    %11 = vector.shape_cast %10 : vector<64xf32> to vector<64x1xf32>
    %cst_4 = arith.constant 3.200000e+01 : f32
    %12 = vector.broadcast %cst_4 : f32 to vector<64x1xf32>
    %13 = arith.divf %11, %12 : vector<64x1xf32>
    %14 = vector.broadcast %6 : vector<64x1xf32> to vector<64x32xf32>
    %15 = arith.subf %2, %14 : vector<64x32xf32>
    %cst_5 = arith.constant 9.99999974E-6 : f32
    %16 = vector.broadcast %cst_5 : f32 to vector<64x1xf32>
    %17 = arith.addf %13, %16 : vector<64x1xf32>
    %18 = math.rsqrt %17 : vector<64x1xf32>
    %19 = vector.broadcast %18 : vector<64x1xf32> to vector<64x32xf32>
    %20 = arith.mulf %15, %19 : vector<64x32xf32>
    %c0_6 = arith.constant 0 : index
    %c0_7 = arith.constant 0 : index
    %21 = vector.load %arg2[%c0_6, %c0_7] : memref<1x32xf32, #tpu.memory_space<vmem>>, vector<1x32xf32>
    %22 = vector.broadcast %21 : vector<1x32xf32> to vector<64x32xf32>
    %23 = arith.mulf %20, %22 : vector<64x32xf32>
    %c0_8 = arith.constant 0 : index
    %c0_9 = arith.constant 0 : index
    %24 = vector.load %arg3[%c0_8, %c0_9] : memref<1x32xf32, #tpu.memory_space<vmem>>, vector<1x32xf32>
    %25 = vector.broadcast %24 : vector<1x32xf32> to vector<64x32xf32>
    %26 = arith.addf %23, %25 : vector<64x32xf32>
    %27 = arith.truncf %26 : vector<64x32xf32> to vector<64x32xbf16>
    %c0_10 = arith.constant 0 : index
    %c0_11 = arith.constant 0 : index
    %28 = vector.load %arg4[%c0_10, %c0_11] : memref<32x96xbf16, #tpu.memory_space<vmem>>, vector<32x96xbf16>
    %cst_12 = arith.constant dense<0.000000e+00> : vector<64x96xf32>
    %29 = tpu.matmul %27, %28, %cst_12 {dimension_numbers = #tpu.dot_dimension_numbers<[1], [0], [0], [1], [0, 0, 1, 1], [], []>} : vector<64x32xbf16>, vector<32x96xbf16>, vector<64x96xf32> -> vector<64x96xf32>
    %c0_13 = arith.constant 0 : index
    %c0_14 = arith.constant 0 : index
    %30 = vector.load %arg5[%c0_13, %c0_14] : memref<1x96xf32, #tpu.memory_space<vmem>>, vector<1x96xf32>
    %31 = vector.broadcast %30 : vector<1x96xf32> to vector<64x96xf32>
    %32 = arith.addf %29, %31 : vector<64x96xf32>
    %33 = vector.shape_cast %32 : vector<64x96xf32> to vector<4x16x96xf32>
    %c0_15 = arith.constant 0 : index
    %c0_16 = arith.constant 0 : index
    %c0_17 = arith.constant 0 : index
    %34 = vector.load %arg8[%c0_15, %c0_16, %c0_17] : memref<4x16x16xf32, #tpu.memory_space<vmem>>, vector<4x16x16xf32>
    %c0_18 = arith.constant 0 : index
    %c0_19 = arith.constant 0 : index
    %c0_20 = arith.constant 0 : index
    %35 = vector.load %arg9[%c0_18, %c0_19, %c0_20] : memref<4x16x16xf32, #tpu.memory_space<vmem>>, vector<4x16x16xf32>
    %36 = vector.extract_strided_slice %33 {offsets = [0, 0, 0], sizes = [4, 16, 8], strides = [1, 1, 1]} : vector<4x16x96xf32> to vector<4x16x8xf32>
    %37 = vector.extract_strided_slice %33 {offsets = [0, 0, 32], sizes = [4, 16, 8], strides = [1, 1, 1]} : vector<4x16x96xf32> to vector<4x16x8xf32>
    %38 = vector.extract_strided_slice %33 {offsets = [0, 0, 64], sizes = [4, 16, 8], strides = [1, 1, 1]} : vector<4x16x96xf32> to vector<4x16x8xf32>
    %39 = arith.truncf %36 : vector<4x16x8xf32> to vector<4x16x8xbf16>
    %40 = arith.truncf %37 : vector<4x16x8xf32> to vector<4x16x8xbf16>
    "tpu.trace_start"() <{level = 10 : i32, message = "wqd,wkd->wqk"}> : () -> ()
    %cst_21 = arith.constant dense<0.000000e+00> : vector<4x16x16xf32>
    %41 = tpu.matmul %39, %40, %cst_21 {dimension_numbers = #tpu.dot_dimension_numbers<[2], [2], [1], [1], [0, 0, 0, 1, 1, 1], [0], [0]>} : vector<4x16x8xbf16>, vector<4x16x8xbf16>, vector<4x16x16xf32> -> vector<4x16x16xf32>
    "tpu.trace_stop"() : () -> ()
    %42 = vector.extract_strided_slice %34 {offsets = [0, 0, 0], sizes = [1, 16, 16], strides = [1, 1, 1]} : vector<4x16x16xf32> to vector<1x16x16xf32>
    %43 = vector.shape_cast %42 : vector<1x16x16xf32> to vector<16x16xf32>
    %44 = vector.shape_cast %43 : vector<16x16xf32> to vector<1x16x16xf32>
    %45 = vector.broadcast %44 : vector<1x16x16xf32> to vector<4x16x16xf32>
    %46 = arith.addf %41, %45 : vector<4x16x16xf32>
    %47 = arith.addf %46, %35 : vector<4x16x16xf32>
    %cst_22 = arith.constant dense<0xFF800000> : vector<4x16xf32>
    %48 = vector.multi_reduction <maximumf>, %47, %cst_22 [2] : vector<4x16x16xf32> to vector<4x16xf32>
    %49 = vector.shape_cast %48 : vector<4x16xf32> to vector<4x16x1xf32>
    %50 = vector.broadcast %49 : vector<4x16x1xf32> to vector<4x16x16xf32>
    %51 = arith.subf %47, %50 : vector<4x16x16xf32>
    %52 = math.exp %51 : vector<4x16x16xf32>
    %cst_23 = arith.constant dense<0.000000e+00> : vector<4x16xf32>
    %53 = vector.multi_reduction <add>, %52, %cst_23 [2] : vector<4x16x16xf32> to vector<4x16xf32>
    %54 = vector.shape_cast %53 : vector<4x16xf32> to vector<4x16x1xf32>
    %55 = tpu.reciprocal %54 {approx = true} : vector<4x16x1xf32> -> vector<4x16x1xf32>
    %56 = vector.broadcast %55 : vector<4x16x1xf32> to vector<4x16x16xf32>
    %57 = arith.mulf %52, %56 : vector<4x16x16xf32>
    %58 = arith.truncf %57 : vector<4x16x16xf32> to vector<4x16x16xbf16>
    %59 = arith.truncf %38 : vector<4x16x8xf32> to vector<4x16x8xbf16>
    "tpu.trace_start"() <{level = 10 : i32, message = "wqk,wkd->wqd"}> : () -> ()
    %cst_24 = arith.constant dense<0.000000e+00> : vector<4x16x8xf32>
    %60 = tpu.matmul %58, %59, %cst_24 {dimension_numbers = #tpu.dot_dimension_numbers<[2], [1], [1], [2], [0, 0, 0, 1, 1, 2], [0], [0]>} : vector<4x16x16xbf16>, vector<4x16x8xbf16>, vector<4x16x8xf32> -> vector<4x16x8xf32>
    "tpu.trace_stop"() : () -> ()
    %61 = vector.extract_strided_slice %33 {offsets = [0, 0, 8], sizes = [4, 16, 8], strides = [1, 1, 1]} : vector<4x16x96xf32> to vector<4x16x8xf32>
    %62 = vector.extract_strided_slice %33 {offsets = [0, 0, 40], sizes = [4, 16, 8], strides = [1, 1, 1]} : vector<4x16x96xf32> to vector<4x16x8xf32>
    %63 = vector.extract_strided_slice %33 {offsets = [0, 0, 72], sizes = [4, 16, 8], strides = [1, 1, 1]} : vector<4x16x96xf32> to vector<4x16x8xf32>
    %64 = arith.truncf %61 : vector<4x16x8xf32> to vector<4x16x8xbf16>
    %65 = arith.truncf %62 : vector<4x16x8xf32> to vector<4x16x8xbf16>
    "tpu.trace_start"() <{level = 10 : i32, message = "wqd,wkd->wqk"}> : () -> ()
    %cst_25 = arith.constant dense<0.000000e+00> : vector<4x16x16xf32>
    %66 = tpu.matmul %64, %65, %cst_25 {dimension_numbers = #tpu.dot_dimension_numbers<[2], [2], [1], [1], [0, 0, 0, 1, 1, 1], [0], [0]>} : vector<4x16x8xbf16>, vector<4x16x8xbf16>, vector<4x16x16xf32> -> vector<4x16x16xf32>
    "tpu.trace_stop"() : () -> ()
    %67 = vector.extract_strided_slice %34 {offsets = [1, 0, 0], sizes = [1, 16, 16], strides = [1, 1, 1]} : vector<4x16x16xf32> to vector<1x16x16xf32>
    %68 = vector.shape_cast %67 : vector<1x16x16xf32> to vector<16x16xf32>
    %69 = vector.shape_cast %68 : vector<16x16xf32> to vector<1x16x16xf32>
    %70 = vector.broadcast %69 : vector<1x16x16xf32> to vector<4x16x16xf32>
    %71 = arith.addf %66, %70 : vector<4x16x16xf32>
    %72 = arith.addf %71, %35 : vector<4x16x16xf32>
    %cst_26 = arith.constant dense<0xFF800000> : vector<4x16xf32>
    %73 = vector.multi_reduction <maximumf>, %72, %cst_26 [2] : vector<4x16x16xf32> to vector<4x16xf32>
    %74 = vector.shape_cast %73 : vector<4x16xf32> to vector<4x16x1xf32>
    %75 = vector.broadcast %74 : vector<4x16x1xf32> to vector<4x16x16xf32>
    %76 = arith.subf %72, %75 : vector<4x16x16xf32>
    %77 = math.exp %76 : vector<4x16x16xf32>
    %cst_27 = arith.constant dense<0.000000e+00> : vector<4x16xf32>
    %78 = vector.multi_reduction <add>, %77, %cst_27 [2] : vector<4x16x16xf32> to vector<4x16xf32>
    %79 = vector.shape_cast %78 : vector<4x16xf32> to vector<4x16x1xf32>
    %80 = tpu.reciprocal %79 {approx = true} : vector<4x16x1xf32> -> vector<4x16x1xf32>
    %81 = vector.broadcast %80 : vector<4x16x1xf32> to vector<4x16x16xf32>
    %82 = arith.mulf %77, %81 : vector<4x16x16xf32>
    %83 = arith.truncf %82 : vector<4x16x16xf32> to vector<4x16x16xbf16>
    %84 = arith.truncf %63 : vector<4x16x8xf32> to vector<4x16x8xbf16>
    "tpu.trace_start"() <{level = 10 : i32, message = "wqk,wkd->wqd"}> : () -> ()
    %cst_28 = arith.constant dense<0.000000e+00> : vector<4x16x8xf32>
    %85 = tpu.matmul %83, %84, %cst_28 {dimension_numbers = #tpu.dot_dimension_numbers<[2], [1], [1], [2], [0, 0, 0, 1, 1, 2], [0], [0]>} : vector<4x16x16xbf16>, vector<4x16x8xbf16>, vector<4x16x8xf32> -> vector<4x16x8xf32>
    "tpu.trace_stop"() : () -> ()
    %86 = vector.extract_strided_slice %33 {offsets = [0, 0, 16], sizes = [4, 16, 8], strides = [1, 1, 1]} : vector<4x16x96xf32> to vector<4x16x8xf32>
    %87 = vector.extract_strided_slice %33 {offsets = [0, 0, 48], sizes = [4, 16, 8], strides = [1, 1, 1]} : vector<4x16x96xf32> to vector<4x16x8xf32>
    %88 = vector.extract_strided_slice %33 {offsets = [0, 0, 80], sizes = [4, 16, 8], strides = [1, 1, 1]} : vector<4x16x96xf32> to vector<4x16x8xf32>
    %89 = arith.truncf %86 : vector<4x16x8xf32> to vector<4x16x8xbf16>
    %90 = arith.truncf %87 : vector<4x16x8xf32> to vector<4x16x8xbf16>
    "tpu.trace_start"() <{level = 10 : i32, message = "wqd,wkd->wqk"}> : () -> ()
    %cst_29 = arith.constant dense<0.000000e+00> : vector<4x16x16xf32>
    %91 = tpu.matmul %89, %90, %cst_29 {dimension_numbers = #tpu.dot_dimension_numbers<[2], [2], [1], [1], [0, 0, 0, 1, 1, 1], [0], [0]>} : vector<4x16x8xbf16>, vector<4x16x8xbf16>, vector<4x16x16xf32> -> vector<4x16x16xf32>
    "tpu.trace_stop"() : () -> ()
    %92 = vector.extract_strided_slice %34 {offsets = [2, 0, 0], sizes = [1, 16, 16], strides = [1, 1, 1]} : vector<4x16x16xf32> to vector<1x16x16xf32>
    %93 = vector.shape_cast %92 : vector<1x16x16xf32> to vector<16x16xf32>
    %94 = vector.shape_cast %93 : vector<16x16xf32> to vector<1x16x16xf32>
    %95 = vector.broadcast %94 : vector<1x16x16xf32> to vector<4x16x16xf32>
    %96 = arith.addf %91, %95 : vector<4x16x16xf32>
    %97 = arith.addf %96, %35 : vector<4x16x16xf32>
    %cst_30 = arith.constant dense<0xFF800000> : vector<4x16xf32>
    %98 = vector.multi_reduction <maximumf>, %97, %cst_30 [2] : vector<4x16x16xf32> to vector<4x16xf32>
    %99 = vector.shape_cast %98 : vector<4x16xf32> to vector<4x16x1xf32>
    %100 = vector.broadcast %99 : vector<4x16x1xf32> to vector<4x16x16xf32>
    %101 = arith.subf %97, %100 : vector<4x16x16xf32>
    %102 = math.exp %101 : vector<4x16x16xf32>
    %cst_31 = arith.constant dense<0.000000e+00> : vector<4x16xf32>
    %103 = vector.multi_reduction <add>, %102, %cst_31 [2] : vector<4x16x16xf32> to vector<4x16xf32>
    %104 = vector.shape_cast %103 : vector<4x16xf32> to vector<4x16x1xf32>
    %105 = tpu.reciprocal %104 {approx = true} : vector<4x16x1xf32> -> vector<4x16x1xf32>
    %106 = vector.broadcast %105 : vector<4x16x1xf32> to vector<4x16x16xf32>
    %107 = arith.mulf %102, %106 : vector<4x16x16xf32>
    %108 = arith.truncf %107 : vector<4x16x16xf32> to vector<4x16x16xbf16>
    %109 = arith.truncf %88 : vector<4x16x8xf32> to vector<4x16x8xbf16>
    "tpu.trace_start"() <{level = 10 : i32, message = "wqk,wkd->wqd"}> : () -> ()
    %cst_32 = arith.constant dense<0.000000e+00> : vector<4x16x8xf32>
    %110 = tpu.matmul %108, %109, %cst_32 {dimension_numbers = #tpu.dot_dimension_numbers<[2], [1], [1], [2], [0, 0, 0, 1, 1, 2], [0], [0]>} : vector<4x16x16xbf16>, vector<4x16x8xbf16>, vector<4x16x8xf32> -> vector<4x16x8xf32>
    "tpu.trace_stop"() : () -> ()
    %111 = vector.extract_strided_slice %33 {offsets = [0, 0, 24], sizes = [4, 16, 8], strides = [1, 1, 1]} : vector<4x16x96xf32> to vector<4x16x8xf32>
    %112 = vector.extract_strided_slice %33 {offsets = [0, 0, 56], sizes = [4, 16, 8], strides = [1, 1, 1]} : vector<4x16x96xf32> to vector<4x16x8xf32>
    %113 = vector.extract_strided_slice %33 {offsets = [0, 0, 88], sizes = [4, 16, 8], strides = [1, 1, 1]} : vector<4x16x96xf32> to vector<4x16x8xf32>
    %114 = arith.truncf %111 : vector<4x16x8xf32> to vector<4x16x8xbf16>
    %115 = arith.truncf %112 : vector<4x16x8xf32> to vector<4x16x8xbf16>
    "tpu.trace_start"() <{level = 10 : i32, message = "wqd,wkd->wqk"}> : () -> ()
    %cst_33 = arith.constant dense<0.000000e+00> : vector<4x16x16xf32>
    %116 = tpu.matmul %114, %115, %cst_33 {dimension_numbers = #tpu.dot_dimension_numbers<[2], [2], [1], [1], [0, 0, 0, 1, 1, 1], [0], [0]>} : vector<4x16x8xbf16>, vector<4x16x8xbf16>, vector<4x16x16xf32> -> vector<4x16x16xf32>
    "tpu.trace_stop"() : () -> ()
    %117 = vector.extract_strided_slice %34 {offsets = [3, 0, 0], sizes = [1, 16, 16], strides = [1, 1, 1]} : vector<4x16x16xf32> to vector<1x16x16xf32>
    %118 = vector.shape_cast %117 : vector<1x16x16xf32> to vector<16x16xf32>
    %119 = vector.shape_cast %118 : vector<16x16xf32> to vector<1x16x16xf32>
    %120 = vector.broadcast %119 : vector<1x16x16xf32> to vector<4x16x16xf32>
    %121 = arith.addf %116, %120 : vector<4x16x16xf32>
    %122 = arith.addf %121, %35 : vector<4x16x16xf32>
    %cst_34 = arith.constant dense<0xFF800000> : vector<4x16xf32>
    %123 = vector.multi_reduction <maximumf>, %122, %cst_34 [2] : vector<4x16x16xf32> to vector<4x16xf32>
    %124 = vector.shape_cast %123 : vector<4x16xf32> to vector<4x16x1xf32>
    %125 = vector.broadcast %124 : vector<4x16x1xf32> to vector<4x16x16xf32>
    %126 = arith.subf %122, %125 : vector<4x16x16xf32>
    %127 = math.exp %126 : vector<4x16x16xf32>
    %cst_35 = arith.constant dense<0.000000e+00> : vector<4x16xf32>
    %128 = vector.multi_reduction <add>, %127, %cst_35 [2] : vector<4x16x16xf32> to vector<4x16xf32>
    %129 = vector.shape_cast %128 : vector<4x16xf32> to vector<4x16x1xf32>
    %130 = tpu.reciprocal %129 {approx = true} : vector<4x16x1xf32> -> vector<4x16x1xf32>
    %131 = vector.broadcast %130 : vector<4x16x1xf32> to vector<4x16x16xf32>
    %132 = arith.mulf %127, %131 : vector<4x16x16xf32>
    %133 = arith.truncf %132 : vector<4x16x16xf32> to vector<4x16x16xbf16>
    %134 = arith.truncf %113 : vector<4x16x8xf32> to vector<4x16x8xbf16>
    "tpu.trace_start"() <{level = 10 : i32, message = "wqk,wkd->wqd"}> : () -> ()
    %cst_36 = arith.constant dense<0.000000e+00> : vector<4x16x8xf32>
    %135 = tpu.matmul %133, %134, %cst_36 {dimension_numbers = #tpu.dot_dimension_numbers<[2], [1], [1], [2], [0, 0, 0, 1, 1, 2], [0], [0]>} : vector<4x16x16xbf16>, vector<4x16x8xbf16>, vector<4x16x8xf32> -> vector<4x16x8xf32>
    "tpu.trace_stop"() : () -> ()
    %136 = tpu.concatenate %60, %85, %110, %135 in 2 : vector<4x16x8xf32>, vector<4x16x8xf32>, vector<4x16x8xf32>, vector<4x16x8xf32> -> vector<4x16x32xf32>
    %137 = vector.shape_cast %136 : vector<4x16x32xf32> to vector<64x32xf32>
    %138 = arith.truncf %137 : vector<64x32xf32> to vector<64x32xbf16>
    %c0_37 = arith.constant 0 : index
    %c0_38 = arith.constant 0 : index
    %139 = vector.load %arg6[%c0_37, %c0_38] : memref<32x32xbf16, #tpu.memory_space<vmem>>, vector<32x32xbf16>
    %cst_39 = arith.constant dense<0.000000e+00> : vector<64x32xf32>
    %140 = tpu.matmul %138, %139, %cst_39 {dimension_numbers = #tpu.dot_dimension_numbers<[1], [0], [0], [1], [0, 0, 1, 1], [], []>} : vector<64x32xbf16>, vector<32x32xbf16>, vector<64x32xf32> -> vector<64x32xf32>
    %c0_40 = arith.constant 0 : index
    %c0_41 = arith.constant 0 : index
    %141 = vector.load %arg7[%c0_40, %c0_41] : memref<1x32xf32, #tpu.memory_space<vmem>>, vector<1x32xf32>
    %142 = vector.broadcast %141 : vector<1x32xf32> to vector<64x32xf32>
    %143 = arith.addf %140, %142 : vector<64x32xf32>
    %144 = vector.shape_cast %143 : vector<64x32xf32> to vector<4x16x32xf32>
    %145 = arith.addf %1, %144 : vector<4x16x32xf32>
    %146 = arith.truncf %145 : vector<4x16x32xf32> to vector<4x16x32xbf16>
    %c0_42 = arith.constant 0 : index
    %c0_43 = arith.constant 0 : index
    %c0_44 = arith.constant 0 : index
    %147 = vector.load %arg10[%c0_42, %c0_43, %c0_44] : memref<4x16x32xbf16, #tpu.memory_space<vmem>>, vector<4x16x32xbf16>
    tpu.vector_store %arg10[%c0_42, %c0_43, %c0_44], %146 {strides = array<i32>} : memref<4x16x32xbf16, #tpu.memory_space<vmem>>, vector<4x16x32xbf16>,
    return
  }
  func.func @transform_0(%arg0: i32) -> (i32, i32, i32) {
    %c0_i32 = arith.constant 0 : i32
    %c0_i32_0 = arith.constant 0 : i32
    %c0_i32_1 = arith.constant 0 : i32
    return %arg0, %c0_i32, %c0_i32_0 : i32, i32, i32
  }
  func.func @transform_1(%arg0: i32) -> (i32, i32) {
    %c0_i32 = arith.constant 0 : i32
    %c0_i32_0 = arith.constant 0 : i32
    %c0_i32_1 = arith.constant 0 : i32
    return %c0_i32, %c0_i32_0 : i32, i32
  }
  func.func @transform_2(%arg0: i32) -> (i32, i32) {
    %c0_i32 = arith.constant 0 : i32
    %c0_i32_0 = arith.constant 0 : i32
    %c0_i32_1 = arith.constant 0 : i32
    return %c0_i32, %c0_i32_0 : i32, i32
  }
  func.func @transform_3(%arg0: i32) -> (i32, i32) {
    %c0_i32 = arith.constant 0 : i32
    %c0_i32_0 = arith.constant 0 : i32
    %c0_i32_1 = arith.constant 0 : i32
    return %c0_i32, %c0_i32_0 : i32, i32
  }
  func.func @transform_4(%arg0: i32) -> (i32, i32) {
    %c0_i32 = arith.constant 0 : i32
    %c0_i32_0 = arith.constant 0 : i32
    %c0_i32_1 = arith.constant 0 : i32
    return %c0_i32, %c0_i32_0 : i32, i32
  }
  func.func @transform_5(%arg0: i32) -> (i32, i32) {
    %c0_i32 = arith.constant 0 : i32
    %c0_i32_0 = arith.constant 0 : i32
    %c0_i32_1 = arith.constant 0 : i32
    return %c0_i32, %c0_i32_0 : i32, i32
  }
  func.func @transform_6(%arg0: i32) -> (i32, i32) {
    %c0_i32 = arith.constant 0 : i32
    %c0_i32_0 = arith.constant 0 : i32
    %c0_i32_1 = arith.constant 0 : i32
    return %c0_i32, %c0_i32_0 : i32, i32
  }
  func.func @transform_7(%arg0: i32) -> (i32, i32, i32) {
    %c0_i32 = arith.constant 0 : i32
    %c0_i32_0 = arith.constant 0 : i32
    %c0_i32_1 = arith.constant 0 : i32
    %c0_i32_2 = arith.constant 0 : i32
    return %c0_i32, %c0_i32_0, %c0_i32_1 : i32, i32, i32
  }
  func.func @transform_8(%arg0: i32) -> (i32, i32, i32) {
    %c0_i32 = arith.constant 0 : i32
    %c0_i32_0 = arith.constant 0 : i32
    %c0_i32_1 = arith.constant 0 : i32
    %c0_i32_2 = arith.constant 0 : i32
    return %c0_i32, %c0_i32_0, %c0_i32_1 : i32, i32, i32
  }
  func.func @transform_9(%arg0: i32) -> (i32, i32, i32) {
    %c0_i32 = arith.constant 0 : i32
    %c0_i32_0 = arith.constant 0 : i32
    %c0_i32_1 = arith.constant 0 : i32
    return %arg0, %c0_i32, %c0_i32_0 : i32, i32, i32
  }
}

</mosaic_0001>

<bundles_post_ra>
// kernel: rstb_forward.5
= control target key start
LH: loop header
LB: loop body
LE: loop exit
PB: predicated region body
PF: predicated region fallthrough
CT: control target
= control target key end

     0   :  { %s1265_s24 = smov 0   ;;  %s1854_s0 = inlined_call_operand.vmem [shape: bf16[128,32], index: 0, kind: input, shape index: {}]   ;;  %s1855_s1 = inlined_call_operand.vmem [shape: f32[1,32], index: 1, kind: input, shape index: {}]   ;;  %s1856_s2 = inlined_call_operand.vmem [shape: f32[1,32], index: 2, kind: input, shape index: {}]   ;;  %s1857_s3 = inlined_call_operand.vmem [shape: bf16[32,64], index: 3, kind: input, shape index: {}]   ;;  %s1858_s4 = inlined_call_operand.vmem [shape: f32[1,64], index: 4, kind: input, shape index: {}]   ;;  %s1859_s5 = inlined_call_operand.vmem [shape: bf16[64,32], index: 5, kind: input, shape index: {}]   ;;  %s1860_s6 = inlined_call_operand.vmem [shape: f32[1,32], index: 6, kind: input, shape index: {}]   ;;  %s1861_s7 = inlined_call_operand.vmem [shape: bf16[128,32], index: 7, kind: output, shape index: {}]  }
   0x1 LB: > { %s1087_s25 = sadd.s32 4294967295, %s1222_s24   ;;  %p1091_p0 = scmp.ge.s32.totalorder %s1222_s24, 1  ;;  %s1222_s24 = sphi %s1265_s24, %s17_s24  }
   0x2   : > { %p238_p1 = scmp.lt.s32.totalorder %s1222_s24, 3 }
   0x4   : > { %p239_p2 = pnand %p1091_p0, %p238_p1 }
   0x5   : > { %s1092_s26 = sshll.u32 (!%p239_p2), %s1087_s25, 3 }
   0x6   : > { %242 = sbr.rel (%p239_p2) target bundleno = 688 (0x2b0), region = 48  ;;  %p271_p3 = scmp.lt.s32.totalorder (!%p239_p2), %s1092_s26, 15 }
   0xb   : > { %s1885_s26 = smov (!%p271_p3, %s1092_s26), 15  ;;  %vm299_vm0 = vcmask 261120   ;;  %v1224_v20 = vmov 32.0  }
   0xc   : > { %s1093_s27 = sshll.u32 %s1885_s26, 2  ;;  %1182 = vrcp.f32 %v1224_v20 }
   0xd   : > { %s274_s30 = scalar_lea.vmem %s1854_s0, %s1093_s27  ;;  %s1826_s10 = scalar_lea.vmem %s1861_s7, %s1093_s27 }
   0xe   : > { %v1161_v0 = vld [vmem:[%s274_s30 + $0x10] sm:$0xff]   ;;  %v1160_v1 = vld [vmem:[%s274_s30 + $0x8] sm:$0xff]   ;;  %v1145_v2 = vld [vmem:[%s274_s30] sm:$0xff]  }
   0xf   : > { %v1281_v3 = vunpack.c.l.bf16 %v1161_v0  ;;  %v1283_v4 = vunpack.c.l.bf16 %v1160_v1  ;;  %v1285_v5 = vunpack.c.l.bf16 %v1145_v2  ;;  %v1293_v9 = vunpack.c.h.bf16 %v1161_v0  ;;  %v1162_v15 = vld [vmem:[%s274_s30 + $0x18] sm:$0xff]  }
  0x10   : > { %v1295_v10 = vunpack.c.h.bf16 %v1160_v1  ;;  %v1297_v11 = vunpack.c.h.bf16 %v1145_v2  ;;  %v1305_v16 = vunpack.c.l.bf16 %v1162_v15  ;;  %v1307_v17 = vunpack.c.h.bf16 %v1162_v15  ;;  %v1138_v15 = vld [vmem:[%s1857_s3] sm:$0xff] }
  0x11   : > { %v312_v6 = vsel %vm299_vm0, %v1281_v3, 0.0  ;;  %v306_v7 = vsel %vm299_vm0, %v1283_v4, 0.0  ;;  %v300_v8 = vsel %vm299_vm0, %v1285_v5, 0.0  ;;  %v315_v12 = vsel %vm299_vm0, %v1293_v9, 0.0 }
  0x12   : > { %313 = vadd.xlane.f32.xlu1 %v312_v6  ;;  %307 = vadd.xlane.f32.xlu0 %v306_v7  ;;  %v309_v13 = vsel %vm299_vm0, %v1295_v10, 0.0  ;;  %v303_v14 = vsel %vm299_vm0, %v1297_v11, 0.0  ;;  %v318_v18 = vsel %vm299_vm0, %v1305_v16, 0.0  ;;  %v321_v19 = vsel %vm299_vm0, %v1307_v17, 0.0  ;;  %v1183_v21 = vpop.eup %1182 }
  0x13   : > { %301 = vadd.xlane.f32.xlu2 %v300_v8  ;;  %v325_v22 = vmul.f32 32.0, %v1183_v21  ;;  %vm329_vm1 = vweird.f32 %v1183_v21 }
  0x15   : > { %v326_v23 = vsub.f32 1.0, %v325_v22 }
  0x17   : > { %v327_v24 = vmul.f32 %v1183_v21, %v326_v23 }
  0x19   : > { %v328_v25 = vadd.f32 %v1183_v21, %v327_v24 }
  0x1a   : > { %316 = vadd.xlane.f32.xlu1 %v315_v12  ;;  %310 = vadd.xlane.f32.xlu0 %v309_v13  ;;  %v1139_v12 = vld [vmem:[%s1857_s3 + $0x8] sm:$0xff] }
  0x1b   : > { %304 = vadd.xlane.f32.xlu2 %v303_v14  ;;  %v1313_v26 = vsel %vm329_vm1, %v1183_v21, %v328_v25  ;;  %1163 = vmatpush.bf16.msra.mxu3 %v1139_v12 }
  0x1c   : > { %549 = vmatpush.bf16.msra.mxu0 %v1139_v12 }
  0x1f   : > { %1164 = vmatpush.bf16.msra.mxu3 %v1138_v15 }
  0x20   : > { %550 = vmatpush.bf16.msra.mxu0 %v1138_v15  ;;  %v1419_v15 = vld [vmem:[%s1855_s1] ss:$0 sm:$0xff] }
  0x22   : > { %319 = vadd.xlane.f32.xlu0 %v318_v18  ;;  %322 = vadd.xlane.f32.xlu1 %v321_v19 }
  0x85   : > { %v314_v27 = vpop.xlane.xlu1 %313  ;;  %v308_v28 = vpop.xlane.xlu0 %307 }
  0x86   : > { %v335_v29 = vmul.f32 %v1313_v26, %v314_v27  ;;  %v333_v30 = vmul.f32 %v1313_v26, %v308_v28  ;;  %v302_v31 = vpop.xlane.xlu2 %301 }
  0x87   : > { %v331_v40 = vmul.f32 %v1313_v26, %v302_v31 }
  0x88   : > { %v1318_v32 = vsub.f32 %v1281_v3, %v335_v29  ;;  %v1321_v33 = vsub.f32 %v1283_v4, %v333_v30 }
  0x89   : > { %v1343_v48 = vsub.f32 %v1285_v5, %v331_v40 }
  0x8a   : > { %v351_v34 = vmul.f32 %v1318_v32, %v1318_v32  ;;  %v349_v35 = vmul.f32 %v1321_v33, %v1321_v33 }
  0x8b   : > { %v347_v59 = vmul.f32 %v1343_v48, %v1343_v48 }
  0x8c   : > { %v367_v36 = vsel %vm299_vm0, %v351_v34, 0.0  ;;  %v361_v37 = vsel %vm299_vm0, %v349_v35, 0.0 }
  0x8d   : > { %368 = vadd.xlane.f32.xlu1 %v367_v36  ;;  %v317_v38 = vpop.xlane.xlu1 %316  ;;  %v311_v39 = vpop.xlane.xlu0 %310  ;;  %362 = vadd.xlane.f32.xlu2 %v361_v37  ;;  %v355_v63 = vsel %vm299_vm0, %v347_v59, 0.0 }
  0x8e   : > { %v336_v41 = vmul.f32 %v1313_v26, %v317_v38  ;;  %v334_v42 = vmul.f32 %v1313_v26, %v311_v39  ;;  %v305_v43 = vpop.xlane.xlu2 %304 }
  0x8f   : > { %v332_v44 = vmul.f32 %v1313_v26, %v305_v43 }
  0x90   : > { %v1334_v45 = vsub.f32 %v1293_v9, %v336_v41  ;;  %v1337_v46 = vsub.f32 %v1295_v10, %v334_v42 }
  0x91   : > { %v1340_v47 = vsub.f32 %v1297_v11, %v332_v44 }
  0x92   : > { %v350_v49 = vmul.f32 %v1337_v46, %v1337_v46  ;;  %v352_v50 = vmul.f32 %v1334_v45, %v1334_v45 }
  0x93   : > { %v348_v51 = vmul.f32 %v1340_v47, %v1340_v47 }
  0x94   : > { %v364_v52 = vsel %vm299_vm0, %v350_v49, 0.0  ;;  %v370_v53 = vsel %vm299_vm0, %v352_v50, 0.0 }
  0x95   : > { %365 = vadd.xlane.f32.xlu0 %v364_v52  ;;  %v320_v54 = vpop.xlane.xlu0 %319  ;;  %371 = vadd.xlane.f32.xlu2 %v370_v53  ;;  %v358_v55 = vsel %vm299_vm0, %v348_v51, 0.0  ;;  %v323_v56 = vpop.xlane.xlu1 %322 }
  0x96   : > { %v337_v57 = vmul.f32 %v1313_v26, %v320_v54  ;;  %359 = vadd.xlane.f32.xlu1 %v358_v55  ;;  %v338_v58 = vmul.f32 %v1313_v26, %v323_v56 }
  0x98   : > { %v1359_v60 = vsub.f32 %v1305_v16, %v337_v57  ;;  %v1362_v61 = vsub.f32 %v1307_v17, %v338_v58 }
  0x9a   : > { %v353_v62 = vmul.f32 %v1359_v60, %v1359_v60  ;;  %v354_v1 = vmul.f32 %v1362_v61, %v1362_v61 }
  0x9c   : > { %v373_v0 = vsel %vm299_vm0, %v353_v62, 0.0  ;;  %v376_v2 = vsel %vm299_vm0, %v354_v1, 0.0 }
  0x9d   : > { %374 = vadd.xlane.f32.xlu2 %v373_v0  ;;  %356 = vadd.xlane.f32.xlu0 %v355_v63 }
  0xa5   : > { %377 = vadd.xlane.f32.xlu0 %v376_v2 }
 0x100   : > { %v369_v6 = vpop.xlane.xlu1 %368  ;;  %v363_v7 = vpop.xlane.xlu2 %362 }
 0x101   : > { %v381_v8 = vmul.f32 %v363_v7, %v1313_v26  ;;  %v383_v13 = vmul.f32 %v369_v6, %v1313_v26 }
 0x103   : > { %v389_v14 = vadd.f32 1e-05, %v381_v8  ;;  %v1379_v18 = vadd.f32 1e-05, %v383_v13 }
 0x105   : > { %1184 = vrsqrt.f32 %v389_v14  ;;  %vm421_vm3 = vweird.f32 %v389_v14  ;;  %vm441_vm13 = vweird.f32 %v1379_v18 }
 0x106   : > { %1186 = vrsqrt.f32 %v1379_v18 }
 0x108   : > { %v366_v19 = vpop.xlane.xlu0 %365  ;;  %v372_v20 = vpop.xlane.xlu2 %371 }
 0x109   : > { %v382_v21 = vmul.f32 %v366_v19, %v1313_v26  ;;  %v360_v22 = vpop.xlane.xlu1 %359  ;;  %v384_v23 = vmul.f32 %v372_v20, %v1313_v26 }
 0x10a   : > { %v380_v24 = vmul.f32 %v360_v22, %v1313_v26 }
 0x10b   : > { %v390_v25 = vadd.f32 1e-05, %v382_v21  ;;  %v1385_v27 = vadd.f32 1e-05, %v384_v23  ;;  %v1185_v28 = vpop.eup %1184 }
 0x10c   : > { %v388_v29 = vadd.f32 1e-05, %v380_v24  ;;  %v416_v30 = vmul.f32 %v1185_v28, %v389_v14  ;;  %v1388_v36 = vpop.eup %1186  ;;  %vm422_vm2 = vweird.f32 %v1185_v28 }
 0x10d   : > { %1188 = vrsqrt.f32 %v390_v25  ;;  %v436_v44 = vmul.f32 %v1388_v36, %v1379_v18  ;;  %vm1401_vm4 = vmor %vm421_vm3, %vm422_vm2  ;;  %vm431_vm5 = vweird.f32 %v390_v25  ;;  %vm451_vm11 = vweird.f32 %v1385_v27 }
 0x10e   : > { %1190 = vrsqrt.f32 %v388_v29  ;;  %v417_v31 = vmul.f32 %v1185_v28, %v416_v30  ;;  %vm411_vm7 = vweird.f32 %v388_v29  ;;  %vm442_vm14 = vweird.f32 %v1388_v36 }
 0x10f   : > { %1192 = vrsqrt.f32 %v1385_v27  ;;  %v437_v58 = vmul.f32 %v1388_v36, %v436_v44  ;;  %vm1455_vm3 = vmor %vm441_vm13, %vm442_vm14 }
 0x110   : > { %v357_v34 = vpop.xlane.xlu0 %356  ;;  %v375_v35 = vpop.xlane.xlu2 %374  ;;  %v418_v37 = vmul.f32 0.5, %v417_v31 }
 0x111   : > { %v379_v38 = vmul.f32 %v357_v34, %v1313_v26  ;;  %v385_v42 = vmul.f32 %v375_v35, %v1313_v26  ;;  %v438_v19 = vmul.f32 0.5, %v437_v58 }
 0x112   : > { %v419_v40 = vsub.f32 1.5, %v418_v37 }
 0x113   : > { %v1189_v39 = vpop.eup %1188  ;;  %v1391_v41 = vadd.f32 1e-05, %v379_v38  ;;  %v1405_v57 = vadd.f32 1e-05, %v385_v42  ;;  %v439_v30 = vsub.f32 1.5, %v438_v19 }
 0x114   : > { %v1191_v43 = vpop.eup %1190  ;;  %v426_v49 = vmul.f32 %v1189_v39, %v390_v25  ;;  %v420_v51 = vmul.f32 %v1185_v28, %v419_v40  ;;  %vm432_vm6 = vweird.f32 %v1189_v39  ;;  %v1435_v25 = vld [vmem:[%s1856_s2] ss:$0 sm:$0xff] }
 0x115   : > { %v1396_v50 = vpop.eup %1192  ;;  %v406_v52 = vmul.f32 %v1191_v43, %v388_v29  ;;  %1194 = vrsqrt.f32 %v1391_v41  ;;  %vm412_vm8 = vweird.f32 %v1191_v43  ;;  %vm433_vm9 = vmor %vm431_vm5, %vm432_vm6  ;;  %vm401_vm15 = vweird.f32 %v1391_v41 }
 0x116   : > { %v427_v53 = vmul.f32 %v1189_v39, %v426_v49  ;;  %v446_v54 = vmul.f32 %v1396_v50, %v1385_v27  ;;  %v424_v59 = vsel %vm1401_vm4, %v1185_v28, %v420_v51  ;;  %1196 = vrsqrt.f32 %v1405_v57  ;;  %vm1424_vm10 = vmor %vm411_vm7, %vm412_vm8 }
 0x117   : > { %v407_v56 = vmul.f32 %v1191_v43, %v406_v52  ;;  %v477_v12 = vmul.f32 %v424_v59, %v1321_v33  ;;  %vm452_vm12 = vweird.f32 %v1396_v50  ;;  %v440_v44 = vmul.f32 %v1388_v36, %v439_v30 }
 0x118   : > { %v428_v62 = vmul.f32 0.5, %v427_v53  ;;  %v447_v63 = vmul.f32 %v1396_v50, %v446_v54  ;;  %v378_v0 = vpop.xlane.xlu0 %377  ;;  %vm1448_vm2 = vmor %vm451_vm11, %vm452_vm12  ;;  %vm461_vm7 = vweird.f32 %v1405_v57 }
 0x119   : > { %v408_v1 = vmul.f32 0.5, %v407_v56  ;;  %v386_v2 = vmul.f32 %v378_v0, %v1313_v26  ;;  %v489_v29 = vmul.f32 %v1419_v15, %v477_v12  ;;  %v444_v58 = vsel %vm1455_vm3, %v1388_v36, %v440_v44 }
 0x11a   : > { %v429_v6 = vsub.f32 1.5, %v428_v62  ;;  %v448_v7 = vmul.f32 0.5, %v447_v63 }
 0x11b   : > { %v1195_v8 = vpop.eup %1194  ;;  %v409_v13 = vsub.f32 1.5, %v408_v1  ;;  %v1414_v14 = vadd.f32 1e-05, %v386_v2  ;;  %v501_v18 = vadd.f32 %v1435_v25, %v489_v29  ;;  %v1493_v29 = vld [vmem:[%s1858_s4] ss:$0 sm:$0xff] }
 0x11c   : > { %v430_v20 = vmul.f32 %v1189_v39, %v429_v6  ;;  %v396_v26 = vmul.f32 %v1195_v8, %v1391_v41  ;;  %v449_v23 = vsub.f32 1.5, %v448_v7  ;;  %v1197_v35 = vpop.eup %1196  ;;  %vm402_vm1 = vweird.f32 %v1195_v8 }
 0x11d   : > { %v410_v21 = vmul.f32 %v1191_v43, %v409_v13  ;;  %1198 = vrsqrt.f32 %v1414_v14  ;;  %v456_v51 = vmul.f32 %v1197_v35, %v1405_v57  ;;  %vm403_vm4 = vmor %vm401_vm15, %vm402_vm1  ;;  %vm471_vm5 = vweird.f32 %v1414_v14 }
 0x11e   : > { %v434_v22 = vsel %vm433_vm9, %v1189_v39, %v430_v20  ;;  %v397_v24 = vmul.f32 %v1195_v8, %v396_v26  ;;  %v450_v37 = vmul.f32 %v1396_v50, %v449_v23  ;;  %vm462_vm8 = vweird.f32 %v1197_v35 }
 0x11f   : > { %v478_v28 = vmul.f32 %v434_v22, %v1337_v46  ;;  %v414_v31 = vsel %vm1424_vm10, %v1191_v43, %v410_v21  ;;  %v457_v59 = vmul.f32 %v1197_v35, %v456_v51  ;;  %vm463_vm10 = vmor %vm461_vm7, %vm462_vm8 }
 0x120   : > { %v398_v34 = vmul.f32 0.5, %v397_v24  ;;  %v476_v40 = vmul.f32 %v414_v31, %v1340_v47  ;;  %v454_v52 = vsel %vm1448_vm2, %v1396_v50, %v450_v37  ;;  %v479_v50 = vmul.f32 %v444_v58, %v1318_v32 }
 0x121   : > { %v490_v46 = vmul.f32 %v1419_v15, %v478_v28  ;;  %v480_v62 = vmul.f32 %v454_v52, %v1334_v45  ;;  %v458_v2 = vmul.f32 0.5, %v457_v59 }
 0x122   : > { %v399_v38 = vsub.f32 1.5, %v398_v34  ;;  %v488_v56 = vmul.f32 %v1419_v15, %v476_v40  ;;  %v491_v36 = vmul.f32 %v1419_v15, %v479_v50 }
 0x123   : > { %v1199_v39 = vpop.eup %1198  ;;  %v502_v43 = vadd.f32 %v1435_v25, %v490_v46  ;;  %v492_v7 = vmul.f32 %v1419_v15, %v480_v62  ;;  %v459_v12 = vsub.f32 1.5, %v458_v2 }
 0x124   : > { %v400_v41 = vmul.f32 %v1195_v8, %v399_v38  ;;  %v466_v47 = vmul.f32 %v1199_v39, %v1414_v14  ;;  %vm472_vm6 = vweird.f32 %v1199_v39  ;;  %v503_v13 = vadd.f32 %v1435_v25, %v491_v36 }
 0x125   : > { %v508_v27 = vpack.c.bf16 %v502_v43, %v501_v18  ;;  %v504_v45 = vadd.f32 %v1435_v25, %v492_v7  ;;  %vm473_vm9 = vmor %vm471_vm5, %vm472_vm6  ;;  %v460_v19 = vmul.f32 %v1197_v35, %v459_v12 }
 0x126   : > { %v404_v53 = vsel %vm403_vm4, %v1195_v8, %v400_v41  ;;  %v467_v54 = vmul.f32 %v1199_v39, %v466_v47 }
 0x127   : > { %v475_v55 = vmul.f32 %v404_v53, %v1343_v48  ;;  %1105 = vmatmul.msk.bf16.vlgmr.msra.gmra.mxu3 %vm299_vm0, %v508_v27  ;;  %v500_v48 = vadd.f32 %v1435_v25, %v488_v56  ;;  %v509_v20 = vpack.c.bf16 %v504_v45, %v503_v13  ;;  %v464_v21 = vsel %vm463_vm10, %v1197_v35, %v460_v19 }
 0x128   : > { %v468_v0 = vmul.f32 0.5, %v467_v54  ;;  %v481_v14 = vmul.f32 %v464_v21, %v1359_v60 }
 0x129   : > { %v487_v63 = vmul.f32 %v1419_v15, %v475_v55 }
 0x12a   : > { %v469_v8 = vsub.f32 1.5, %v468_v0  ;;  %v493_v57 = vmul.f32 %v1419_v15, %v481_v14 }
 0x12b   : > { %v499_v1 = vadd.f32 %v1435_v25, %v487_v63 }
 0x12c   : > { %v470_v32 = vmul.f32 %v1199_v39, %v469_v8  ;;  %v505_v24 = vadd.f32 %v1435_v25, %v493_v57 }
 0x12d   : > { %v507_v6 = vpack.c.bf16 %v500_v48, %v499_v1 }
 0x12e   : > { %v474_v26 = vsel %vm473_vm9, %v1199_v39, %v470_v32 }
 0x12f   : > { %1104 = vmatmul.msk.bf16.vlgmr.msra.gmra.mxu0 %vm299_vm0, %v507_v6  ;;  %v482_v33 = vmul.f32 %v474_v26, %v1362_v61 }
 0x131   : > { %v494_v22 = vmul.f32 %v1419_v15, %v482_v33 }
 0x133   : > { %v506_v23 = vadd.f32 %v1435_v25, %v494_v22 }
 0x135   : > { %v510_v28 = vpack.c.bf16 %v506_v23, %v505_v24 }
 0x137   : > { %1106 = vmatmul.msk.bf16.gmra.mxu3 %vm299_vm0, %v509_v20 }
 0x147   : > { %1107 = vmatmul.msk.bf16.gmra.mxu3 %vm299_vm0, %v510_v28 }
 0x1aa   : > { %v557_v30 = vpop.f32.mrf.mxu3 }
 0x1ab   : > { %v1496_v61 = vadd.f32 %v1493_v29, %v557_v30 }
 0x1ac   : > { %v552_v60 = vpop.f32.mrf.mxu0 }
 0x1ad   : > { %v1499_v31 = vmul.f32 0.70710677, %v1496_v61  ;;  %v1502_v15 = vadd.f32 %v1493_v29, %v552_v60 }
 0x1af   : > { %v668_v25 = vmul.f32 %v1499_v31, %v1499_v31  ;;  %v1507_v34 = vmul.f32 0.70710677, %v1502_v15 }
 0x1b1   : > { %v1509_v35 = vmin.f32 %v668_v25, 16.0  ;;  %v588_v46 = vmul.f32 %v1507_v34, %v1507_v34 }
 0x1b2   : > { %v559_v37 = vpop.f32.mrf.mxu3 }
 0x1b3   : > { %v670_v38 = vmul.f32 2.1237322e-06, %v1509_v35  ;;  %v681_v39 = vmul.f32 3.8918573e-05, %v1509_v35  ;;  %v1515_v40 = vmin.f32 %v588_v46, 16.0  ;;  %v1518_v42 = vadd.f32 %v1493_v29, %v559_v37 }
 0x1b4   : > { %v554_v18 = vpop.f32.mrf.mxu0 }
 0x1b5   : > { %v671_v43 = vadd.f32 0.00028619796, %v670_v38  ;;  %v682_v44 = vadd.f32 0.001143296, %v681_v39  ;;  %v590_v49 = vmul.f32 2.1237322e-06, %v1515_v40  ;;  %v1522_v41 = vadd.f32 %v1493_v29, %v554_v18 }
 0x1b6   : > { %v601_v51 = vmul.f32 3.8918573e-05, %v1515_v40  ;;  %v1526_v47 = vmul.f32 0.70710677, %v1518_v42 }
 0x1b7   : > { %v672_v27 = vmul.f32 %v671_v43, %v1509_v35  ;;  %v683_v52 = vmul.f32 %v682_v44, %v1509_v35  ;;  %v591_v53 = vadd.f32 0.00028619796, %v590_v49  ;;  %v1533_v56 = vmul.f32 0.70710677, %v1522_v41 }
 0x1b8   : > { %v602_v54 = vadd.f32 0.001143296, %v601_v51  ;;  %v708_v55 = vmul.f32 %v1526_v47, %v1526_v47 }
 0x1b9   : > { %v673_v58 = vadd.f32 0.0036580483, %v672_v27  ;;  %v684_v59 = vadd.f32 0.014752088, %v683_v52  ;;  %v592_v62 = vmul.f32 %v591_v53, %v1515_v40  ;;  %v628_v50 = vmul.f32 %v1533_v56, %v1533_v56 }
 0x1ba   : > { %v603_v63 = vmul.f32 %v602_v54, %v1515_v40  ;;  %v1537_v0 = vmin.f32 %v708_v55, 16.0  ;;  %v562_v33 = vpop.f32.mrf.mxu3 }
 0x1bb   : > { %v674_v1 = vmul.f32 %v673_v58, %v1509_v35  ;;  %v685_v48 = vmul.f32 %v684_v59, %v1509_v35  ;;  %v593_v2 = vadd.f32 0.0036580483, %v592_v62  ;;  %v1546_v45 = vmin.f32 %v628_v50, 16.0 }
 0x1bc   : > { %v604_v6 = vadd.f32 0.014752088, %v603_v63  ;;  %v710_v7 = vmul.f32 2.1237322e-06, %v1537_v0  ;;  %v721_v8 = vmul.f32 3.8918573e-05, %v1537_v0  ;;  %v1569_v63 = vadd.f32 %v1493_v29, %v562_v33 }
 0x1bd   : > { %v686_v36 = vadd.f32 0.112945676, %v685_v48  ;;  %v594_v12 = vmul.f32 %v593_v2, %v1515_v40  ;;  %v675_v20 = vadd.f32 0.05243302, %v674_v1  ;;  %v630_v21 = vmul.f32 2.1237322e-06, %v1546_v45 }
 0x1be   : > { %v605_v32 = vmul.f32 %v604_v6, %v1515_v40  ;;  %v711_v13 = vadd.f32 0.00028619796, %v710_v7  ;;  %v722_v19 = vadd.f32 0.001143296, %v721_v8  ;;  %v641_v23 = vmul.f32 3.8918573e-05, %v1546_v45 }
 0x1bf   : > { %v687_v26 = vmul.f32 %v686_v36, %v1509_v35  ;;  %v595_v28 = vadd.f32 0.05243302, %v594_v12  ;;  %v631_v30 = vadd.f32 0.00028619796, %v630_v21  ;;  %v676_v51 = vmul.f32 %v675_v20, %v1509_v35 }
 0x1c0   : > { %v606_v14 = vadd.f32 0.112945676, %v605_v32  ;;  %v712_v22 = vmul.f32 %v711_v13, %v1537_v0  ;;  %v723_v57 = vmul.f32 %v722_v19, %v1537_v0  ;;  %v642_v37 = vadd.f32 0.001143296, %v641_v23 }
 0x1c1   : > { %v688_v24 = vadd.f32 0.4994258, %v687_v26  ;;  %v632_v39 = vmul.f32 %v631_v30, %v1546_v45  ;;  %v596_v52 = vmul.f32 %v595_v28, %v1515_v40  ;;  %v677_v50 = vadd.f32 0.18741608, %v676_v51 }
 0x1c2   : > { %v607_v60 = vmul.f32 %v606_v14, %v1515_v40  ;;  %v713_v25 = vadd.f32 0.0036580483, %v712_v22  ;;  %v724_v46 = vadd.f32 0.014752088, %v723_v57  ;;  %v643_v49 = vmul.f32 %v642_v37, %v1546_v45  ;;  %v564_v6 = vpop.f32.mrf.mxu3 }
 0x1c3   : > { %v689_v38 = vmul.f32 %v688_v24, %v1509_v35  ;;  %v633_v53 = vadd.f32 0.0036580483, %v632_v39  ;;  %v597_v7 = vadd.f32 0.18741608, %v596_v52  ;;  %v1577_v32 = vadd.f32 %v1493_v29, %v564_v6  ;;  %v1143_v6 = vld [vmem:[%s1859_s5 + $0x18] sm:$0xff] }
 0x1c4   : > { %v608_v18 = vadd.f32 0.4994258, %v607_v60  ;;  %v714_v43 = vmul.f32 %v713_v25, %v1537_v0  ;;  %v725_v44 = vmul.f32 %v724_v46, %v1537_v0  ;;  %v644_v59 = vadd.f32 0.014752088, %v643_v49  ;;  %981 = vmatpush.bf16.msra.mxu1 %v1143_v6  ;;  %1165 = vmatpush.bf16.msra.mxu2 %v1143_v6 }
 0x1c5   : > { %v1561_v27 = vadd.f32 1.0, %v689_v38  ;;  %v634_v48 = vmul.f32 %v633_v53, %v1546_v45  ;;  %v678_v19 = vmul.f32 %v677_v50, %v1509_v35  ;;  %v1583_v26 = vmul.f32 0.70710677, %v1569_v63 }
 0x1c6   : > { %v609_v54 = vmul.f32 %v608_v18, %v1515_v40  ;;  %v715_v55 = vadd.f32 0.05243302, %v714_v43  ;;  %v726_v58 = vadd.f32 0.112945676, %v725_v44  ;;  %v645_v2 = vmul.f32 %v644_v59, %v1546_v45 }
 0x1c7   : > { %1200 = vrcp.f32 %v1561_v27  ;;  %v635_v20 = vadd.f32 0.05243302, %v634_v48  ;;  %v598_v33 = vmul.f32 %v597_v7, %v1515_v40  ;;  %v1590_v57 = vmul.f32 0.5, %v1502_v15 }
 0x1c8   : > { %v1566_v62 = vadd.f32 1.0, %v609_v54  ;;  %v727_v1 = vmul.f32 %v726_v58, %v1537_v0  ;;  %v716_v8 = vmul.f32 %v715_v55, %v1537_v0  ;;  %v646_v12 = vadd.f32 0.112945676, %v645_v2 }
 0x1c9   : > { %v1593_v23 = vmul.f32 0.5, %v1522_v41  ;;  %v702_v28 = vand.u32 2147483648, %v1561_v27  ;;  %v748_v40 = vmul.f32 %v1583_v26, %v1583_v26  ;;  %v1604_v60 = vmul.f32 0.70710677, %v1577_v32 }
 0x1ca   : > { %1202 = vrcp.f32 %v1566_v62  ;;  %v728_v36 = vadd.f32 0.4994258, %v727_v1  ;;  %v717_v14 = vadd.f32 0.18741608, %v716_v8  ;;  %v647_v35 = vmul.f32 %v646_v12, %v1546_v45  ;;  %v567_v59 = vpop.f32.mrf.mxu3 }
 0x1cb   : > { %v636_v41 = vmul.f32 %v635_v20, %v1546_v45  ;;  %v1609_v37 = vadd.f32 1.1283791, %v678_v19  ;;  %v599_v38 = vadd.f32 1.1283791, %v598_v33  ;;  %vm696_vm0 = vweird.f32 %v1561_v27 }
 0x1cc   : > { %v729_v22 = vmul.f32 %v728_v36, %v1537_v0  ;;  %v648_v46 = vadd.f32 0.4994258, %v647_v35  ;;  %v718_v39 = vmul.f32 %v717_v14, %v1537_v0  ;;  %v700_v18 = vand.u32 2147483647, %v1561_v27 }
 0x1cd   : > { %v1579_v13 = vpop.eup %1200  ;;  %v1616_v49 = vor.u32 1.1754944e-38, %v702_v28  ;;  %v620_v51 = vand.u32 2147483647, %v1566_v62  ;;  %v1619_v52 = vmin.f32 %v748_v40, 16.0  ;;  %v788_v53 = vmul.f32 %v1604_v60, %v1604_v60  ;;  %v1142_v40 = vld [vmem:[%s1859_s5 + $0x10] sm:$0xff] }
 0x1ce   : > { %v692_v21 = vmul.f32 %v1579_v13, %v1561_v27  ;;  %v1599_v30 = vadd.f32 1.0, %v729_v22  ;;  %v649_v44 = vmul.f32 %v648_v46, %v1546_v45  ;;  %v637_v55 = vadd.f32 0.18741608, %v636_v41  ;;  %982 = vmatpush.bf16.msra.mxu1 %v1142_v40  ;;  %1166 = vmatpush.bf16.msra.mxu2 %v1142_v40  ;;  %v1140_v40 = vld [vmem:[%s1859_s5] sm:$0xff] }
 0x1cf   : > { %v600_v50 = vmul.f32 %v599_v38, %v1507_v34  ;;  %v622_v1 = vand.u32 2147483648, %v1566_v62  ;;  %v719_v48 = vadd.f32 1.1283791, %v718_v39  ;;  %v750_v2 = vmul.f32 2.1237322e-06, %v1619_v52 }
 0x1d0   : > { %v1596_v24 = vpop.eup %1202  ;;  %v693_v25 = vsub.f32 1.0, %v692_v21  ;;  %1204 = vrcp.f32 %v1599_v30  ;;  %v1625_v58 = vadd.f32 1.0, %v649_v44  ;;  %v761_v8 = vmul.f32 3.8918573e-05, %v1619_v52 }
 0x1d1   : > { %v612_v15 = vmul.f32 %v1596_v24, %v1566_v62  ;;  %vm617_vm11 = vweird.f32 %v1596_v24  ;;  %vm697_vm12 = vweird.f32 %v1579_v13  ;;  %vm616_vm13 = vweird.f32 %v1566_v62 }
 0x1d2   : > { %v694_v0 = vmul.f32 %v1579_v13, %v693_v25  ;;  %1206 = vrcp.f32 %v1625_v58  ;;  %v1641_v34 = vmin.f32 %v788_v53, 16.0  ;;  %v1644_v12 = vadd.f32 %v1493_v29, %v567_v59  ;;  %vm1652_vm14 = vmor %vm616_vm13, %vm617_vm11  ;;  %v1141_v59 = vld [vmem:[%s1859_s5 + $0x8] sm:$0xff] }
 0x1d3   : > { %v613_v43 = vsub.f32 1.0, %v612_v15  ;;  %v638_v21 = vmul.f32 %v637_v55, %v1546_v45  ;;  %v751_v33 = vadd.f32 0.00028619796, %v750_v2  ;;  %vm1656_vm15 = vcmp.eq.f32.partialorder %v620_v51, 8.507059e+37  ;;  %vm1675_vm1 = vmor %vm696_vm0, %vm697_vm12  ;;  %983 = vmatpush.bf16.msra.mxu1 %v1141_v59  ;;  %1167 = vmatpush.bf16.msra.mxu2 %v1141_v59 }
 0x1d4   : > { %v1647_v19 = vadd.f32 %v1579_v13, %v694_v0  ;;  %v623_v22 = vor.u32 1.1754944e-38, %v622_v1  ;;  %v1661_v35 = vmul.f32 %v719_v48, %v1526_v47  ;;  %v740_v28 = vand.u32 2147483647, %v1599_v30 }
 0x1d5   : > { %v614_v54 = vmul.f32 %v1596_v24, %v613_v43  ;;  %v752_v15 = vmul.f32 %v751_v33, %v1619_v52  ;;  %v762_v41 = vadd.f32 0.001143296, %v761_v8  ;;  %vm736_vm2 = vweird.f32 %v1599_v30 }
 0x1d6   : > { %v1637_v36 = vpop.eup %1204  ;;  %v742_v46 = vand.u32 2147483648, %v1599_v30  ;;  %v790_v38 = vmul.f32 2.1237322e-06, %v1641_v34  ;;  %v699_v27 = vsel %vm1675_vm1, %v1579_v13, %v1647_v19  ;;  %v639_v43 = vadd.f32 1.1283791, %v638_v21 }
 0x1d7   : > { %v615_v7 = vadd.f32 %v1596_v24, %v614_v54  ;;  %v732_v20 = vmul.f32 %v1637_v36, %v1599_v30  ;;  %v753_v44 = vadd.f32 0.0036580483, %v752_v15  ;;  %v763_v51 = vmul.f32 %v762_v41, %v1619_v52  ;;  %984 = vmatpush.bf16.msra.mxu1 %v1140_v40  ;;  %1168 = vmatpush.bf16.msra.mxu2 %v1140_v40 }
 0x1d8   : > { %v1207_v39 = vpop.eup %1206  ;;  %v791_v55 = vadd.f32 0.00028619796, %v790_v38  ;;  %vm1695_vm3 = vcmp.eq.f32.partialorder %v700_v18, 8.507059e+37  ;;  %v660_v13 = vand.u32 2147483647, %v1625_v58  ;;  %v662_v48 = vand.u32 2147483648, %v1625_v58 }
 0x1d9   : > { %v619_v45 = vsel %vm1652_vm14, %v1596_v24, %v615_v7  ;;  %v733_v25 = vsub.f32 1.0, %v732_v20  ;;  %v801_v24 = vmul.f32 3.8918573e-05, %v1641_v34  ;;  %v652_v54 = vmul.f32 %v1207_v39, %v1625_v58 }
 0x1da   : > { %v624_v53 = vsel %vm1656_vm15, %v623_v22, %v619_v45  ;;  %v754_v2 = vmul.f32 %v753_v44, %v1619_v52  ;;  %v764_v6 = vadd.f32 0.014752088, %v763_v51  ;;  %vm1702_vm4 = vcmp.eq.f32.partialorder %v740_v28, 8.507059e+37 }
 0x1db   : > { %v734_v0 = vmul.f32 %v1637_v36, %v733_v25  ;;  %v653_v8 = vsub.f32 1.0, %v652_v54  ;;  %v792_v19 = vmul.f32 %v791_v55, %v1641_v34  ;;  %v802_v20 = vadd.f32 0.001143296, %v801_v24 }
 0x1dc   : > { %v1708_v18 = vmul.f32 0.70710677, %v1644_v12  ;;  %v625_v21 = vmul.f32 %v624_v53, %v600_v50  ;;  %vm737_vm5 = vweird.f32 %v1637_v36  ;;  %vm657_vm6 = vweird.f32 %v1207_v39 }
 0x1dd   : > { %v765_v33 = vmul.f32 %v764_v6, %v1619_v52  ;;  %v735_v14 = vadd.f32 %v1637_v36, %v734_v0  ;;  %v654_v62 = vmul.f32 %v1207_v39, %v653_v8  ;;  %v793_v22 = vadd.f32 0.0036580483, %v792_v19  ;;  %vm1723_vm8 = vmor %vm736_vm2, %vm737_vm5 }
 0x1de   : > { %v803_v28 = vmul.f32 %v802_v20, %v1641_v34  ;;  %v640_v45 = vmul.f32 %v639_v43, %v1533_v56  ;;  %vm656_vm7 = vweird.f32 %v1625_v58  ;;  %v828_v25 = vmul.f32 %v1708_v18, %v1708_v18  ;;  %v569_v56 = vpop.f32.mrf.mxu3 }
 0x1df   : > { %v766_v50 = vadd.f32 0.112945676, %v765_v33  ;;  %v655_v41 = vadd.f32 %v1207_v39, %v654_v62  ;;  %vm1727_vm9 = vcmp.eq.f32.partialorder %v660_v13, 8.507059e+37  ;;  %v755_v38 = vadd.f32 0.05243302, %v754_v2  ;;  %vm658_vm10 = vmor %vm656_vm7, %vm657_vm6 }
 0x1e0   : > { %v804_v24 = vadd.f32 0.014752088, %v803_v28  ;;  %v663_v58 = vor.u32 1.1754944e-38, %v662_v48  ;;  %v794_v30 = vmul.f32 %v793_v22, %v1641_v34  ;;  %v1734_v44 = vmin.f32 %v828_v25, 16.0 }
 0x1e1   : > { %v767_v43 = vmul.f32 %v766_v50, %v1619_v52  ;;  %v1108_v51 = vclamps-f32 %v625_v21, 1.0  ;;  %v739_v53 = vsel %vm1723_vm8, %v1637_v36, %v735_v14  ;;  %v659_v0 = vsel %vm658_vm10, %v1207_v39, %v655_v41 }
 0x1e2   : > { %v805_v54 = vmul.f32 %v804_v24, %v1641_v34  ;;  %v743_v55 = vor.u32 1.1754944e-38, %v742_v46  ;;  %v664_v59 = vsel %vm1727_vm9, %v663_v58, %v659_v0  ;;  %v1743_v48 = vadd.f32 %v1493_v29, %v569_v56 }
 0x1e3   : > { %v768_v13 = vadd.f32 0.4994258, %v767_v43  ;;  %v704_v2 = vsel %vm1695_vm3, %v1616_v49, %v699_v27  ;;  %v665_v6 = vmul.f32 %v664_v59, %v640_v45  ;;  %v756_v8 = vmul.f32 %v755_v38, %v1619_v52 }
 0x1e4   : > { %v806_v19 = vadd.f32 0.112945676, %v805_v54  ;;  %v744_v36 = vsel %vm1702_vm4, %v743_v55, %v739_v53  ;;  %v795_v39 = vadd.f32 0.05243302, %v794_v30  ;;  %v841_v20 = vmul.f32 3.8918573e-05, %v1734_v44 }
 0x1e5   : > { %v769_v46 = vmul.f32 %v768_v13, %v1619_v52  ;;  %v908_v21 = vadd.f32 1.0, %v1108_v51  ;;  %v1109_v33 = vclamps-f32 %v665_v6, 1.0  ;;  %v830_v14 = vmul.f32 2.1237322e-06, %v1734_v44 }
 0x1e6   : > { %v807_v29 = vmul.f32 %v806_v19, %v1641_v34  ;;  %v680_v49 = vmul.f32 %v1609_v37, %v1499_v31  ;;  %v842_v1 = vadd.f32 0.001143296, %v841_v20  ;;  %v1760_v7 = vmul.f32 0.70710677, %v1743_v48 }
 0x1e7   : > { %v1757_v27 = vadd.f32 1.0, %v769_v46  ;;  %v745_v62 = vmul.f32 %v744_v36, %v1661_v35  ;;  %v909_v22 = vadd.f32 1.0, %v1109_v33  ;;  %v757_v28 = vadd.f32 0.18741608, %v756_v8 }
 0x1e8   : > { %v808_v40 = vadd.f32 0.4994258, %v807_v29  ;;  %v705_v45 = vmul.f32 %v704_v2, %v680_v49  ;;  %v796_v50 = vmul.f32 %v795_v39, %v1641_v34  ;;  %v916_v25 = vmul.f32 %v908_v21, %v1590_v57 }
 0x1e9   : > { %1208 = vrcp.f32 %v1757_v27  ;;  %v917_v31 = vmul.f32 %v909_v22, %v1593_v23  ;;  %v831_v15 = vadd.f32 0.00028619796, %v830_v14  ;;  %v843_v41 = vmul.f32 %v842_v1, %v1734_v44 }
 0x1ea   : > { %v809_v37 = vmul.f32 %v808_v40, %v1641_v34  ;;  %v868_v35 = vmul.f32 %v1760_v7, %v1760_v7  ;;  %v1111_v47 = vclamps-f32 %v745_v62, 1.0  ;;  %v758_v38 = vmul.f32 %v757_v28, %v1619_v52 }
 0x1eb   : > { %v924_v56 = vpack.c.bf16 %v917_v31, %v916_v25  ;;  %v797_v58 = vadd.f32 0.18741608, %v796_v50  ;;  %v844_v43 = vadd.f32 0.014752088, %v843_v41  ;;  %vm964_vm0 = vcmask 523264  }
 0x1ec   : > { %v1772_v24 = vadd.f32 1.0, %v809_v37  ;;  %v1774_v30 = vmin.f32 %v868_v35, 16.0  ;;  %v1110_v57 = vclamps-f32 %v705_v45, 1.0  ;;  %v832_v23 = vmul.f32 %v831_v15, %v1734_v44 }
 0x1ed   : > { %1132 = vmatmul.msk.bf16.vlgmr.msra.gmra.mxu1 %vm964_vm0, %v924_v56  ;;  %v574_v53 = vmul.f32 0.5, %v1496_v61  ;;  %v845_v52 = vmul.f32 %v844_v43, %v1734_v44  ;;  %v575_v55 = vmul.f32 0.5, %v1518_v42  ;;  %v911_v59 = vadd.f32 1.0, %v1111_v47 }
 0x1ee   : > { %1210 = vrcp.f32 %v1772_v24  ;;  %v870_v0 = vmul.f32 2.1237322e-06, %v1774_v30  ;;  %v881_v54 = vmul.f32 3.8918573e-05, %v1774_v30  ;;  %v759_v13 = vadd.f32 1.1283791, %v758_v38 }
 0x1ef   : > { %v1209_v51 = vpop.eup %1208  ;;  %v798_v6 = vmul.f32 %v797_v58, %v1641_v34  ;;  %v846_v8 = vadd.f32 0.112945676, %v845_v52  ;;  %v910_v46 = vadd.f32 1.0, %v1110_v57  ;;  %v780_v61 = vand.u32 2147483647, %v1757_v27 }
 0x1f0   : > { %v772_v2 = vmul.f32 %v1209_v51, %v1757_v27  ;;  %v871_v19 = vadd.f32 0.00028619796, %v870_v0  ;;  %v882_v36 = vadd.f32 0.001143296, %v881_v54  ;;  %v833_v20 = vadd.f32 0.0036580483, %v832_v23 }
 0x1f1   : > { %v782_v21 = vand.u32 2147483648, %v1757_v27  ;;  %v847_v33 = vmul.f32 %v846_v8, %v1734_v44  ;;  %v919_v49 = vmul.f32 %v911_v59, %v575_v55  ;;  %v760_v34 = vmul.f32 %v759_v13, %v1583_v26 }
 0x1f2   : > { %v773_v39 = vsub.f32 1.0, %v772_v2  ;;  %v872_v42 = vmul.f32 %v871_v19, %v1774_v30  ;;  %v883_v29 = vmul.f32 %v882_v36, %v1774_v30  ;;  %vm777_vm11 = vweird.f32 %v1209_v51 }
 0x1f3   : > { %vm776_vm12 = vweird.f32 %v1757_v27  ;;  %v799_v62 = vadd.f32 1.1283791, %v798_v6  ;;  %v848_v28 = vadd.f32 0.4994258, %v847_v33  ;;  %vm781_vm13 = vcmp.eq.f32.partialorder %v780_v61, 8.507059e+37 }
 0x1f4   : > { %v1211_v14 = vpop.eup %1210  ;;  %v774_v1 = vmul.f32 %v1209_v51, %v773_v39  ;;  %v834_v45 = vmul.f32 %v833_v20, %v1734_v44  ;;  %v884_v50 = vadd.f32 0.014752088, %v883_v29  ;;  %vm778_vm14 = vmor %vm776_vm12, %vm777_vm11  ;;  %v783_v25 = vor.u32 1.1754944e-38, %v782_v21 }
 0x1f5   : > { %v812_v22 = vmul.f32 %v1211_v14, %v1772_v24  ;;  %v849_v37 = vmul.f32 %v848_v28, %v1734_v44  ;;  %v873_v15 = vadd.f32 0.0036580483, %v872_v42  ;;  %v820_v41 = vand.u32 2147483647, %v1772_v24 }
 0x1f6   : > { %v775_v40 = vadd.f32 %v1209_v51, %v774_v1  ;;  %v822_v27 = vand.u32 2147483648, %v1772_v24  ;;  %v885_v35 = vmul.f32 %v884_v50, %v1774_v30  ;;  %vm817_vm15 = vweird.f32 %v1211_v14 }
 0x1f7   : > { %v813_v31 = vsub.f32 1.0, %v812_v22  ;;  %v850_v56 = vadd.f32 1.0, %v849_v37  ;;  %v918_v58 = vmul.f32 %v910_v46, %v574_v53  ;;  %v835_v57 = vadd.f32 0.05243302, %v834_v45 }
 0x1f8   : > { %v779_v26 = vsel %vm778_vm14, %v1209_v51, %v775_v40  ;;  %v886_v23 = vadd.f32 0.112945676, %v885_v35  ;;  %vm816_vm1 = vweird.f32 %v1772_v24  ;;  %v874_v51 = vmul.f32 %v873_v15, %v1774_v30 }
 0x1f9   : > { %v784_v47 = vsel %vm781_vm13, %v783_v25, %v779_v26  ;;  %v814_v38 = vmul.f32 %v1211_v14, %v813_v31  ;;  %1212 = vrcp.f32 %v850_v56  ;;  %vm818_vm2 = vmor %vm816_vm1, %vm817_vm15  ;;  %v823_v0 = vor.u32 1.1754944e-38, %v822_v27 }
 0x1fa   : > { %v785_v43 = vmul.f32 %v784_v47, %v760_v34  ;;  %v887_v54 = vmul.f32 %v886_v23, %v1774_v30  ;;  %v925_v55 = vpack.c.bf16 %v919_v49, %v918_v58  ;;  %v800_v13 = vmul.f32 %v799_v62, %v1604_v60 }
 0x1fb   : > { %v815_v52 = vadd.f32 %v1211_v14, %v814_v38  ;;  %vm821_vm3 = vcmp.eq.f32.partialorder %v820_v41, 8.507059e+37  ;;  %v836_v6 = vmul.f32 %v835_v57, %v1734_v44  ;;  %v875_v24 = vadd.f32 0.05243302, %v874_v51 }
 0x1fc   : > { %v1112_v59 = vclamps-f32 %v785_v43, 1.0  ;;  %v888_v19 = vadd.f32 0.4994258, %v887_v54  ;;  %v576_v20 = vmul.f32 0.5, %v1569_v63  ;;  %v577_v60 = vmul.f32 0.5, %v1577_v32 }
 0x1fd   : > { %v819_v2 = vsel %vm818_vm2, %v1211_v14, %v815_v52  ;;  %1133 = vmatmul.msk.bf16.gmra.mxu1 %vm964_vm0, %v925_v55  ;;  %v837_v21 = vadd.f32 0.18741608, %v836_v6  ;;  %v876_v29 = vmul.f32 %v875_v24, %v1774_v30  ;;  %v862_v28 = vand.u32 2147483648, %v850_v56 }
 0x1fe   : > { %v824_v53 = vsel %vm821_vm3, %v823_v0, %v819_v2  ;;  %v912_v46 = vadd.f32 1.0, %v1112_v59  ;;  %v889_v61 = vmul.f32 %v888_v19, %v1774_v30  ;;  %vm856_vm5 = vweird.f32 %v850_v56 }
 0x1ff   : > { %v825_v8 = vmul.f32 %v824_v53, %v800_v13  ;;  %v1213_v36 = vpop.eup %1212  ;;  %v838_v62 = vmul.f32 %v837_v21, %v1734_v44  ;;  %v877_v40 = vadd.f32 0.18741608, %v876_v29  ;;  %v860_v50 = vand.u32 2147483647, %v850_v56 }
 0x200   : > { %v852_v33 = vmul.f32 %v1213_v36, %v850_v56  ;;  %v890_v14 = vadd.f32 1.0, %v889_v61  ;;  %v920_v34 = vmul.f32 %v912_v46, %v576_v20  ;;  %vm857_vm4 = vweird.f32 %v1213_v36 }
 0x201   : > { %v1113_v39 = vclamps-f32 %v825_v8, 1.0  ;;  %vm858_vm6 = vmor %vm856_vm5, %vm857_vm4  ;;  %v839_v32 = vadd.f32 1.1283791, %v838_v62  ;;  %v863_v37 = vor.u32 1.1754944e-38, %v862_v28  ;;  %v878_v15 = vmul.f32 %v877_v40, %v1774_v30 }
 0x202   : > { %v853_v49 = vsub.f32 1.0, %v852_v33  ;;  %1214 = vrcp.f32 %v890_v14  ;;  %vm861_vm7 = vcmp.eq.f32.partialorder %v860_v50, 8.507059e+37  ;;  %v902_v47 = vand.u32 2147483648, %v890_v14 }
 0x203   : > { %v913_v42 = vadd.f32 1.0, %v1113_v39  ;;  %v840_v41 = vmul.f32 %v839_v32, %v1708_v18  ;;  %v879_v35 = vadd.f32 1.1283791, %v878_v15  ;;  %v900_v56 = vand.u32 2147483647, %v890_v14 }
 0x204   : > { %v854_v22 = vmul.f32 %v1213_v36, %v853_v49  ;;  %vm896_vm9 = vweird.f32 %v890_v14  ;;  %v903_v57 = vor.u32 1.1754944e-38, %v902_v47  ;;  %v578_v55 = vmul.f32 0.5, %v1644_v12 }
 0x205   : > { %v921_v1 = vmul.f32 %v913_v42, %v577_v60  ;;  %v880_v52 = vmul.f32 %v879_v35, %v1760_v7  ;;  %vm901_vm11 = vcmp.eq.f32.partialorder %v900_v56, 8.507059e+37  ;;  %v579_v59 = vmul.f32 0.5, %v1743_v48  ;;  %v1181_v7 = vld [vmem:[%s1860_s6] ss:$0 sm:$0xff] }
 0x206   : > { %v855_v63 = vadd.f32 %v1213_v36, %v854_v22  ;;  %vm1022_vm12 = vcmask 257024  }
 0x207   : > { %v926_v45 = vpack.c.bf16 %v921_v1, %v920_v34 }
 0x208   : > { %v859_v25 = vsel %vm858_vm6, %v1213_v36, %v855_v63  ;;  %v1215_v31 = vpop.eup %1214 }
 0x209   : > { %1134 = vmatmul.msk.bf16.vlgmr.msra.gmra.mxu2 %vm964_vm0, %v926_v45  ;;  %v892_v26 = vmul.f32 %v1215_v31, %v890_v14  ;;  %v864_v44 = vsel %vm861_vm7, %v863_v37, %v859_v25  ;;  %vm897_vm8 = vweird.f32 %v1215_v31 }
 0x20a   : > { %v865_v38 = vmul.f32 %v864_v44, %v840_v41  ;;  %vm898_vm10 = vmor %vm896_vm9, %vm897_vm8 }
 0x20b   : > { %v893_v27 = vsub.f32 1.0, %v892_v26 }
 0x20c   : > { %v1114_v23 = vclamps-f32 %v865_v38, 1.0 }
 0x20d   : > { %v894_v58 = vmul.f32 %v1215_v31, %v893_v27 }
 0x20e   : > { %v914_v18 = vadd.f32 1.0, %v1114_v23 }
 0x20f   : > { %v895_v43 = vadd.f32 %v1215_v31, %v894_v58 }
 0x210   : > { %v922_v2 = vmul.f32 %v914_v18, %v578_v55 }
 0x211   : > { %v899_v30 = vsel %vm898_vm10, %v1215_v31, %v895_v43 }
 0x212   : > { %v904_v51 = vsel %vm901_vm11, %v903_v57, %v899_v30 }
 0x213   : > { %v905_v0 = vmul.f32 %v904_v51, %v880_v52 }
 0x215   : > { %v1115_v54 = vclamps-f32 %v905_v0, 1.0 }
 0x217   : > { %v915_v13 = vadd.f32 1.0, %v1115_v54 }
 0x219   : > { %v923_v53 = vmul.f32 %v915_v13, %v579_v59 }
 0x21b   : > { %v927_v6 = vpack.c.bf16 %v923_v53, %v922_v2 }
 0x21d   : > { %1135 = vmatmul.msk.bf16.gmra.mxu2 %vm964_vm0, %v927_v6 }
 0x26a   : > { %v986_v8 = vpop.f32.mrf.mxu1 }
 0x26b   : > { %v987_v24 = vadd.f32 %v1181_v7, %v986_v8 }
 0x26d   : > { %v1006_v19 = vadd.f32 %v1285_v5, %v987_v24 }
 0x26f   : > { %v1014_v12 = vpack.c.bf16 %v1006_v19, %v1006_v19 }
 0x271   : > { %1023 = vst.msk [vmem:[%s1826_s10] sm:$0xf] %vm1022_vm12, %v1014_v12 }
 0x272   : > { %v988_v48 = vpop.f32.mrf.mxu1 }
 0x273   : > { %v989_v36 = vadd.f32 %v1181_v7, %v988_v48 }
 0x275   : > { %v1007_v46 = vadd.f32 %v1297_v11, %v989_v36 }
 0x277   : > { %v1015_v39 = vpack.c.bf16 %v1007_v46, %v1007_v46 }
 0x279   : > { %1024 = vst.msk [vmem:[%s1826_s10 + $0x4] sm:$0xf] %vm1022_vm12, %v1015_v39 }
 0x27a   : > { %v991_v5 = vpop.f32.mrf.mxu1 }
 0x27b   : > { %v992_v61 = vadd.f32 %v1181_v7, %v991_v5 }
 0x27d   : > { %v1008_v20 = vadd.f32 %v1283_v4, %v992_v61 }
 0x27f   : > { %v1016_v21 = vpack.c.bf16 %v1008_v20, %v1008_v20 }
 0x281   : > { %1025 = vst.msk [vmem:[%s1826_s10 + $0x8] sm:$0xf] %vm1022_vm12, %v1016_v21 }
 0x282   : > { %v993_v33 = vpop.f32.mrf.mxu1 }
 0x283   : > { %v994_v60 = vadd.f32 %v1181_v7, %v993_v33 }
 0x285   : > { %v1009_v42 = vadd.f32 %v1295_v10, %v994_v60 }
 0x287   : > { %v1017_v29 = vpack.c.bf16 %v1009_v42, %v1009_v42 }
 0x289   : > { %1026 = vst.msk [vmem:[%s1826_s10 + $0xc] sm:$0xf] %vm1022_vm12, %v1017_v29 }
 0x28c   : > { %v996_v11 = vpop.f32.mrf.mxu2 }
 0x28d   : > { %v997_v14 = vadd.f32 %v1181_v7, %v996_v11 }
 0x28f   : > { %v1010_v49 = vadd.f32 %v1281_v3, %v997_v14 }
 0x291   : > { %v1018_v34 = vpack.c.bf16 %v1010_v49, %v1010_v49 }
 0x293   : > { %1027 = vst.msk [vmem:[%s1826_s10 + $0x10] sm:$0xf] %vm1022_vm12, %v1018_v34 }
 0x294   : > { %v998_v4 = vpop.f32.mrf.mxu2 }
 0x295   : > { %v999_v1 = vadd.f32 %v1181_v7, %v998_v4 }
 0x297   : > { %v1011_v62 = vadd.f32 %v1293_v9, %v999_v1 }
 0x299   : > { %v1019_v22 = vpack.c.bf16 %v1011_v62, %v1011_v62 }
 0x29b   : > { %1028 = vst.msk [vmem:[%s1826_s10 + $0x14] sm:$0xf] %vm1022_vm12, %v1019_v22 }
 0x2a0   : > { %v1001_v10 = vpop.f32.mrf.mxu2 }
 0x2a1   : > { %v1002_v28 = vadd.f32 %v1181_v7, %v1001_v10 }
 0x2a3   : > { %v1012_v40 = vadd.f32 %v1305_v16, %v1002_v28 }
 0x2a5   : > { %v1020_v45 = vpack.c.bf16 %v1012_v40, %v1012_v40 }
 0x2a7   : > { %1029 = vst.msk [vmem:[%s1826_s10 + $0x18] sm:$0xf] %vm1022_vm12, %v1020_v45 }
 0x2a8   : > { %v1003_v63 = vpop.f32.mrf.mxu2 }
 0x2a9   : > { %v1004_v3 = vadd.f32 %v1181_v7, %v1003_v63 }
 0x2ab   : > { %v1013_v50 = vadd.f32 %v1307_v17, %v1004_v3 }
 0x2ad   : > { %v1021_v32 = vpack.c.bf16 %v1013_v50, %v1013_v50 }
 0x2af   : > { %1030 = vst.msk [vmem:[%s1826_s10 + $0x1c] sm:$0xf] %vm1022_vm12, %v1021_v32 }
 0x2b0 PF: > { %s17_s24 = sadd.s32 1, %s1222_s24  }
 0x2b1   : > { %p14_p4 = scmp.ge.s32.totalorder %s17_s24, 4  }
 0x2b3   :  { %16 = sbr.rel (!%p14_p4) target bundleno = 1 (0x1), region = 78 }

// kernel: rstb_forward.4
= control target key start
LH: loop header
LB: loop body
LE: loop exit
PB: predicated region body
PF: predicated region fallthrough
CT: control target
= control target key end

     0   :  { %s2472_s27 = smov 0   ;;  %s3206_s0 = inlined_call_operand.vmem [shape: bf16[8,16,32], index: 0, kind: input, shape index: {}]   ;;  %s3207_s1 = inlined_call_operand.vmem [shape: f32[1,32], index: 1, kind: input, shape index: {}]   ;;  %s3208_s2 = inlined_call_operand.vmem [shape: f32[1,32], index: 2, kind: input, shape index: {}]   ;;  %s3209_s3 = inlined_call_operand.vmem [shape: bf16[32,96], index: 3, kind: input, shape index: {}]   ;;  %s3210_s4 = inlined_call_operand.vmem [shape: f32[1,96], index: 4, kind: input, shape index: {}]   ;;  %s3211_s5 = inlined_call_operand.vmem [shape: bf16[32,32], index: 5, kind: input, shape index: {}]   ;;  %s3212_s6 = inlined_call_operand.vmem [shape: f32[1,32], index: 6, kind: input, shape index: {}]   ;;  %s3213_s7 = inlined_call_operand.vmem [shape: f32[4,16,16], index: 7, kind: input, shape index: {}]   ;;  %s3214_s8 = inlined_call_operand.vmem [shape: bf16[8,16,32], index: 8, kind: output, shape index: {}]  }
   0x1 LB: > { %s2071_s28 = sadd.s32 4294967295, %s2410_s27   ;;  %p2075_p0 = scmp.ge.s32.totalorder %s2410_s27, 1  ;;  %s2410_s27 = sphi %s2472_s27, %s18_s27  }
   0x2   : > { %p264_p1 = scmp.lt.s32.totalorder %s2410_s27, 3 }
   0x4   : > { %p265_p2 = pnand %p2075_p0, %p264_p1 }
   0x5   : > { %s2076_s29 = sshll.u32 (!%p265_p2), %s2071_s28, 2  ;;  %s2413_s22 = smov (!%p265_p2), 96  }
   0x6   : > { %268 = sbr.rel (%p265_p2) target bundleno = 2747 (0xabb), region = 52  ;;  %p301_p3 = scmp.lt.s32.totalorder (!%p265_p2), %s2076_s29, 7 }
   0x7   : > { %s2414_s23 = smov (!%p265_p2), 64   ;;  %s2415_s9 = smov (!%p265_p2), 88  }
   0x8   : > { %s2416_s10 = smov (!%p265_p2), 120   ;;  %s2418_s16 = smov (!%p265_p2), 80  }
   0x9   : > { %s2419_s17 = smov (!%p265_p2), 112   ;;  %s2420_s18 = smov (!%p265_p2), 48  }
   0xa   : > { %s2422_s24 = smov (!%p265_p2), 72   ;;  %s2425_s12 = smov (!%p265_p2), 16  }
   0xb   : > { %s3224_s29 = smov (!%p301_p3, %s2076_s29), 7  ;;  %vm331_vm0 = vcmask 261120   ;;  %v2412_v20 = vmov 32.0   ;;  %s2426_s13 = smov 24  }
   0xc   : > { %s2140_s30 = sshll.u32 %s3224_s29, 3  ;;  %2258 = vrcp.f32 %v2412_v20 }
   0xd   : > { %s305_s11 = scalar_lea.vmem %s3206_s0, %s2140_s30 }
   0xe   : > { %v2164_v0 = vld [vmem:[%s305_s11 + $0x18] sm:$0xff]   ;;  %v2162_v1 = vld [vmem:[%s305_s11 + $0x8] sm:$0xff]   ;;  %v2147_v2 = vld [vmem:[%s305_s11] sm:$0xff]  }
   0xf   : > { %v2488_v3 = vunpack.c.l.bf16 %v2164_v0  ;;  %v2490_v4 = vunpack.c.l.bf16 %v2162_v1  ;;  %v2492_v5 = vunpack.c.l.bf16 %v2147_v2  ;;  %v2500_v9 = vunpack.c.h.bf16 %v2164_v0  ;;  %v2163_v15 = vld [vmem:[%s305_s11 + $0x10] sm:$0xff]   ;;  %s2417_s11 = smov 56  }
  0x10   : > { %v2502_v10 = vunpack.c.h.bf16 %v2162_v1  ;;  %v2504_v11 = vunpack.c.h.bf16 %v2147_v2  ;;  %v2512_v16 = vunpack.c.l.bf16 %v2163_v15  ;;  %v2514_v17 = vunpack.c.h.bf16 %v2163_v15 }
  0x11   : > { %v350_v6 = vsel %vm331_vm0, %v2488_v3, 0.0  ;;  %v338_v7 = vsel %vm331_vm0, %v2490_v4, 0.0  ;;  %v332_v8 = vsel %vm331_vm0, %v2492_v5, 0.0  ;;  %v353_v12 = vsel %vm331_vm0, %v2500_v9, 0.0 }
  0x12   : > { %351 = vadd.xlane.f32.xlu2 %v350_v6  ;;  %339 = vadd.xlane.f32.xlu0 %v338_v7  ;;  %v341_v13 = vsel %vm331_vm0, %v2502_v10, 0.0  ;;  %v335_v14 = vsel %vm331_vm0, %v2504_v11, 0.0  ;;  %v344_v18 = vsel %vm331_vm0, %v2512_v16, 0.0  ;;  %v347_v19 = vsel %vm331_vm0, %v2514_v17, 0.0  ;;  %v2259_v21 = vpop.eup %2258 }
  0x13   : > { %333 = vadd.xlane.f32.xlu1 %v332_v8  ;;  %v357_v22 = vmul.f32 32.0, %v2259_v21  ;;  %vm361_vm1 = vweird.f32 %v2259_v21 }
  0x15   : > { %v358_v23 = vsub.f32 1.0, %v357_v22 }
  0x17   : > { %v359_v24 = vmul.f32 %v2259_v21, %v358_v23 }
  0x19   : > { %v360_v25 = vadd.f32 %v2259_v21, %v359_v24 }
  0x1a   : > { %354 = vadd.xlane.f32.xlu2 %v353_v12  ;;  %342 = vadd.xlane.f32.xlu0 %v341_v13  ;;  %v2143_v12 = vld [vmem:[%s3209_s3 + $0x8] sm:$0xff] }
  0x1b   : > { %336 = vadd.xlane.f32.xlu1 %v335_v14  ;;  %v2520_v26 = vsel %vm361_vm1, %v2259_v21, %v360_v25  ;;  %581 = vmatpush.bf16.msra.mxu0 %v2143_v12 }
  0x1c   : > { %2165 = vmatpush.bf16.msra.mxu1 %v2143_v12  ;;  %2167 = vmatpush.bf16.msra.mxu3 %v2143_v12 }
  0x1d   : > { %2166 = vmatpush.bf16.msra.mxu2 %v2143_v12 }
  0x22   : > { %345 = vadd.xlane.f32.xlu0 %v344_v18  ;;  %v2142_v18 = vld [vmem:[%s3209_s3] sm:$0xff] }
  0x23   : > { %348 = vadd.xlane.f32.xlu1 %v347_v19  ;;  %582 = vmatpush.bf16.msra.mxu0 %v2142_v18 }
  0x24   : > { %2168 = vmatpush.bf16.msra.mxu1 %v2142_v18  ;;  %2170 = vmatpush.bf16.msra.mxu3 %v2142_v18 }
  0x25   : > { %2169 = vmatpush.bf16.msra.mxu2 %v2142_v18 }
  0x85   : > { %v352_v27 = vpop.xlane.xlu2 %351  ;;  %v340_v28 = vpop.xlane.xlu0 %339 }
  0x86   : > { %v365_v29 = vmul.f32 %v2520_v26, %v340_v28  ;;  %v334_v30 = vpop.xlane.xlu1 %333  ;;  %v369_v40 = vmul.f32 %v2520_v26, %v352_v27 }
  0x87   : > { %v363_v31 = vmul.f32 %v2520_v26, %v334_v30 }
  0x88   : > { %v2525_v32 = vsub.f32 %v2490_v4, %v365_v29  ;;  %v2550_v48 = vsub.f32 %v2488_v3, %v369_v40 }
  0x89   : > { %v2528_v33 = vsub.f32 %v2492_v5, %v363_v31 }
  0x8a   : > { %v381_v34 = vmul.f32 %v2525_v32, %v2525_v32  ;;  %v385_v57 = vmul.f32 %v2550_v48, %v2550_v48 }
  0x8b   : > { %v379_v35 = vmul.f32 %v2528_v33, %v2528_v33 }
  0x8c   : > { %v393_v36 = vsel %vm331_vm0, %v381_v34, 0.0  ;;  %v405_v61 = vsel %vm331_vm0, %v385_v57, 0.0 }
  0x8d   : > { %v355_v37 = vpop.xlane.xlu2 %354  ;;  %394 = vadd.xlane.f32.xlu2 %v393_v36  ;;  %v343_v38 = vpop.xlane.xlu0 %342  ;;  %v387_v39 = vsel %vm331_vm0, %v379_v35, 0.0 }
  0x8e   : > { %v370_v41 = vmul.f32 %v2520_v26, %v355_v37  ;;  %v366_v42 = vmul.f32 %v2520_v26, %v343_v38  ;;  %388 = vadd.xlane.f32.xlu1 %v387_v39  ;;  %v337_v43 = vpop.xlane.xlu1 %336 }
  0x8f   : > { %v364_v44 = vmul.f32 %v2520_v26, %v337_v43 }
  0x90   : > { %v2541_v45 = vsub.f32 %v2500_v9, %v370_v41  ;;  %v2544_v46 = vsub.f32 %v2502_v10, %v366_v42 }
  0x91   : > { %v2547_v47 = vsub.f32 %v2504_v11, %v364_v44 }
  0x92   : > { %v382_v49 = vmul.f32 %v2544_v46, %v2544_v46  ;;  %v386_v50 = vmul.f32 %v2541_v45, %v2541_v45 }
  0x93   : > { %v380_v51 = vmul.f32 %v2547_v47, %v2547_v47 }
  0x94   : > { %v396_v52 = vsel %vm331_vm0, %v382_v49, 0.0  ;;  %v408_v53 = vsel %vm331_vm0, %v386_v50, 0.0 }
  0x95   : > { %397 = vadd.xlane.f32.xlu0 %v396_v52  ;;  %v346_v54 = vpop.xlane.xlu0 %345  ;;  %v390_v55 = vsel %vm331_vm0, %v380_v51, 0.0 }
  0x96   : > { %v367_v56 = vmul.f32 %v2520_v26, %v346_v54  ;;  %409 = vadd.xlane.f32.xlu1 %v408_v53  ;;  %391 = vadd.xlane.f32.xlu2 %v390_v55  ;;  %v349_v58 = vpop.xlane.xlu1 %348 }
  0x97   : > { %v368_v59 = vmul.f32 %v2520_v26, %v349_v58 }
  0x98   : > { %v2566_v60 = vsub.f32 %v2512_v16, %v367_v56 }
  0x99   : > { %v2572_v63 = vsub.f32 %v2514_v17, %v368_v59 }
  0x9a   : > { %v383_v62 = vmul.f32 %v2566_v60, %v2566_v60 }
  0x9b   : > { %v384_v1 = vmul.f32 %v2572_v63, %v2572_v63 }
  0x9c   : > { %v399_v0 = vsel %vm331_vm0, %v383_v62, 0.0 }
  0x9d   : > { %406 = vadd.xlane.f32.xlu0 %v405_v61  ;;  %v402_v2 = vsel %vm331_vm0, %v384_v1, 0.0 }
  0x9e   : > { %400 = vadd.xlane.f32.xlu2 %v399_v0 }
  0xa5   : > { %403 = vadd.xlane.f32.xlu0 %v402_v2 }
 0x100   : > { %v395_v6 = vpop.xlane.xlu2 %394 }
 0x101   : > { %v413_v7 = vmul.f32 %v395_v6, %v2520_v26  ;;  %v389_v8 = vpop.xlane.xlu1 %388 }
 0x102   : > { %v411_v13 = vmul.f32 %v389_v8, %v2520_v26 }
 0x103   : > { %v421_v14 = vadd.f32 1e-05, %v413_v7 }
 0x104   : > { %v419_v15 = vadd.f32 1e-05, %v411_v13 }
 0x105   : > { %2260 = vrsqrt.f32 %v421_v14  ;;  %vm453_vm4 = vweird.f32 %v421_v14 }
 0x106   : > { %2262 = vrsqrt.f32 %v419_v15  ;;  %vm433_vm6 = vweird.f32 %v419_v15 }
 0x108   : > { %v398_v19 = vpop.xlane.xlu0 %397 }
 0x109   : > { %v414_v20 = vmul.f32 %v398_v19, %v2520_v26  ;;  %v392_v21 = vpop.xlane.xlu2 %391  ;;  %v410_v22 = vpop.xlane.xlu1 %409  ;;  %v2623_v19 = vld [vmem:[%s3207_s1] ss:$0 sm:$0xff] }
 0x10a   : > { %v412_v23 = vmul.f32 %v392_v21, %v2520_v26  ;;  %v418_v24 = vmul.f32 %v410_v22, %v2520_v26 }
 0x10b   : > { %v2261_v25 = vpop.eup %2260  ;;  %v422_v27 = vadd.f32 1e-05, %v414_v20 }
 0x10c   : > { %v2263_v28 = vpop.eup %2262  ;;  %v448_v29 = vmul.f32 %v2261_v25, %v421_v14  ;;  %v2589_v30 = vadd.f32 1e-05, %v412_v23  ;;  %v426_v31 = vadd.f32 1e-05, %v418_v24  ;;  %vm454_vm2 = vweird.f32 %v2261_v25 }
 0x10d   : > { %v428_v34 = vmul.f32 %v2263_v28, %v419_v15  ;;  %2264 = vrsqrt.f32 %v422_v27  ;;  %vm434_vm3 = vweird.f32 %v2263_v28  ;;  %vm2602_vm5 = vmor %vm453_vm4, %vm454_vm2  ;;  %vm463_vm8 = vweird.f32 %v422_v27 }
 0x10e   : > { %v449_v35 = vmul.f32 %v2261_v25, %v448_v29  ;;  %2266 = vrsqrt.f32 %v2589_v30  ;;  %vm2609_vm7 = vmor %vm433_vm6, %vm434_vm3  ;;  %vm503_vm10 = vweird.f32 %v426_v31  ;;  %vm443_vm14 = vweird.f32 %v2589_v30 }
 0x10f   : > { %v429_v36 = vmul.f32 %v2263_v28, %v428_v34  ;;  %2268 = vrsqrt.f32 %v426_v31 }
 0x110   : > { %v450_v37 = vmul.f32 0.5, %v449_v35  ;;  %v407_v38 = vpop.xlane.xlu0 %406  ;;  %v2255_v35 = vld [vmem:[%s3208_s2] ss:$0 sm:$0xff] }
 0x111   : > { %v430_v39 = vmul.f32 0.5, %v429_v36  ;;  %v417_v40 = vmul.f32 %v407_v38, %v2520_v26  ;;  %v401_v41 = vpop.xlane.xlu2 %400 }
 0x112   : > { %v451_v42 = vsub.f32 1.5, %v450_v37  ;;  %v415_v43 = vmul.f32 %v401_v41, %v2520_v26 }
 0x113   : > { %v2265_v44 = vpop.eup %2264  ;;  %v431_v49 = vsub.f32 1.5, %v430_v39  ;;  %v2594_v50 = vadd.f32 1e-05, %v417_v40 }
 0x114   : > { %v2267_v51 = vpop.eup %2266  ;;  %v452_v52 = vmul.f32 %v2261_v25, %v451_v42  ;;  %v458_v53 = vmul.f32 %v2265_v44, %v422_v27  ;;  %v2596_v54 = vadd.f32 1e-05, %v415_v43  ;;  %vm464_vm9 = vweird.f32 %v2265_v44 }
 0x115   : > { %v2598_v55 = vpop.eup %2268  ;;  %v432_v56 = vmul.f32 %v2263_v28, %v431_v49  ;;  %v438_v57 = vmul.f32 %v2267_v51, %v2589_v30  ;;  %2270 = vrsqrt.f32 %v2594_v50  ;;  %vm444_vm12 = vweird.f32 %v2267_v51  ;;  %vm465_vm13 = vmor %vm463_vm8, %vm464_vm9 }
 0x116   : > { %v459_v59 = vmul.f32 %v2265_v44, %v458_v53  ;;  %v498_v61 = vmul.f32 %v2598_v55, %v426_v31  ;;  %v456_v62 = vsel %vm2602_vm5, %v2261_v25, %v452_v52  ;;  %2272 = vrsqrt.f32 %v2596_v54  ;;  %vm445_vm2 = vmor %vm443_vm14, %vm444_vm12 }
 0x117   : > { %v439_v1 = vmul.f32 %v2267_v51, %v438_v57  ;;  %v436_v2 = vsel %vm2609_vm7, %v2263_v28, %v432_v56  ;;  %v509_v14 = vmul.f32 %v456_v62, %v2525_v32  ;;  %vm504_vm11 = vweird.f32 %v2598_v55 }
 0x118   : > { %v460_v6 = vmul.f32 0.5, %v459_v59  ;;  %v499_v7 = vmul.f32 %v2598_v55, %v498_v61  ;;  %v404_v8 = vpop.xlane.xlu0 %403  ;;  %v507_v23 = vmul.f32 %v436_v2, %v2528_v33  ;;  %vm2631_vm15 = vmor %vm503_vm10, %vm504_vm11  ;;  %vm493_vm1 = vweird.f32 %v2594_v50 }
 0x119   : > { %v440_v12 = vmul.f32 0.5, %v439_v1  ;;  %v416_v13 = vmul.f32 %v404_v8, %v2520_v26  ;;  %v521_v30 = vmul.f32 %v2623_v19, %v509_v14  ;;  %vm473_vm4 = vweird.f32 %v2596_v54 }
 0x11a   : > { %v461_v15 = vsub.f32 1.5, %v460_v6  ;;  %v500_v18 = vmul.f32 0.5, %v499_v7  ;;  %v519_v38 = vmul.f32 %v2623_v19, %v507_v23  ;;  %vm627_vm11 = vcmask 64512  }
 0x11b   : > { %v2271_v20 = vpop.eup %2270  ;;  %v441_v21 = vsub.f32 1.5, %v440_v12  ;;  %v424_v22 = vadd.f32 1e-05, %v416_v13  ;;  %v533_v49 = vadd.f32 %v2255_v35, %v521_v30  ;;  %vm729_vm12 = vcmask 130048  }
 0x11c   : > { %v462_v24 = vmul.f32 %v2265_v44, %v461_v15  ;;  %v501_v26 = vsub.f32 1.5, %v500_v18  ;;  %v488_v32 = vmul.f32 %v2271_v20, %v2594_v50  ;;  %v2273_v29 = vpop.eup %2272  ;;  %vm494_vm3 = vweird.f32 %v2271_v20 }
 0x11d   : > { %v442_v25 = vmul.f32 %v2267_v51, %v441_v21  ;;  %2274 = vrsqrt.f32 %v424_v22  ;;  %v468_v37 = vmul.f32 %v2273_v29, %v2596_v54  ;;  %vm495_vm5 = vmor %vm493_vm1, %vm494_vm3  ;;  %vm474_vm6 = vweird.f32 %v2273_v29 }
 0x11e   : > { %v466_v33 = vsel %vm465_vm13, %v2265_v44, %v462_v24  ;;  %v502_v27 = vmul.f32 %v2598_v55, %v501_v26  ;;  %v489_v34 = vmul.f32 %v2271_v20, %v488_v32  ;;  %v531_v57 = vadd.f32 %v2255_v35, %v519_v38  ;;  %vm475_vm7 = vmor %vm473_vm4, %vm474_vm6  ;;  %v2256_v32 = vld [vmem:[%s3210_s4] ss:$0 sm:$0xff] }
 0x11f   : > { %v510_v31 = vmul.f32 %v466_v33, %v2544_v46  ;;  %v446_v36 = vsel %vm445_vm2, %v2267_v51, %v442_v25  ;;  %v469_v42 = vmul.f32 %v2273_v29, %v468_v37  ;;  %vm483_vm8 = vweird.f32 %v424_v22 }
 0x120   : > { %v508_v39 = vmul.f32 %v446_v36, %v2547_v47  ;;  %v506_v40 = vsel %vm2631_vm15, %v2598_v55, %v502_v27  ;;  %v490_v41 = vmul.f32 0.5, %v489_v34  ;;  %vm1914_vm13 = vcmask 195584  }
 0x121   : > { %v522_v43 = vmul.f32 %v2623_v19, %v510_v31  ;;  %v470_v47 = vmul.f32 0.5, %v469_v42  ;;  %v514_v53 = vmul.f32 %v506_v40, %v2541_v45  ;;  %vm2004_vm14 = vcmask 257024  }
 0x122   : > { %v491_v44 = vsub.f32 1.5, %v490_v41  ;;  %v520_v46 = vmul.f32 %v2623_v19, %v508_v39 }
 0x123   : > { %v2275_v51 = vpop.eup %2274  ;;  %v534_v52 = vadd.f32 %v2255_v35, %v522_v43  ;;  %v471_v59 = vsub.f32 1.5, %v470_v47  ;;  %v526_v6 = vmul.f32 %v2623_v19, %v514_v53 }
 0x124   : > { %v492_v55 = vmul.f32 %v2271_v20, %v491_v44  ;;  %v478_v56 = vmul.f32 %v2275_v51, %v424_v22  ;;  %v532_v58 = vadd.f32 %v2255_v35, %v520_v46  ;;  %vm484_vm9 = vweird.f32 %v2275_v51 }
 0x125   : > { %v540_v61 = vpack.c.bf16 %v534_v52, %v533_v49  ;;  %v472_v2 = vmul.f32 %v2273_v29, %v471_v59  ;;  %vm485_vm10 = vmor %vm483_vm8, %vm484_vm9  ;;  %v538_v14 = vadd.f32 %v2255_v35, %v526_v6 }
 0x126   : > { %v496_v62 = vsel %vm495_vm5, %v2271_v20, %v492_v55  ;;  %v479_v0 = vmul.f32 %v2275_v51, %v478_v56  ;;  %v539_v1 = vpack.c.bf16 %v532_v58, %v531_v57 }
 0x127   : > { %v513_v50 = vmul.f32 %v496_v62, %v2550_v48  ;;  %2091 = vmatmul.msk.bf16.vlgmr.msra.gmra.mxu1 %vm331_vm0, %v540_v61  ;;  %v476_v7 = vsel %vm475_vm7, %v2273_v29, %v472_v2 }
 0x128   : > { %v480_v45 = vmul.f32 0.5, %v479_v0  ;;  %2090 = vmatmul.msk.bf16.vlgmr.msra.gmra.mxu0 %vm331_vm0, %v539_v1  ;;  %v511_v54 = vmul.f32 %v476_v7, %v2566_v60 }
 0x129   : > { %v525_v8 = vmul.f32 %v2623_v19, %v513_v50 }
 0x12a   : > { %v481_v12 = vsub.f32 1.5, %v480_v45  ;;  %v523_v21 = vmul.f32 %v2623_v19, %v511_v54 }
 0x12b   : > { %v537_v13 = vadd.f32 %v2255_v35, %v525_v8 }
 0x12c   : > { %v482_v48 = vmul.f32 %v2275_v51, %v481_v12  ;;  %v535_v23 = vadd.f32 %v2255_v35, %v523_v21 }
 0x12d   : > { %v542_v15 = vpack.c.bf16 %v538_v14, %v537_v13  ;;  %v604_v14 = vld [vmem:[%s3213_s7] sm:$0xff] }
 0x12e   : > { %v486_v18 = vsel %vm485_vm10, %v2275_v51, %v482_v48 }
 0x12f   : > { %v512_v20 = vmul.f32 %v486_v18, %v2572_v63  ;;  %2093 = vmatmul.msk.bf16.vlgmr.msra.gmra.mxu3 %vm331_vm0, %v542_v15 }
 0x131   : > { %v524_v22 = vmul.f32 %v2623_v19, %v512_v20  ;;  %v605_v20 = vld [vmem:[%s3213_s7 + $0x8] sm:$0xff] }
 0x133   : > { %v536_v24 = vadd.f32 %v2255_v35, %v524_v22 }
 0x135   : > { %v541_v26 = vpack.c.bf16 %v536_v24, %v535_v23 }
 0x137   : > { %2092 = vmatmul.msk.bf16.vlgmr.msra.gmra.mxu2 %vm331_vm0, %v541_v26 }
 0x1a4   : > { %v589_v60 = vpop.f32.mrf.mxu1 }
 0x1a5   : > { %v584_v25 = vpop.f32.mrf.mxu0  ;;  %v590_v28 = vadd.f32 %v2256_v32, %v589_v60 }
 0x1a6   : > { %v585_v29 = vadd.f32 %v2256_v32, %v584_v25 }
 0x1a7   : > { %v614_v33 = vpack.c.bf16 %v590_v28, %v590_v28 }
 0x1a8   : > { %v612_v30 = vpack.c.bf16 %v585_v29, %v585_v29 }
 0x1a9   : > { %v650_v35 = vunpack.c.l.b16 %v614_v33 }
 0x1aa   : > { %v622_v38 = vunpack.c.l.b16 %v612_v30 }
 0x1ac   : > { %v591_v63 = vpop.f32.mrf.mxu1 }
 0x1ad   : > { %v586_v27 = vpop.f32.mrf.mxu0  ;;  %v592_v34 = vadd.f32 %v2256_v32, %v591_v63 }
 0x1ae   : > { %v587_v31 = vadd.f32 %v2256_v32, %v586_v27 }
 0x1af   : > { %v615_v19 = vpack.c.bf16 %v592_v34, %v592_v34 }
 0x1b0   : > { %v613_v36 = vpack.c.bf16 %v587_v31, %v587_v31 }
 0x1b1   : > { %v651_v37 = vunpack.c.l.b16 %v615_v19 }
 0x1b2   : > { %v623_v39 = vunpack.c.l.b16 %v613_v36  ;;  %v599_v40 = vpop.f32.mrf.mxu3 }
 0x1b3   : > { %v2670_v41 = vpack.c.b16 %v651_v37, %v650_v35  ;;  %v600_v43 = vadd.f32 %v2256_v32, %v599_v40 }
 0x1b4   : > { %v2672_v42 = vpack.c.b16 %v623_v39, %v622_v38 }
 0x1b5   : > { %653 = vrot.lane.b32.xlu1 %v2670_v41, %s2413_s22  ;;  %v618_v49 = vpack.c.bf16 %v600_v43, %v600_v43 }
 0x1b6   : > { %625 = vrot.lane.b32.xlu2 %v2672_v42, %s2413_s22 }
 0x1b7   : > { %v704_v52 = vunpack.c.l.b16 %v618_v49 }
 0x1ba   : > { %v594_v44 = vpop.f32.mrf.mxu2  ;;  %v601_v46 = vpop.f32.mrf.mxu3 }
 0x1bb   : > { %v602_v51 = vadd.f32 %v2256_v32, %v601_v46  ;;  %v595_v53 = vadd.f32 %v2256_v32, %v594_v44 }
 0x1bd   : > { %v619_v47 = vpack.c.bf16 %v602_v51, %v602_v51  ;;  %831 = vrot.lane.b32.xlu1 %v2672_v42, %s2414_s23  ;;  %v616_v58 = vpack.c.bf16 %v595_v53, %v595_v53 }
 0x1bf   : > { %v705_v55 = vunpack.c.l.b16 %v619_v47  ;;  %v677_v62 = vunpack.c.l.b16 %v616_v58 }
 0x1c1   : > { %v2678_v56 = vpack.c.b16 %v705_v55, %v704_v52 }
 0x1c2   : > { %v596_v57 = vpop.f32.mrf.mxu2 }
 0x1c3   : > { %v597_v59 = vadd.f32 %v2256_v32, %v596_v57  ;;  %707 = vrot.lane.b32.xlu0 %v2678_v56, %s2413_s22 }
 0x1c5   : > { %v617_v61 = vpack.c.bf16 %v597_v59, %v597_v59 }
 0x1c7   : > { %v678_v0 = vunpack.c.l.b16 %v617_v61 }
 0x1c9   : > { %v2681_v1 = vpack.c.b16 %v678_v0, %v677_v62 }
 0x1cb   : > { %680 = vrot.lane.b32.xlu2 %v2681_v1, %s2413_s22  ;;  %s3178_s22 = scalar_lea.vmem %s3214_s8, %s2140_s30 }
 0x210   : > { %v626_v50 = vpop.permute.xlu2 %625 }
 0x211   : > { %v632_v2 = vsel %vm627_vm11, %v626_v50, 0 }
 0x212   : > { %641 = vmatpush.bf16.xpose.msrb.mxu1 %v632_v2 }
 0x219   : > { %2094 = vmatmul.msk.bf16.vlgmr.msrb.gmra.mxu1 %vm627_vm11, %v2672_v42 }
 0x225   : > { %v681_v6 = vpop.permute.xlu2 %680 }
 0x226   : > { %v686_v45 = vsel %vm627_vm11, %v681_v6, 0 }
 0x227   : > { %695 = vmatpush.bf16.xpose.msrb.mxu3 %v686_v45  ;;  %v654_v7 = vpop.permute.xlu1 %653 }
 0x228   : > { %v659_v8 = vsel %vm627_vm11, %v654_v7, 0 }
 0x229   : > { %668 = vmatpush.bf16.xpose.msrb.mxu2 %v659_v8 }
 0x22e   : > { %2096 = vmatmul.msk.bf16.vlgmr.msrb.gmra.mxu3 %vm627_vm11, %v2681_v1 }
 0x22f   : > { %v832_v12 = vpop.permute.xlu1 %831 }
 0x230   : > { %2095 = vmatmul.msk.bf16.vlgmr.msrb.gmra.mxu2 %vm627_vm11, %v2670_v41 }
 0x231   : > { %844 = vmatpush.bf16.msra.mxu2 %v832_v12 }
 0x235   : > { %v708_v54 = vpop.permute.xlu0 %707 }
 0x236   : > { %v713_v13 = vsel %vm627_vm11, %v708_v54, 0 }
 0x237   : > { %722 = vmatpush.bf16.xpose.msra.mxu1 %v713_v13 }
 0x23e   : > { %2097 = vmatmul.msk.bf16.vlgmr.msra.gmra.mxu1 %vm627_vm11, %v2678_v56 }
 0x296   : > { %v643_v48 = vpop.f32.mrf.mxu1 }
 0x297   : > { %v644_v15 = vadd.f32 %v643_v48, %v604_v14 }
 0x299   : > { %v730_v18 = vsel %vm729_vm12, %v644_v15, -inf }
 0x29a   : > { %731 = vmax.xlane.f32.xlu1 %v730_v18 }
 0x29e   : > { %v645_v21 = vpop.f32.mrf.mxu1 }
 0x29f   : > { %v646_v22 = vadd.f32 %v645_v21, %v605_v20 }
 0x2a1   : > { %v733_v23 = vsel %vm729_vm12, %v646_v22, -inf }
 0x2a2   : > { %734 = vmax.xlane.f32.xlu0 %v733_v23 }
 0x2b1   : > { %v697_v24 = vpop.f32.mrf.mxu3 }
 0x2b2   : > { %v698_v26 = vadd.f32 %v697_v24, %v604_v14 }
 0x2b3   : > { %v670_v60 = vpop.f32.mrf.mxu2 }
 0x2b4   : > { %v671_v32 = vadd.f32 %v670_v60, %v604_v14  ;;  %v742_v25 = vsel %vm729_vm12, %v698_v26, -inf }
 0x2b5   : > { %743 = vmax.xlane.f32.xlu1 %v742_v25 }
 0x2b6   : > { %v736_v28 = vsel %vm729_vm12, %v671_v32, -inf }
 0x2b7   : > { %737 = vmax.xlane.f32.xlu2 %v736_v28 }
 0x2b9   : > { %v699_v31 = vpop.f32.mrf.mxu3 }
 0x2ba   : > { %v700_v19 = vadd.f32 %v699_v31, %v605_v20 }
 0x2bb   : > { %v672_v29 = vpop.f32.mrf.mxu2  ;;  %v724_v63 = vpop.f32.mrf.mxu1 }
 0x2bc   : > { %v673_v33 = vadd.f32 %v672_v29, %v605_v20  ;;  %v2706_v27 = vadd.f32 %v724_v63, %v604_v14  ;;  %v745_v37 = vsel %vm729_vm12, %v700_v19, -inf }
 0x2be   : > { %v748_v34 = vsel %vm729_vm12, %v2706_v27, -inf  ;;  %v739_v30 = vsel %vm729_vm12, %v673_v33, -inf }
 0x2bf   : > { %749 = vmax.xlane.f32.xlu0 %v748_v34  ;;  %740 = vmax.xlane.f32.xlu1 %v739_v30 }
 0x2c3   : > { %v726_v36 = vpop.f32.mrf.mxu1 }
 0x2c4   : > { %v2711_v35 = vadd.f32 %v726_v36, %v605_v20 }
 0x2c6   : > { %v751_v38 = vsel %vm729_vm12, %v2711_v35, -inf }
 0x2c7   : > { %746 = vmax.xlane.f32.xlu0 %v745_v37  ;;  %752 = vmax.xlane.f32.xlu2 %v751_v38 }
 0x2d8   : > { %928 = vrot.lane.b32.xlu1 %v2672_v42, %s2415_s9 }
 0x2e0   : > { %926 = vrot.lane.b32.xlu1 %v2672_v42, %s2416_s10 }
 0x2e8   : > { %881 = vrot.lane.b32.xlu1 %v2681_v1, %s2414_s23 }
 0x30d   : > { %v732_v39 = vpop.xlane.xlu1 %731 }
 0x30e   : > { %v754_v40 = vsub.f32 %v644_v15, %v732_v39 }
 0x310   : > { %v762_v43 = vmul.f32 1.442695, %v754_v40 }
 0x312   : > { %2276 = vpow2.f32 %v762_v43 }
 0x315   : > { %v735_v44 = vpop.xlane.xlu0 %734 }
 0x316   : > { %v755_v46 = vsub.f32 %v646_v22, %v735_v44 }
 0x318   : > { %v2722_v49 = vpop.eup %2276  ;;  %v764_v51 = vmul.f32 1.442695, %v755_v46 }
 0x319   : > { %v778_v47 = vsel %vm729_vm12, %v2722_v49, 0.0 }
 0x31a   : > { %2278 = vpow2.f32 %v764_v51  ;;  %779 = vadd.xlane.f32.xlu2 %v778_v47 }
 0x320   : > { %v2726_v52 = vpop.eup %2278 }
 0x321   : > { %v781_v53 = vsel %vm729_vm12, %v2726_v52, 0.0 }
 0x322   : > { %782 = vadd.xlane.f32.xlu1 %v781_v53 }
 0x328   : > { %v744_v62 = vpop.xlane.xlu1 %743 }
 0x329   : > { %v758_v2 = vsub.f32 %v698_v26, %v744_v62 }
 0x32a   : > { %v738_v55 = vpop.xlane.xlu2 %737 }
 0x32b   : > { %v756_v57 = vsub.f32 %v671_v32, %v738_v55  ;;  %v770_v45 = vmul.f32 1.442695, %v758_v2 }
 0x32d   : > { %v766_v58 = vmul.f32 1.442695, %v756_v57 }
 0x32f   : > { %2280 = vpow2.f32 %v766_v58 }
 0x330   : > { %2282 = vpow2.f32 %v770_v45 }
 0x332   : > { %906 = vrot.lane.b32.xlu2 %v2678_v56, %s2414_s23  ;;  %v741_v0 = vpop.xlane.xlu1 %740  ;;  %v750_v7 = vpop.xlane.xlu0 %749 }
 0x333   : > { %v757_v8 = vsub.f32 %v673_v33, %v741_v0  ;;  %v760_v48 = vsub.f32 %v2706_v27, %v750_v7 }
 0x335   : > { %v2732_v59 = vpop.eup %2280  ;;  %v768_v54 = vmul.f32 1.442695, %v757_v8  ;;  %v774_v20 = vmul.f32 1.442695, %v760_v48 }
 0x336   : > { %v784_v61 = vsel %vm729_vm12, %v2732_v59, 0.0  ;;  %v2750_v13 = vpop.eup %2282 }
 0x337   : > { %785 = vadd.xlane.f32.xlu0 %v784_v61  ;;  %2284 = vpow2.f32 %v768_v54  ;;  %v790_v15 = vsel %vm729_vm12, %v2750_v13, 0.0 }
 0x338   : > { %2286 = vpow2.f32 %v774_v20 }
 0x33a   : > { %952 = vrot.lane.b32.xlu2 %v2670_v41, %s2415_s9  ;;  %v747_v14 = vpop.xlane.xlu0 %746  ;;  %v753_v21 = vpop.xlane.xlu2 %752 }
 0x33b   : > { %976 = vrot.lane.b32.xlu1 %v2681_v1, %s2415_s9  ;;  %v759_v18 = vsub.f32 %v700_v19, %v747_v14  ;;  %v761_v24 = vsub.f32 %v2711_v35, %v753_v21 }
 0x33d   : > { %v2285_v22 = vpop.eup %2284  ;;  %v772_v23 = vmul.f32 1.442695, %v759_v18  ;;  %v776_v60 = vmul.f32 1.442695, %v761_v24 }
 0x33e   : > { %v787_v26 = vsel %vm729_vm12, %v2285_v22, 0.0  ;;  %v2757_v32 = vpop.eup %2286 }
 0x33f   : > { %2288 = vpow2.f32 %v772_v23  ;;  %v796_v28 = vsel %vm729_vm12, %v2757_v32, 0.0 }
 0x340   : > { %2290 = vpow2.f32 %v776_v60 }
 0x343   : > { %974 = vrot.lane.b32.xlu1 %v2681_v1, %s2416_s10 }
 0x345   : > { %v2759_v25 = vpop.eup %2288 }
 0x346   : > { %v793_v29 = vsel %vm729_vm12, %v2759_v25, 0.0  ;;  %v2765_v63 = vpop.eup %2290 }
 0x347   : > { %v799_v33 = vsel %vm729_vm12, %v2765_v63, 0.0 }
 0x34a   : > { %v2742_v50 = vpop.permute.xlu1 %928 }
 0x34b   : > { %998 = vrot.lane.b32.xlu1 %v2678_v56, %s2416_s10  ;;  %856 = vrot.lane.b32.xlu0 %v2670_v41, %s2414_s23  ;;  %v934_v55 = vsel %vm627_vm11, %v2742_v50, 0  ;;  %s2421_s23 = smov 104  }
 0x352   : > { %v2748_v6 = vpop.permute.xlu1 %926 }
 0x35a   : > { %v882_v12 = vpop.permute.xlu1 %881 }
 0x35b   : > { %894 = vmatpush.bf16.msrb.mxu1 %v882_v12 }
 0x363   : > { %791 = vadd.xlane.f32.xlu2 %v790_v15 }
 0x36b   : > { %788 = vadd.xlane.f32.xlu2 %v787_v26 }
 0x373   : > { %797 = vadd.xlane.f32.xlu2 %v796_v28 }
 0x375   : > { %794 = vadd.xlane.f32.xlu0 %v793_v29 }
 0x37b   : > { %800 = vadd.xlane.f32.xlu2 %v799_v33 }
 0x389   : > { %1000 = vrot.lane.b32.xlu0 %v2678_v56, %s2415_s9 }
 0x38d   : > { %v780_v27 = vpop.xlane.xlu2 %779 }
 0x38e   : > { %2292 = vrcp.f32 %v780_v27 }
 0x391   : > { %1123 = vrot.lane.b32.xlu0 %v2672_v42, %s2417_s11 }
 0x393   : > { %950 = vrot.lane.b32.xlu2 %v2670_v41, %s2416_s10  ;;  %s2423_s10 = smov 40  }
 0x394   : > { %v2293_v31 = vpop.eup %2292 }
 0x395   : > { %v907_v34 = vpop.permute.xlu2 %906  ;;  %v783_v30 = vpop.xlane.xlu1 %782  ;;  %v810_v19 = vmul.f32 %v2293_v31, %v2722_v49 }
 0x396   : > { %2294 = vrcp.f32 %v783_v30  ;;  %919 = vmatpush.bf16.msrb.mxu2 %v907_v34 }
 0x397   : > { %v818_v35 = vpack.c.bf16 %v810_v19, %v810_v19 }
 0x399   : > { %v828_v43 = vunpack.c.l.b16 %v818_v35 }
 0x39c   : > { %v2295_v36 = vpop.eup %2294 }
 0x39d   : > { %v811_v37 = vmul.f32 %v2295_v36, %v2726_v52  ;;  %v953_v38 = vpop.permute.xlu2 %952 }
 0x39e   : > { %v958_v39 = vsel %vm627_vm11, %v953_v38, 0 }
 0x39f   : > { %v819_v40 = vpack.c.bf16 %v811_v37, %v811_v37  ;;  %967 = vmatpush.bf16.xpose.msra.mxu1 %v958_v39 }
 0x3a1   : > { %v829_v44 = vunpack.c.l.b16 %v819_v40 }
 0x3a3   : > { %v830_v46 = vpack.c.b16 %v829_v44, %v828_v43  ;;  %v606_v43 = vld [vmem:[%s3213_s7 + $0x10] sm:$0xff] }
 0x3a5   : > { %2098 = vmatmul.msk.bf16.vlgmr.msra.gmra.mxu2 %vm729_vm12, %v830_v46 }
 0x3aa   : > { %v786_v53 = vpop.xlane.xlu0 %785 }
 0x3ab   : > { %2296 = vrcp.f32 %v786_v53 }
 0x3ad   : > { %v977_v51 = vpop.permute.xlu1 %976 }
 0x3ae   : > { %v982_v47 = vsel %vm627_vm11, %v977_v51, 0 }
 0x3af   : > { %991 = vmatpush.bf16.xpose.msra.mxu2 %v982_v47 }
 0x3b1   : > { %v2297_v58 = vpop.eup %2296 }
 0x3b2   : > { %v812_v61 = vmul.f32 %v2297_v58, %v2732_v59 }
 0x3b4   : > { %v820_v0 = vpack.c.bf16 %v812_v61, %v812_v61 }
 0x3b6   : > { %v853_v50 = vunpack.c.l.b16 %v820_v0 }
 0x3bd   : > { %v857_v49 = vpop.permute.xlu0 %856 }
 0x3be   : > { %869 = vmatpush.bf16.msra.mxu3 %v857_v49 }
 0x3c2   : > { %943 = vmatpush.bf16.xpose.msrb.mxu3 %v934_v55 }
 0x3d6   : > { %v792_v52 = vpop.xlane.xlu2 %791 }
 0x3de   : > { %v789_v57 = vpop.xlane.xlu2 %788 }
 0x3df   : > { %2298 = vrcp.f32 %v789_v57  ;;  %v607_v57 = vld [vmem:[%s3213_s7 + $0x18] sm:$0xff] }
 0x3e0   : > { %2300 = vrcp.f32 %v792_v52 }
 0x3e5   : > { %v2299_v62 = vpop.eup %2298 }
 0x3e6   : > { %v813_v2 = vmul.f32 %v2299_v62, %v2285_v22  ;;  %v798_v45 = vpop.xlane.xlu2 %797  ;;  %v2301_v12 = vpop.eup %2300 }
 0x3e7   : > { %2302 = vrcp.f32 %v798_v45  ;;  %v814_v14 = vmul.f32 %v2301_v12, %v2750_v13 }
 0x3e8   : > { %v821_v7 = vpack.c.bf16 %v813_v2, %v813_v2  ;;  %v795_v8 = vpop.xlane.xlu0 %794 }
 0x3e9   : > { %2304 = vrcp.f32 %v795_v8  ;;  %v822_v20 = vpack.c.bf16 %v814_v14, %v814_v14 }
 0x3ea   : > { %v854_v54 = vunpack.c.l.b16 %v821_v7 }
 0x3eb   : > { %v878_v24 = vunpack.c.l.b16 %v822_v20 }
 0x3ec   : > { %v855_v48 = vpack.c.b16 %v854_v54, %v853_v50 }
 0x3ed   : > { %v2303_v15 = vpop.eup %2302 }
 0x3ee   : > { %2099 = vmatmul.msk.bf16.vlgmr.msra.gmra.mxu3 %vm729_vm12, %v855_v48  ;;  %v801_v18 = vpop.xlane.xlu2 %800  ;;  %v816_v22 = vmul.f32 %v2303_v15, %v2757_v32  ;;  %v975_v32 = vpop.permute.xlu1 %974 }
 0x3ef   : > { %v2305_v59 = vpop.eup %2304  ;;  %2306 = vrcp.f32 %v801_v18 }
 0x3f0   : > { %v815_v21 = vmul.f32 %v2305_v59, %v2759_v25  ;;  %v824_v28 = vpack.c.bf16 %v816_v22, %v816_v22 }
 0x3f2   : > { %v823_v23 = vpack.c.bf16 %v815_v21, %v815_v21  ;;  %v903_v27 = vunpack.c.l.b16 %v824_v28 }
 0x3f4   : > { %v879_v26 = vunpack.c.l.b16 %v823_v23 }
 0x3f5   : > { %v2307_v60 = vpop.eup %2306 }
 0x3f6   : > { %v880_v29 = vpack.c.b16 %v879_v26, %v878_v24  ;;  %v817_v13 = vmul.f32 %v2307_v60, %v2765_v63  ;;  %v951_v36 = vpop.permute.xlu2 %950  ;;  %v999_v63 = vpop.permute.xlu1 %998 }
 0x3f8   : > { %v825_v33 = vpack.c.bf16 %v817_v13, %v817_v13  ;;  %2100 = vmatmul.msk.bf16.vlgmr.msrb.gmra.mxu1 %vm729_vm12, %v880_v29 }
 0x3fa   : > { %v904_v34 = vunpack.c.l.b16 %v825_v33 }
 0x3fb   : > { %v1001_v30 = vpop.permute.xlu0 %1000 }
 0x3fc   : > { %v905_v31 = vpack.c.b16 %v904_v34, %v903_v27  ;;  %v1006_v19 = vsel %vm627_vm11, %v1001_v30, 0 }
 0x3fd   : > { %1015 = vmatpush.bf16.xpose.msra.mxu3 %v1006_v19 }
 0x3fe   : > { %2101 = vmatmul.msk.bf16.vlgmr.msrb.gmra.mxu2 %vm729_vm12, %v905_v31  ;;  %2102 = vmatmul.msk.bf16.vlgmr.msrb.gmra.mxu3 %vm627_vm11, %v2748_v6 }
 0x403   : > { %v1124_v25 = vpop.permute.xlu0 %1123 }
 0x404   : > { %1136 = vmatpush.bf16.msrb.mxu0 %v1124_v25 }
 0x408   : > { %2103 = vmatmul.msk.bf16.vlgmr.msra.gmra.mxu1 %vm627_vm11, %v951_v36 }
 0x40e   : > { %2104 = vmatmul.msk.bf16.vlgmr.msra.gmra.mxu2 %vm627_vm11, %v975_v32  ;;  %2105 = vmatmul.msk.bf16.vlgmr.msra.gmra.mxu3 %vm627_vm11, %v999_v63 }
 0x428   : > { %v2796_v35 = vpop.f32.mrf.mxu2 }
 0x430   : > { %v2802_v39 = vpop.f32.mrf.mxu2 }
 0x471   : > { %v2798_v37 = vpop.f32.mrf.mxu3 }
 0x475   : > { %v2800_v38 = vpop.f32.mrf.mxu1 }
 0x479   : > { %v2804_v6 = vpop.f32.mrf.mxu3 }
 0x47d   : > { %v2806_v40 = vpop.f32.mrf.mxu1 }
 0x481   : > { %v2811_v44 = vpop.f32.mrf.mxu2  ;;  %v945_v46 = vpop.f32.mrf.mxu3 }
 0x482   : > { %v946_v51 = vadd.f32 %v945_v46, %v606_v43 }
 0x484   : > { %v1022_v47 = vsel %vm729_vm12, %v946_v51, -inf }
 0x485   : > { %1023 = vmax.xlane.f32.xlu2 %v1022_v47  ;;  %v969_v53 = vpop.f32.mrf.mxu1 }
 0x486   : > { %v970_v49 = vadd.f32 %v969_v53, %v606_v43 }
 0x488   : > { %v1028_v55 = vsel %vm729_vm12, %v970_v49, -inf }
 0x489   : > { %v2815_v52 = vpop.f32.mrf.mxu2  ;;  %v947_v58 = vpop.f32.mrf.mxu3  ;;  %1029 = vmax.xlane.f32.xlu1 %v1028_v55 }
 0x48a   : > { %v948_v61 = vadd.f32 %v947_v58, %v607_v57 }
 0x48c   : > { %v1025_v45 = vsel %vm729_vm12, %v948_v61, -inf }
 0x48d   : > { %v971_v62 = vpop.f32.mrf.mxu1 }
 0x48e   : > { %v972_v0 = vadd.f32 %v971_v62, %v607_v57 }
 0x490   : > { %v1031_v2 = vsel %vm729_vm12, %v972_v0, -inf }
 0x491   : > { %v993_v7 = vpop.f32.mrf.mxu2  ;;  %v1017_v8 = vpop.f32.mrf.mxu3  ;;  %1032 = vmax.xlane.f32.xlu2 %v1031_v2  ;;  %1026 = vmax.xlane.f32.xlu1 %v1025_v45 }
 0x492   : > { %v994_v12 = vadd.f32 %v993_v7, %v606_v43  ;;  %v1018_v50 = vadd.f32 %v1017_v8, %v606_v43 }
 0x494   : > { %v1034_v54 = vsel %vm729_vm12, %v994_v12, -inf  ;;  %v1040_v14 = vsel %vm729_vm12, %v1018_v50, -inf }
 0x495   : > { %1035 = vmax.xlane.f32.xlu0 %v1034_v54 }
 0x499   : > { %v995_v48 = vpop.f32.mrf.mxu2  ;;  %v1019_v15 = vpop.f32.mrf.mxu3  ;;  %1041 = vmax.xlane.f32.xlu1 %v1040_v14 }
 0x49a   : > { %v996_v18 = vadd.f32 %v995_v48, %v607_v57  ;;  %v1020_v59 = vadd.f32 %v1019_v15, %v607_v57 }
 0x49c   : > { %v1037_v20 = vsel %vm729_vm12, %v996_v18, -inf  ;;  %v1043_v21 = vsel %vm729_vm12, %v1020_v59, -inf }
 0x49d   : > { %1038 = vmax.xlane.f32.xlu2 %v1037_v20  ;;  %1044 = vmax.xlane.f32.xlu0 %v1043_v21 }
 0x4b1   : > { %1173 = vrot.lane.b32.xlu0 %v2681_v1, %s2417_s11 }
 0x4b2   : > { %1148 = vrot.lane.b32.xlu1 %v2670_v41, %s2417_s11 }
 0x4b5   : > { %1220 = vrot.lane.b32.xlu2 %v2672_v42, %s2418_s16 }
 0x4ba   : > { %1218 = vrot.lane.b32.xlu1 %v2672_v42, %s2419_s17 }
 0x4c2   : > { %1268 = vrot.lane.b32.xlu1 %v2681_v1, %s2418_s16 }
 0x4ca   : > { %1244 = vrot.lane.b32.xlu1 %v2670_v41, %s2418_s16 }
 0x4d2   : > { %1198 = vrot.lane.b32.xlu1 %v2678_v56, %s2417_s11  ;;  %s2424_s11 = smov 8  }
 0x4f8   : > { %v1024_v22 = vpop.xlane.xlu2 %1023 }
 0x4f9   : > { %v1046_v23 = vsub.f32 %v946_v51, %v1024_v22 }
 0x4fb   : > { %v1054_v24 = vmul.f32 1.442695, %v1046_v23 }
 0x4fc   : > { %v1030_v26 = vpop.xlane.xlu1 %1029 }
 0x4fd   : > { %2308 = vpow2.f32 %v1054_v24  ;;  %v1048_v60 = vsub.f32 %v970_v49, %v1030_v26 }
 0x4ff   : > { %v1058_v28 = vmul.f32 1.442695, %v1048_v60 }
 0x501   : > { %2310 = vpow2.f32 %v1058_v28 }
 0x503   : > { %v2840_v29 = vpop.eup %2308 }
 0x504   : > { %v1070_v13 = vsel %vm729_vm12, %v2840_v29, 0.0  ;;  %v1027_v33 = vpop.xlane.xlu1 %1026  ;;  %v1033_v27 = vpop.xlane.xlu2 %1032 }
 0x505   : > { %1071 = vadd.xlane.f32.xlu2 %v1070_v13  ;;  %v1047_v34 = vsub.f32 %v948_v61, %v1027_v33  ;;  %v1049_v31 = vsub.f32 %v972_v0, %v1033_v27 }
 0x507   : > { %v1056_v30 = vmul.f32 1.442695, %v1047_v34  ;;  %v2844_v32 = vpop.eup %2310  ;;  %v1060_v63 = vmul.f32 1.442695, %v1049_v31 }
 0x508   : > { %v1036_v19 = vpop.xlane.xlu0 %1035  ;;  %v1076_v43 = vsel %vm729_vm12, %v2844_v32, 0.0 }
 0x509   : > { %v1050_v25 = vsub.f32 %v994_v12, %v1036_v19  ;;  %2312 = vpow2.f32 %v1056_v30 }
 0x50b   : > { %v1062_v36 = vmul.f32 1.442695, %v1050_v25 }
 0x50c   : > { %v1042_v46 = vpop.xlane.xlu1 %1041 }
 0x50d   : > { %2314 = vpow2.f32 %v1062_v36  ;;  %1077 = vadd.xlane.f32.xlu2 %v1076_v43  ;;  %v1052_v51 = vsub.f32 %v1018_v50, %v1042_v46 }
 0x50e   : > { %2316 = vpow2.f32 %v1060_v63 }
 0x50f   : > { %v1066_v47 = vmul.f32 1.442695, %v1052_v51  ;;  %v2848_v53 = vpop.eup %2312 }
 0x510   : > { %v1039_v49 = vpop.xlane.xlu2 %1038  ;;  %v1045_v55 = vpop.xlane.xlu0 %1044  ;;  %v1073_v61 = vsel %vm729_vm12, %v2848_v53, 0.0 }
 0x511   : > { %2318 = vpow2.f32 %v1066_v47  ;;  %v1051_v57 = vsub.f32 %v996_v18, %v1039_v49  ;;  %v1053_v58 = vsub.f32 %v1020_v59, %v1045_v55  ;;  %1074 = vadd.xlane.f32.xlu1 %v1073_v61 }
 0x513   : > { %v2852_v62 = vpop.eup %2314  ;;  %v1068_v0 = vmul.f32 1.442695, %v1053_v58  ;;  %v1064_v2 = vmul.f32 1.442695, %v1051_v57 }
 0x514   : > { %v1082_v45 = vsel %vm729_vm12, %v2852_v62, 0.0  ;;  %v2856_v7 = vpop.eup %2316 }
 0x515   : > { %1083 = vadd.xlane.f32.xlu2 %v1082_v45  ;;  %2320 = vpow2.f32 %v1068_v0  ;;  %v1079_v14 = vsel %vm729_vm12, %v2856_v7, 0.0 }
 0x516   : > { %2322 = vpow2.f32 %v1064_v2 }
 0x517   : > { %v2319_v8 = vpop.eup %2318 }
 0x518   : > { %v1221_v12 = vpop.permute.xlu2 %1220  ;;  %v1088_v50 = vsel %vm729_vm12, %v2319_v8, 0.0 }
 0x519   : > { %v1226_v54 = vsel %vm627_vm11, %v1221_v12, 0  ;;  %1089 = vadd.xlane.f32.xlu0 %v1088_v50  ;;  %1080 = vadd.xlane.f32.xlu1 %v1079_v14 }
 0x51a   : > { %1235 = vmatpush.bf16.xpose.msra.mxu0 %v1226_v54 }
 0x51b   : > { %v2862_v48 = vpop.eup %2320 }
 0x51c   : > { %v1091_v15 = vsel %vm729_vm12, %v2862_v48, 0.0  ;;  %v2866_v18 = vpop.eup %2322 }
 0x51d   : > { %1092 = vadd.xlane.f32.xlu2 %v1091_v15  ;;  %v1085_v59 = vsel %vm729_vm12, %v2866_v18, 0.0 }
 0x521   : > { %1086 = vadd.xlane.f32.xlu1 %v1085_v59 }
 0x523   : > { %v1174_v20 = vpop.permute.xlu0 %1173 }
 0x524   : > { %1186 = vmatpush.bf16.msrb.mxu2 %v1174_v20  ;;  %v1149_v21 = vpop.permute.xlu1 %1148 }
 0x525   : > { %1161 = vmatpush.bf16.msrb.mxu1 %v1149_v21 }
 0x52c   : > { %v2870_v22 = vpop.permute.xlu1 %1218 }
 0x52d   : > { %1266 = vrot.lane.b32.xlu0 %v2681_v1, %s2419_s17 }
 0x534   : > { %v1269_v23 = vpop.permute.xlu1 %1268 }
 0x535   : > { %v1274_v24 = vsel %vm627_vm11, %v1269_v23, 0  ;;  %1292 = vrot.lane.b32.xlu2 %v2678_v56, %s2418_s16 }
 0x536   : > { %1283 = vmatpush.bf16.xpose.msra.mxu2 %v1274_v24 }
 0x53a   : > { %1242 = vrot.lane.b32.xlu1 %v2670_v41, %s2419_s17 }
 0x53c   : > { %v1245_v26 = vpop.permute.xlu1 %1244 }
 0x53d   : > { %v1250_v60 = vsel %vm627_vm11, %v1245_v26, 0  ;;  %1415 = vrot.lane.b32.xlu2 %v2672_v42, %s2420_s18 }
 0x53e   : > { %1259 = vmatpush.bf16.xpose.msra.mxu1 %v1250_v60 }
 0x542   : > { %1290 = vrot.lane.b32.xlu1 %v2678_v56, %s2419_s17 }
 0x544   : > { %v1199_v28 = vpop.permute.xlu1 %1198 }
 0x545   : > { %1211 = vmatpush.bf16.msrb.mxu3 %v1199_v28 }
 0x578   : > { %v1072_v13 = vpop.xlane.xlu2 %1071 }
 0x579   : > { %2324 = vrcp.f32 %v1072_v13 }
 0x57f   : > { %v2325_v34 = vpop.eup %2324 }
 0x580   : > { %v1078_v33 = vpop.xlane.xlu2 %1077  ;;  %v1102_v31 = vmul.f32 %v2325_v34, %v2840_v29 }
 0x582   : > { %v1110_v63 = vpack.c.bf16 %v1102_v31, %v1102_v31 }
 0x584   : > { %v1075_v27 = vpop.xlane.xlu1 %1074  ;;  %v1120_v49 = vunpack.c.l.b16 %v1110_v63 }
 0x585   : > { %2326 = vrcp.f32 %v1075_v27 }
 0x586   : > { %2328 = vrcp.f32 %v1078_v33 }
 0x588   : > { %v1084_v30 = vpop.xlane.xlu2 %1083 }
 0x58b   : > { %v2327_v19 = vpop.eup %2326 }
 0x58c   : > { %v1090_v25 = vpop.xlane.xlu0 %1089  ;;  %v2329_v36 = vpop.eup %2328  ;;  %v1103_v43 = vmul.f32 %v2327_v19, %v2848_v53 }
 0x58d   : > { %2330 = vrcp.f32 %v1090_v25  ;;  %v1081_v46 = vpop.xlane.xlu1 %1080  ;;  %v1104_v47 = vmul.f32 %v2329_v36, %v2844_v32 }
 0x58e   : > { %2332 = vrcp.f32 %v1081_v46  ;;  %v1111_v51 = vpack.c.bf16 %v1103_v43, %v1103_v43 }
 0x58f   : > { %2334 = vrcp.f32 %v1084_v30  ;;  %v1112_v0 = vpack.c.bf16 %v1104_v47, %v1104_v47 }
 0x590   : > { %v1121_v55 = vunpack.c.l.b16 %v1111_v51  ;;  %v1093_v57 = vpop.xlane.xlu2 %1092 }
 0x591   : > { %2336 = vrcp.f32 %v1093_v57  ;;  %v1145_v32 = vunpack.c.l.b16 %v1112_v0 }
 0x592   : > { %v1122_v61 = vpack.c.b16 %v1121_v55, %v1120_v49 }
 0x593   : > { %v2331_v58 = vpop.eup %2330 }
 0x594   : > { %v2333_v29 = vpop.eup %2332  ;;  %v1108_v2 = vmul.f32 %v2331_v58, %v2319_v8  ;;  %2106 = vmatmul.msk.bf16.vlgmr.msrb.gmra.mxu0 %vm729_vm12, %v1122_v61  ;;  %v609_v61 = vld [vmem:[%s3213_s7 + $0x28] sm:$0xff] }
 0x595   : > { %v1105_v45 = vmul.f32 %v2333_v29, %v2856_v7  ;;  %v1087_v53 = vpop.xlane.xlu1 %1086  ;;  %v2335_v12 = vpop.eup %2334 }
 0x596   : > { %2338 = vrcp.f32 %v1087_v53  ;;  %v1106_v14 = vmul.f32 %v2335_v12, %v2852_v62  ;;  %v1116_v15 = vpack.c.bf16 %v1108_v2, %v1108_v2 }
 0x597   : > { %v1113_v50 = vpack.c.bf16 %v1105_v45, %v1105_v45  ;;  %v2337_v54 = vpop.eup %2336 }
 0x598   : > { %v1109_v20 = vmul.f32 %v2337_v54, %v2862_v48  ;;  %v1293_v21 = vpop.permute.xlu2 %1292  ;;  %v1114_v26 = vpack.c.bf16 %v1106_v14, %v1106_v14  ;;  %v1195_v60 = vunpack.c.l.b16 %v1116_v15 }
 0x599   : > { %v1146_v59 = vunpack.c.l.b16 %v1113_v50  ;;  %v1298_v23 = vsel %vm627_vm11, %v1293_v21, 0 }
 0x59a   : > { %v1117_v24 = vpack.c.bf16 %v1109_v20, %v1109_v20  ;;  %1307 = vmatpush.bf16.xpose.msra.mxu3 %v1298_v23  ;;  %v1170_v27 = vunpack.c.l.b16 %v1114_v26 }
 0x59b   : > { %v1147_v8 = vpack.c.b16 %v1146_v59, %v1145_v32 }
 0x59c   : > { %v2339_v7 = vpop.eup %2338  ;;  %v1196_v28 = vunpack.c.l.b16 %v1117_v24 }
 0x59d   : > { %v1107_v13 = vmul.f32 %v2339_v7, %v2866_v18  ;;  %2107 = vmatmul.msk.bf16.vlgmr.msrb.gmra.mxu1 %vm729_vm12, %v1147_v8 }
 0x59e   : > { %v1197_v33 = vpack.c.b16 %v1196_v28, %v1195_v60 }
 0x59f   : > { %v1115_v62 = vpack.c.bf16 %v1107_v13, %v1107_v13  ;;  %v1267_v18 = vpop.permute.xlu0 %1266 }
 0x5a0   : > { %v1416_v30 = vpop.permute.xlu2 %1415  ;;  %2109 = vmatmul.msk.bf16.vlgmr.msrb.gmra.mxu3 %vm729_vm12, %v1197_v33 }
 0x5a1   : > { %v1171_v34 = vunpack.c.l.b16 %v1115_v62  ;;  %1428 = vmatpush.bf16.msrb.mxu0 %v1416_v30 }
 0x5a3   : > { %v1172_v48 = vpack.c.b16 %v1171_v34, %v1170_v27 }
 0x5a4   : > { %2110 = vmatmul.msk.bf16.vlgmr.msra.gmra.mxu0 %vm627_vm11, %v2870_v22  ;;  %v608_v22 = vld [vmem:[%s3213_s7 + $0x20] sm:$0xff] }
 0x5a5   : > { %2108 = vmatmul.msk.bf16.vlgmr.msrb.gmra.mxu2 %vm729_vm12, %v1172_v48 }
 0x5ac   : > { %v1243_v31 = vpop.permute.xlu1 %1242 }
 0x5ad   : > { %2111 = vmatmul.msk.bf16.vlgmr.msra.gmra.mxu1 %vm627_vm11, %v1243_v31 }
 0x5b4   : > { %v1291_v19 = vpop.permute.xlu1 %1290 }
 0x5b5   : > { %2112 = vmatmul.msk.bf16.vlgmr.msra.gmra.mxu2 %vm627_vm11, %v1267_v18  ;;  %2113 = vmatmul.msk.bf16.vlgmr.msra.gmra.mxu3 %vm627_vm11, %v1291_v19 }
 0x611   : > { %v2901_v25 = vpop.f32.mrf.mxu0 }
 0x619   : > { %v2903_v36 = vpop.f32.mrf.mxu0 }
 0x61a   : > { %v2905_v63 = vpop.f32.mrf.mxu1  ;;  %v2194_v43 = vpack.i.bf16 %v2903_v36, %v2901_v25 }
 0x621   : > { %v1237_v51 = vpop.f32.mrf.mxu0 }
 0x622   : > { %v2912_v46 = vpop.f32.mrf.mxu1  ;;  %v1238_v49 = vadd.f32 %v1237_v51, %v608_v22 }
 0x623   : > { %v2209_v47 = vpack.i.bf16 %v2912_v46, %v2905_v63  ;;  %v2916_v55 = vpop.f32.mrf.mxu3 }
 0x624   : > { %v1314_v57 = vsel %vm729_vm12, %v1238_v49, -inf }
 0x625   : > { %1315 = vmax.xlane.f32.xlu0 %v1314_v57 }
 0x628   : > { %v2919_v58 = vpop.f32.mrf.mxu2 }
 0x629   : > { %v1239_v29 = vpop.f32.mrf.mxu0 }
 0x62a   : > { %v1240_v0 = vadd.f32 %v1239_v29, %v609_v61  ;;  %v1261_v2 = vpop.f32.mrf.mxu1 }
 0x62b   : > { %v2924_v45 = vpop.f32.mrf.mxu3  ;;  %v1262_v53 = vadd.f32 %v1261_v2, %v608_v22 }
 0x62c   : > { %v1317_v50 = vsel %vm729_vm12, %v1240_v0, -inf }
 0x62d   : > { %1318 = vmax.xlane.f32.xlu1 %v1317_v50  ;;  %v1320_v54 = vsel %vm729_vm12, %v1262_v53, -inf }
 0x62e   : > { %1321 = vmax.xlane.f32.xlu2 %v1320_v54 }
 0x630   : > { %v2930_v32 = vpop.f32.mrf.mxu2 }
 0x631   : > { %v2224_v14 = vpack.i.bf16 %v2930_v32, %v2919_v58 }
 0x632   : > { %v1263_v15 = vpop.f32.mrf.mxu1 }
 0x633   : > { %v1264_v59 = vadd.f32 %v1263_v15, %v609_v61 }
 0x635   : > { %v1323_v20 = vsel %vm729_vm12, %v1264_v59, -inf }
 0x636   : > { %1324 = vmax.xlane.f32.xlu0 %v1323_v20 }
 0x638   : > { %v1285_v21 = vpop.f32.mrf.mxu2  ;;  %v1309_v24 = vpop.f32.mrf.mxu3 }
 0x639   : > { %v1286_v23 = vadd.f32 %v1285_v21, %v608_v22  ;;  %v1310_v7 = vadd.f32 %v1309_v24, %v608_v22 }
 0x63b   : > { %v1326_v8 = vsel %vm729_vm12, %v1286_v23, -inf  ;;  %v1332_v13 = vsel %vm729_vm12, %v1310_v7, -inf }
 0x63c   : > { %1327 = vmax.xlane.f32.xlu1 %v1326_v8 }
 0x640   : > { %v1287_v26 = vpop.f32.mrf.mxu2  ;;  %v1311_v33 = vpop.f32.mrf.mxu3 }
 0x641   : > { %v1288_v60 = vadd.f32 %v1287_v26, %v609_v61  ;;  %v2946_v62 = vadd.f32 %v1311_v33, %v609_v61 }
 0x643   : > { %v1329_v28 = vsel %vm729_vm12, %v1288_v60, -inf  ;;  %v1335_v27 = vsel %vm729_vm12, %v2946_v62, -inf }
 0x644   : > { %1330 = vmax.xlane.f32.xlu0 %v1329_v28  ;;  %1333 = vmax.xlane.f32.xlu1 %v1332_v13 }
 0x646   : > { %1510 = vrot.lane.b32.xlu2 %v2672_v42, %s2421_s23 }
 0x658   : > { %1512 = vrot.lane.b32.xlu0 %v2672_v42, %s2422_s24 }
 0x65d   : > { %1440 = vrot.lane.b32.xlu1 %v2670_v41, %s2420_s18 }
 0x665   : > { %1536 = vrot.lane.b32.xlu1 %v2670_v41, %s2422_s24 }
 0x66d   : > { %1560 = vrot.lane.b32.xlu1 %v2681_v1, %s2422_s24 }
 0x66f   : > { %1336 = vmax.xlane.f32.xlu2 %v1335_v27 }
 0x675   : > { %1534 = vrot.lane.b32.xlu1 %v2670_v41, %s2421_s23 }
 0x67d   : > { %1490 = vrot.lane.b32.xlu1 %v2678_v56, %s2420_s18 }
 0x687   : > { %1465 = vrot.lane.b32.xlu2 %v2681_v1, %s2420_s18 }
 0x698   : > { %v1316_v34 = vpop.xlane.xlu0 %1315 }
 0x699   : > { %v1338_v30 = vsub.f32 %v1238_v49, %v1316_v34 }
 0x69b   : > { %v1346_v48 = vmul.f32 1.442695, %v1338_v30 }
 0x69d   : > { %2340 = vpow2.f32 %v1346_v48 }
 0x6a0   : > { %v1319_v31 = vpop.xlane.xlu1 %1318 }
 0x6a1   : > { %v1339_v18 = vsub.f32 %v1240_v0, %v1319_v31  ;;  %v1322_v19 = vpop.xlane.xlu2 %1321 }
 0x6a2   : > { %v1340_v22 = vsub.f32 %v1262_v53, %v1322_v19 }
 0x6a3   : > { %v2958_v51 = vpop.eup %2340  ;;  %v1348_v57 = vmul.f32 1.442695, %v1339_v18 }
 0x6a4   : > { %v1350_v61 = vmul.f32 1.442695, %v1340_v22  ;;  %v1362_v29 = vsel %vm729_vm12, %v2958_v51, 0.0 }
 0x6a5   : > { %2342 = vpow2.f32 %v1348_v57  ;;  %1363 = vadd.xlane.f32.xlu0 %v1362_v29 }
 0x6a6   : > { %2344 = vpow2.f32 %v1350_v61 }
 0x6a9   : > { %v1325_v2 = vpop.xlane.xlu0 %1324  ;;  %v1511_v29 = vpop.permute.xlu2 %1510 }
 0x6aa   : > { %v1341_v50 = vsub.f32 %v1264_v59, %v1325_v2 }
 0x6ab   : > { %v2962_v54 = vpop.eup %2342 }
 0x6ac   : > { %v2964_v49 = vpop.eup %2344  ;;  %v1352_v15 = vmul.f32 1.442695, %v1341_v50  ;;  %v1365_v0 = vsel %vm729_vm12, %v2962_v54, 0.0 }
 0x6ad   : > { %1366 = vadd.xlane.f32.xlu1 %v1365_v0  ;;  %v1368_v53 = vsel %vm729_vm12, %v2964_v49, 0.0 }
 0x6ae   : > { %2346 = vpow2.f32 %v1352_v15  ;;  %1369 = vadd.xlane.f32.xlu0 %v1368_v53 }
 0x6af   : > { %v1328_v20 = vpop.xlane.xlu1 %1327 }
 0x6b0   : > { %v1342_v21 = vsub.f32 %v1286_v23, %v1328_v20 }
 0x6b2   : > { %v1354_v8 = vmul.f32 1.442695, %v1342_v21 }
 0x6b4   : > { %2348 = vpow2.f32 %v1354_v8  ;;  %v2970_v24 = vpop.eup %2346 }
 0x6b5   : > { %v1371_v59 = vsel %vm729_vm12, %v2970_v24, 0.0 }
 0x6b6   : > { %1372 = vadd.xlane.f32.xlu1 %v1371_v59 }
 0x6b7   : > { %v1331_v26 = vpop.xlane.xlu0 %1330  ;;  %v1334_v28 = vpop.xlane.xlu1 %1333 }
 0x6b8   : > { %v1343_v13 = vsub.f32 %v1288_v60, %v1331_v26  ;;  %v1344_v33 = vsub.f32 %v1310_v7, %v1334_v28 }
 0x6ba   : > { %v2974_v27 = vpop.eup %2348  ;;  %v1356_v34 = vmul.f32 1.442695, %v1343_v13  ;;  %v1358_v30 = vmul.f32 1.442695, %v1344_v33 }
 0x6bb   : > { %v1374_v48 = vsel %vm729_vm12, %v2974_v27, 0.0 }
 0x6bc   : > { %2350 = vpow2.f32 %v1356_v34  ;;  %1375 = vadd.xlane.f32.xlu0 %v1374_v48 }
 0x6bd   : > { %2352 = vpow2.f32 %v1358_v30 }
 0x6c2   : > { %v2978_v23 = vpop.eup %2350 }
 0x6c3   : > { %v2980_v31 = vpop.eup %2352  ;;  %v1377_v18 = vsel %vm729_vm12, %v2978_v23, 0.0 }
 0x6c4   : > { %1378 = vadd.xlane.f32.xlu1 %v1377_v18  ;;  %v1380_v7 = vsel %vm729_vm12, %v2980_v31, 0.0 }
 0x6c5   : > { %1381 = vadd.xlane.f32.xlu0 %v1380_v7 }
 0x6ca   : > { %v1513_v60 = vpop.permute.xlu0 %1512 }
 0x6cb   : > { %v1518_v19 = vsel %vm627_vm11, %v1513_v60, 0 }
 0x6cc   : > { %1527 = vmatpush.bf16.xpose.msra.mxu0 %v1518_v19 }
 0x6cf   : > { %v1441_v22 = vpop.permute.xlu1 %1440 }
 0x6d0   : > { %1453 = vmatpush.bf16.msrb.mxu1 %v1441_v22 }
 0x6d7   : > { %v1537_v57 = vpop.permute.xlu1 %1536 }
 0x6d8   : > { %v1542_v61 = vsel %vm627_vm11, %v1537_v57, 0 }
 0x6d9   : > { %1584 = vrot.lane.b32.xlu0 %v2678_v56, %s2422_s24  ;;  %1551 = vmatpush.bf16.xpose.msra.mxu1 %v1542_v61 }
 0x6dd   : > { %1558 = vrot.lane.b32.xlu1 %v2681_v1, %s2421_s23 }
 0x6df   : > { %v1561_v2 = vpop.permute.xlu1 %1560 }
 0x6e0   : > { %v1566_v21 = vsel %vm627_vm11, %v1561_v2, 0 }
 0x6e2   : > { %v1337_v50 = vpop.xlane.xlu2 %1336 }
 0x6e3   : > { %v1345_v15 = vsub.f32 %v2946_v62, %v1337_v50 }
 0x6e5   : > { %v1360_v0 = vmul.f32 1.442695, %v1345_v15 }
 0x6e7   : > { %v1535_v53 = vpop.permute.xlu1 %1534  ;;  %2354 = vpow2.f32 %v1360_v0 }
 0x6ea   : > { %v1466_v20 = vpop.permute.xlu2 %1465 }
 0x6eb   : > { %1478 = vmatpush.bf16.msrb.mxu2 %v1466_v20 }
 0x6ed   : > { %v2994_v8 = vpop.eup %2354 }
 0x6ee   : > { %v1383_v26 = vsel %vm729_vm12, %v2994_v8, 0.0 }
 0x6ef   : > { %1575 = vmatpush.bf16.xpose.msra.mxu2 %v1566_v21  ;;  %v1491_v59 = vpop.permute.xlu1 %1490  ;;  %1384 = vadd.xlane.f32.xlu2 %v1383_v26 }
 0x6f0   : > { %1503 = vmatpush.bf16.msrb.mxu3 %v1491_v59 }
 0x707   : > { %1582 = vrot.lane.b32.xlu2 %v2678_v56, %s2421_s23 }
 0x718   : > { %v1364_v62 = vpop.xlane.xlu0 %1363 }
 0x719   : > { %2356 = vrcp.f32 %v1364_v62 }
 0x71f   : > { %v2357_v13 = vpop.eup %2356 }
 0x720   : > { %v1367_v28 = vpop.xlane.xlu1 %1366  ;;  %v1394_v34 = vmul.f32 %v2357_v13, %v2958_v51 }
 0x721   : > { %2358 = vrcp.f32 %v1367_v28  ;;  %v1370_v33 = vpop.xlane.xlu0 %1369 }
 0x722   : > { %2360 = vrcp.f32 %v1370_v33  ;;  %v1402_v48 = vpack.c.bf16 %v1394_v34, %v1394_v34 }
 0x724   : > { %v1412_v22 = vunpack.c.l.b16 %v1402_v48 }
 0x727   : > { %v2359_v30 = vpop.eup %2358 }
 0x728   : > { %v1395_v18 = vmul.f32 %v2359_v30, %v2962_v54  ;;  %v2361_v60 = vpop.eup %2360 }
 0x729   : > { %v1373_v7 = vpop.xlane.xlu1 %1372  ;;  %v1396_v61 = vmul.f32 %v2361_v60, %v2964_v49 }
 0x72a   : > { %v1403_v19 = vpack.c.bf16 %v1395_v18, %v1395_v18  ;;  %2362 = vrcp.f32 %v1373_v7 }
 0x72b   : > { %v1404_v0 = vpack.c.bf16 %v1396_v61, %v1396_v61 }
 0x72c   : > { %v1413_v57 = vunpack.c.l.b16 %v1403_v19 }
 0x72d   : > { %v1437_v21 = vunpack.c.l.b16 %v1404_v0 }
 0x72e   : > { %v1414_v2 = vpack.c.b16 %v1413_v57, %v1412_v22 }
 0x72f   : > { %v1376_v50 = vpop.xlane.xlu0 %1375 }
 0x730   : > { %v2363_v15 = vpop.eup %2362  ;;  %2114 = vmatmul.msk.bf16.vlgmr.msrb.gmra.mxu0 %vm729_vm12, %v1414_v2  ;;  %2364 = vrcp.f32 %v1376_v50 }
 0x731   : > { %v1397_v51 = vmul.f32 %v2363_v15, %v2970_v24 }
 0x733   : > { %v1405_v20 = vpack.c.bf16 %v1397_v51, %v1397_v51 }
 0x735   : > { %v1438_v54 = vunpack.c.l.b16 %v1405_v20 }
 0x736   : > { %v2365_v26 = vpop.eup %2364 }
 0x737   : > { %v1379_v59 = vpop.xlane.xlu1 %1378  ;;  %v1439_v62 = vpack.c.b16 %v1438_v54, %v1437_v21  ;;  %v1398_v49 = vmul.f32 %v2365_v26, %v2974_v27 }
 0x738   : > { %2366 = vrcp.f32 %v1379_v59  ;;  %v1382_v30 = vpop.xlane.xlu0 %1381 }
 0x739   : > { %2115 = vmatmul.msk.bf16.vlgmr.msrb.gmra.mxu1 %vm729_vm12, %v1439_v62  ;;  %v1406_v13 = vpack.c.bf16 %v1398_v49, %v1398_v49  ;;  %2368 = vrcp.f32 %v1382_v30 }
 0x73b   : > { %v1462_v24 = vunpack.c.l.b16 %v1406_v13 }
 0x73e   : > { %v2367_v28 = vpop.eup %2366 }
 0x73f   : > { %v1399_v33 = vmul.f32 %v2367_v28, %v2978_v23  ;;  %v2369_v19 = vpop.eup %2368  ;;  %v611_v28 = vld [vmem:[%s3213_s7 + $0x38] sm:$0xff] }
 0x740   : > { %2118 = vmatmul.msk.bf16.vlgmr.msra.gmra.mxu0 %vm627_vm11, %v1511_v29  ;;  %v1400_v29 = vmul.f32 %v2369_v19, %v2980_v31 }
 0x741   : > { %v1407_v34 = vpack.c.bf16 %v1399_v33, %v1399_v33 }
 0x742   : > { %v1408_v57 = vpack.c.bf16 %v1400_v29, %v1400_v29 }
 0x743   : > { %v1463_v48 = vunpack.c.l.b16 %v1407_v34 }
 0x744   : > { %v1487_v50 = vunpack.c.l.b16 %v1408_v57 }
 0x745   : > { %v1464_v18 = vpack.c.b16 %v1463_v48, %v1462_v24 }
 0x747   : > { %2116 = vmatmul.msk.bf16.vlgmr.msrb.gmra.mxu2 %vm729_vm12, %v1464_v18 }
 0x749   : > { %2119 = vmatmul.msk.bf16.vlgmr.msra.gmra.mxu1 %vm627_vm11, %v1535_v53 }
 0x74b   : > { %v1585_v7 = vpop.permute.xlu0 %1584 }
 0x74c   : > { %v1590_v60 = vsel %vm627_vm11, %v1585_v7, 0 }
 0x74d   : > { %1599 = vmatpush.bf16.xpose.msra.mxu3 %v1590_v60 }
 0x74f   : > { %v1559_v27 = vpop.permute.xlu1 %1558 }
 0x757   : > { %2120 = vmatmul.msk.bf16.vlgmr.msra.gmra.mxu2 %vm627_vm11, %v1559_v27 }
 0x762   : > { %v1385_v23 = vpop.xlane.xlu2 %1384 }
 0x763   : > { %2370 = vrcp.f32 %v1385_v23 }
 0x769   : > { %v2371_v22 = vpop.eup %2370 }
 0x76a   : > { %v1401_v61 = vmul.f32 %v2371_v22, %v2994_v8  ;;  %v1583_v0 = vpop.permute.xlu2 %1582  ;;  %v610_v8 = vld [vmem:[%s3213_s7 + $0x30] sm:$0xff] }
 0x76c   : > { %v1409_v2 = vpack.c.bf16 %v1401_v61, %v1401_v61 }
 0x76e   : > { %v1488_v53 = vunpack.c.l.b16 %v1409_v2 }
 0x770   : > { %v1489_v15 = vpack.c.b16 %v1488_v53, %v1487_v50 }
 0x772   : > { %2117 = vmatmul.msk.bf16.vlgmr.msrb.gmra.mxu3 %vm729_vm12, %v1489_v15 }
 0x782   : > { %2121 = vmatmul.msk.bf16.vlgmr.msra.gmra.mxu3 %vm627_vm11, %v1583_v0 }
 0x7ad   : > { %v3017_v51 = vpop.f32.mrf.mxu0 }
 0x7b5   : > { %v3019_v20 = vpop.f32.mrf.mxu0 }
 0x7b6   : > { %v2199_v31 = vpack.i.bf16 %v3019_v20, %v3017_v51  ;;  %v3023_v21 = vpop.f32.mrf.mxu1 }
 0x7bd   : > { %v1529_v54 = vpop.f32.mrf.mxu0 }
 0x7be   : > { %v1530_v59 = vadd.f32 %v1529_v54, %v610_v8  ;;  %v3028_v26 = vpop.f32.mrf.mxu1 }
 0x7bf   : > { %v2214_v62 = vpack.i.bf16 %v3028_v26, %v3023_v21 }
 0x7c0   : > { %v1606_v49 = vsel %vm729_vm12, %v1530_v59, -inf }
 0x7c1   : > { %1607 = vmax.xlane.f32.xlu1 %v1606_v49 }
 0x7c5   : > { %v1531_v13 = vpop.f32.mrf.mxu0 }
 0x7c6   : > { %v1532_v33 = vadd.f32 %v1531_v13, %v611_v28  ;;  %v1553_v34 = vpop.f32.mrf.mxu1 }
 0x7c7   : > { %v1554_v24 = vadd.f32 %v1553_v34, %v610_v8 }
 0x7c8   : > { %v1609_v30 = vsel %vm729_vm12, %v1532_v33, -inf }
 0x7c9   : > { %1610 = vmax.xlane.f32.xlu0 %v1609_v30  ;;  %v1612_v18 = vsel %vm729_vm12, %v1554_v24, -inf }
 0x7ca   : > { %v3037_v48 = vpop.f32.mrf.mxu2  ;;  %1613 = vmax.xlane.f32.xlu2 %v1612_v18 }
 0x7ce   : > { %v1555_v7 = vpop.f32.mrf.mxu1 }
 0x7cf   : > { %v1556_v60 = vadd.f32 %v1555_v7, %v611_v28 }
 0x7d1   : > { %v1615_v23 = vsel %vm729_vm12, %v1556_v60, -inf }
 0x7d2   : > { %v3040_v27 = vpop.f32.mrf.mxu2  ;;  %1616 = vmax.xlane.f32.xlu1 %v1615_v23 }
 0x7d3   : > { %v2229_v19 = vpack.i.bf16 %v3040_v27, %v3037_v48  ;;  %v2145_v48 = vld [vmem:[%s3211_s5 + $0x8] sm:$0xff] }
 0x7da   : > { %v1577_v29 = vpop.f32.mrf.mxu2 }
 0x7db   : > { %v1578_v22 = vadd.f32 %v1577_v29, %v610_v8 }
 0x7dd   : > { %v1618_v57 = vsel %vm729_vm12, %v1578_v22, -inf }
 0x7de   : > { %1619 = vmax.xlane.f32.xlu1 %v1618_v57 }
 0x7e2   : > { %v1579_v61 = vpop.f32.mrf.mxu2 }
 0x7e3   : > { %v1580_v2 = vadd.f32 %v1579_v61, %v611_v28 }
 0x7e5   : > { %v1621_v50 = vsel %vm729_vm12, %v1580_v2, -inf }
 0x7e6   : > { %1622 = vmax.xlane.f32.xlu0 %v1621_v50 }
 0x7f5   : > { %v3047_v53 = vpop.f32.mrf.mxu3 }
 0x7fd   : > { %v3049_v15 = vpop.f32.mrf.mxu3 }
 0x805   : > { %v1601_v54 = vpop.f32.mrf.mxu3 }
 0x806   : > { %v1602_v49 = vadd.f32 %v1601_v54, %v610_v8 }
 0x808   : > { %v1624_v13 = vsel %vm729_vm12, %v1602_v49, -inf }
 0x809   : > { %1625 = vmax.xlane.f32.xlu1 %v1624_v13 }
 0x80d   : > { %v1603_v34 = vpop.f32.mrf.mxu3 }
 0x80e   : > { %v1604_v30 = vadd.f32 %v1603_v34, %v611_v28 }
 0x810   : > { %v1627_v18 = vsel %vm729_vm12, %v1604_v30, -inf }
 0x811   : > { %1628 = vmax.xlane.f32.xlu2 %v1627_v18 }
 0x829   : > { %1707 = vrot.lane.b32.xlu2 %v2672_v42, %s2423_s10 }
 0x834   : > { %v1608_v7 = vpop.xlane.xlu1 %1607 }
 0x835   : > { %v1630_v23 = vsub.f32 %v1530_v59, %v1608_v7 }
 0x837   : > { %v1638_v29 = vmul.f32 1.442695, %v1630_v23 }
 0x839   : > { %2372 = vpow2.f32 %v1638_v29 }
 0x83c   : > { %v1611_v57 = vpop.xlane.xlu0 %1610 }
 0x83d   : > { %v1631_v61 = vsub.f32 %v1532_v33, %v1611_v57  ;;  %v1614_v50 = vpop.xlane.xlu2 %1613 }
 0x83e   : > { %v1632_v8 = vsub.f32 %v1554_v24, %v1614_v50 }
 0x83f   : > { %v2373_v54 = vpop.eup %2372  ;;  %v1640_v0 = vmul.f32 1.442695, %v1631_v61 }
 0x840   : > { %v1642_v13 = vmul.f32 1.442695, %v1632_v8  ;;  %v1654_v28 = vsel %vm729_vm12, %v2373_v54, 0.0 }
 0x841   : > { %2374 = vpow2.f32 %v1640_v0  ;;  %1655 = vadd.xlane.f32.xlu0 %v1654_v28 }
 0x842   : > { %2376 = vpow2.f32 %v1642_v13 }
 0x845   : > { %v1617_v34 = vpop.xlane.xlu1 %1616 }
 0x846   : > { %v1633_v18 = vsub.f32 %v1556_v60, %v1617_v34 }
 0x847   : > { %v2375_v12 = vpop.eup %2374 }
 0x848   : > { %v3058_v42 = vpop.eup %2376  ;;  %v1644_v59 = vmul.f32 1.442695, %v1633_v18  ;;  %v1657_v7 = vsel %vm729_vm12, %v2375_v12, 0.0 }
 0x849   : > { %1658 = vadd.xlane.f32.xlu1 %v1657_v7  ;;  %v1660_v33 = vsel %vm729_vm12, %v3058_v42, 0.0 }
 0x84a   : > { %2378 = vpow2.f32 %v1644_v59  ;;  %1661 = vadd.xlane.f32.xlu0 %v1660_v33 }
 0x850   : > { %v3063_v24 = vpop.eup %2378 }
 0x851   : > { %v1620_v23 = vpop.xlane.xlu1 %1619  ;;  %v1663_v29 = vsel %vm729_vm12, %v3063_v24, 0.0 }
 0x852   : > { %v1634_v0 = vsub.f32 %v1578_v22, %v1620_v23  ;;  %1664 = vadd.xlane.f32.xlu1 %v1663_v29 }
 0x854   : > { %v1646_v60 = vmul.f32 1.442695, %v1634_v0 }
 0x856   : > { %2380 = vpow2.f32 %v1646_v60 }
 0x859   : > { %v1623_v13 = vpop.xlane.xlu0 %1622 }
 0x85a   : > { %v1635_v28 = vsub.f32 %v1580_v2, %v1623_v13 }
 0x85c   : > { %v3067_v57 = vpop.eup %2380  ;;  %v1648_v59 = vmul.f32 1.442695, %v1635_v28 }
 0x85d   : > { %v1666_v61 = vsel %vm729_vm12, %v3067_v57, 0.0 }
 0x85e   : > { %1667 = vadd.xlane.f32.xlu0 %v1666_v61 }
 0x86b   : > { %1757 = vrot.lane.b32.xlu1 %v2681_v1, %s2423_s10 }
 0x872   : > { %1732 = vrot.lane.b32.xlu0 %v2670_v41, %s2423_s10 }
 0x87c   : > { %v1626_v50 = vpop.xlane.xlu1 %1625 }
 0x87d   : > { %v1636_v22 = vsub.f32 %v1602_v49, %v1626_v50 }
 0x87f   : > { %v1650_v8 = vmul.f32 1.442695, %v1636_v22 }
 0x881   : > { %2382 = vpow2.f32 %v1650_v8 }
 0x882   : > { %2384 = vpow2.f32 %v1648_v59 }
 0x884   : > { %v1629_v34 = vpop.xlane.xlu2 %1628 }
 0x885   : > { %v1637_v33 = vsub.f32 %v1604_v30, %v1629_v34 }
 0x887   : > { %v3075_v18 = vpop.eup %2382  ;;  %v1652_v23 = vmul.f32 1.442695, %v1637_v33 }
 0x888   : > { %v1672_v7 = vsel %vm729_vm12, %v3075_v18, 0.0  ;;  %v2385_v41 = vpop.eup %2384 }
 0x889   : > { %1673 = vadd.xlane.f32.xlu2 %v1672_v7  ;;  %2386 = vpow2.f32 %v1652_v23  ;;  %v1669_v49 = vsel %vm729_vm12, %v2385_v41, 0.0 }
 0x88c   : > { %v1708_v1 = vpop.permute.xlu2 %1707 }
 0x88d   : > { %1720 = vmatpush.bf16.msrb.mxu0 %v1708_v1 }
 0x88f   : > { %v2387_v0 = vpop.eup %2386 }
 0x890   : > { %v1675_v2 = vsel %vm729_vm12, %v2387_v0, 0.0 }
 0x891   : > { %1965 = vmatpush.bf16.msra.mxu0 %v2145_v48 }
 0x895   : > { %1670 = vadd.xlane.f32.xlu1 %v1669_v49 }
 0x89c   : > { %1676 = vadd.xlane.f32.xlu0 %v1675_v2 }
 0x8ae   : > { %1782 = vrot.lane.b32.xlu1 %v2678_v56, %s2423_s10 }
 0x8b4   : > { %v1656_v29 = vpop.xlane.xlu0 %1655 }
 0x8b5   : > { %2388 = vrcp.f32 %v1656_v29 }
 0x8b6   : > { %2195 = vrot.lane.b32.xlu1 %v2194_v43, %s2424_s11 }
 0x8bb   : > { %v2389_v60 = vpop.eup %2388 }
 0x8bc   : > { %v1659_v30 = vpop.xlane.xlu1 %1658  ;;  %v1686_v61 = vmul.f32 %v2389_v60, %v2373_v54 }
 0x8bd   : > { %2390 = vrcp.f32 %v1659_v30  ;;  %v1662_v51 = vpop.xlane.xlu0 %1661 }
 0x8be   : > { %2200 = vrot.lane.b32.xlu1 %v2199_v31, %s2425_s12  ;;  %v1694_v56 = vpack.c.bf16 %v1686_v61, %v1686_v61 }
 0x8c0   : > { %v1704_v25 = vunpack.c.l.b16 %v1694_v56 }
 0x8c3   : > { %v2391_v50 = vpop.eup %2390 }
 0x8c4   : > { %v1687_v22 = vmul.f32 %v2391_v50, %v2375_v12 }
 0x8c5   : > { %v1665_v13 = vpop.xlane.xlu1 %1664 }
 0x8c6   : > { %v1695_v8 = vpack.c.bf16 %v1687_v22, %v1687_v22  ;;  %2210 = vrot.lane.b32.xlu1 %v2209_v47, %s2424_s11  ;;  %2392 = vrcp.f32 %v1665_v13 }
 0x8c7   : > { %2394 = vrcp.f32 %v1662_v51 }
 0x8c8   : > { %v1705_v36 = vunpack.c.l.b16 %v1695_v8 }
 0x8ca   : > { %v1706_v43 = vpack.c.b16 %v1705_v36, %v1704_v25 }
 0x8cc   : > { %2122 = vmatmul.msk.bf16.vlgmr.msrb.gmra.mxu0 %vm729_vm12, %v1706_v43  ;;  %v2393_v12 = vpop.eup %2392 }
 0x8cd   : > { %v2395_v63 = vpop.eup %2394  ;;  %v1689_v46 = vmul.f32 %v2393_v12, %v3063_v24  ;;  %v3222_v12 = vpack.i.bf16 %v3049_v15, %v3047_v53 }
 0x8ce   : > { %2215 = vrot.lane.b32.xlu1 %v2214_v62, %s2425_s12  ;;  %v1688_v47 = vmul.f32 %v2395_v63, %v3058_v42 }
 0x8cf   : > { %v1697_v31 = vpack.c.bf16 %v1689_v46, %v1689_v46 }
 0x8d0   : > { %v1696_v21 = vpack.c.bf16 %v1688_v47, %v1688_v47 }
 0x8d1   : > { %v1668_v20 = vpop.xlane.xlu0 %1667  ;;  %v1730_v26 = vunpack.c.l.b16 %v1697_v31 }
 0x8d2   : > { %v1729_v62 = vunpack.c.l.b16 %v1696_v21  ;;  %2396 = vrcp.f32 %v1668_v20 }
 0x8d4   : > { %v1731_v34 = vpack.c.b16 %v1730_v26, %v1729_v62 }
 0x8d6   : > { %2225 = vrot.lane.b32.xlu1 %v2224_v14, %s2424_s11 }
 0x8d8   : > { %v2397_v32 = vpop.eup %2396 }
 0x8d9   : > { %v1690_v24 = vmul.f32 %v2397_v32, %v3067_v57 }
 0x8db   : > { %v1698_v7 = vpack.c.bf16 %v1690_v24, %v1690_v24 }
 0x8dd   : > { %v1758_v54 = vpop.permute.xlu1 %1757  ;;  %v1754_v49 = vunpack.c.l.b16 %v1698_v7 }
 0x8de   : > { %1770 = vmatpush.bf16.msrb.mxu2 %v1758_v54 }
 0x8e4   : > { %v1733_v28 = vpop.permute.xlu0 %1732 }
 0x8e5   : > { %1745 = vmatpush.bf16.msrb.mxu1 %v1733_v28 }
 0x8e8   : > { %2123 = vmatmul.msk.bf16.vlgmr.msrb.gmra.mxu1 %vm729_vm12, %v1731_v34 }
 0x8fc   : > { %v1674_v14 = vpop.xlane.xlu2 %1673 }
 0x908   : > { %v1671_v58 = vpop.xlane.xlu1 %1670 }
 0x909   : > { %2398 = vrcp.f32 %v1671_v58 }
 0x90a   : > { %2400 = vrcp.f32 %v1674_v14 }
 0x90f   : > { %v1677_v42 = vpop.xlane.xlu0 %1676  ;;  %v2399_v59 = vpop.eup %2398 }
 0x910   : > { %2402 = vrcp.f32 %v1677_v42  ;;  %v1691_v33 = vmul.f32 %v2399_v59, %v2385_v41  ;;  %v2401_v23 = vpop.eup %2400 }
 0x911   : > { %v1692_v61 = vmul.f32 %v2401_v23, %v3075_v18  ;;  %v3221_v18 = vpack.i.bf16 %v2924_v45, %v2916_v55  ;;  %v2144_v55 = vld [vmem:[%s3211_s5] sm:$0xff] }
 0x912   : > { %v1699_v1 = vpack.c.bf16 %v1691_v33, %v1691_v33  ;;  %1966 = vmatpush.bf16.msra.mxu0 %v2144_v55 }
 0x913   : > { %v1700_v56 = vpack.c.bf16 %v1692_v61, %v1692_v61 }
 0x914   : > { %v1755_v2 = vunpack.c.l.b16 %v1699_v1 }
 0x915   : > { %v1779_v22 = vunpack.c.l.b16 %v1700_v56 }
 0x916   : > { %v2403_v29 = vpop.eup %2402  ;;  %v1756_v30 = vpack.c.b16 %v1755_v2, %v1754_v49 }
 0x917   : > { %v1693_v60 = vmul.f32 %v2403_v29, %v2387_v0 }
 0x918   : > { %2124 = vmatmul.msk.bf16.vlgmr.msrb.gmra.mxu2 %vm729_vm12, %v1756_v30 }
 0x919   : > { %v1701_v50 = vpack.c.bf16 %v1693_v60, %v1693_v60 }
 0x91b   : > { %v1780_v57 = vunpack.c.l.b16 %v1701_v50 }
 0x91d   : > { %v1781_v25 = vpack.c.b16 %v1780_v57, %v1779_v22 }
 0x920   : > { %v1783_v8 = vpop.permute.xlu1 %1782 }
 0x921   : > { %1795 = vmatpush.bf16.msrb.mxu3 %v1783_v8 }
 0x924   : > { %2125 = vmatmul.msk.bf16.vlgmr.msrb.gmra.mxu3 %vm729_vm12, %v1781_v25 }
 0x928   : > { %v2196_v27 = vpop.permute.xlu1 %2195 }
 0x929   : > { %v2198_v53 = vunpack.i.h.bf16 %v2196_v27  ;;  %v2197_v15 = vunpack.i.l.bf16 %v2196_v27 }
 0x92b   : > { %v1899_v21 = vsel %vm627_vm11, %v2802_v39, %v2198_v53  ;;  %v1898_v26 = vsel %vm627_vm11, %v2796_v35, %v2197_v15 }
 0x930   : > { %v2201_v47 = vpop.permute.xlu1 %2200 }
 0x931   : > { %v2203_v20 = vunpack.i.h.bf16 %v2201_v47  ;;  %v2202_v31 = vunpack.i.l.bf16 %v2201_v47 }
 0x933   : > { %v1906_v58 = vsel %vm729_vm12, %v1898_v26, %v2202_v31  ;;  %v1907_v32 = vsel %vm729_vm12, %v1899_v21, %v2203_v20 }
 0x938   : > { %v2211_v39 = vpop.permute.xlu1 %2210 }
 0x939   : > { %v2213_v35 = vunpack.i.h.bf16 %v2211_v39  ;;  %v2212_v33 = vunpack.i.l.bf16 %v2211_v39 }
 0x93b   : > { %v1901_v2 = vsel %vm627_vm11, %v2804_v6, %v2213_v35  ;;  %v1900_v29 = vsel %vm627_vm11, %v2798_v37, %v2212_v33 }
 0x940   : > { %v2216_v7 = vpop.permute.xlu1 %2215 }
 0x941   : > { %v2218_v1 = vunpack.i.h.bf16 %v2216_v7  ;;  %v2217_v23 = vunpack.i.l.bf16 %v2216_v7 }
 0x943   : > { %v1908_v61 = vsel %vm729_vm12, %v1900_v29, %v2217_v23  ;;  %v1909_v50 = vsel %vm729_vm12, %v1901_v2, %v2218_v1 }
 0x948   : > { %v2226_v8 = vpop.permute.xlu1 %2225 }
 0x949   : > { %v1722_v41 = vpop.f32.mrf.mxu0  ;;  %v2227_v6 = vunpack.i.l.bf16 %v2226_v8 }
 0x951   : > { %v1724_v36 = vpop.f32.mrf.mxu0 }
 0x952   : > { %v2204_v43 = vpack.i.bf16 %v1724_v36, %v1722_v41  ;;  %v2228_v41 = vunpack.i.h.bf16 %v2226_v8 }
 0x954   : > { %2205 = vrot.lane.b32.xlu2 %v2204_v43, %s2426_s13 }
 0x95c   : > { %2230 = vrot.lane.b32.xlu2 %v2229_v19, %s2425_s12 }
 0x964   : > { %2240 = vrot.lane.b32.xlu2 %v3221_v18, %s2424_s11  ;;  %v1903_v18 = vsel %vm627_vm11, %v2806_v40, %v2228_v41 }
 0x965   : > { %v1747_v0 = vpop.f32.mrf.mxu1 }
 0x96d   : > { %v1749_v13 = vpop.f32.mrf.mxu1 }
 0x96e   : > { %v2219_v51 = vpack.i.bf16 %v1749_v13, %v1747_v0  ;;  %v1902_v0 = vsel %vm627_vm11, %v2800_v38, %v2227_v6 }
 0x970   : > { %2220 = vrot.lane.b32.xlu0 %v2219_v51, %s2426_s13 }
 0x978   : > { %2245 = vrot.lane.b32.xlu0 %v3222_v12, %s2425_s12 }
 0x99b   : > { %v1772_v45 = vpop.f32.mrf.mxu2 }
 0x9a3   : > { %v1774_v19 = vpop.f32.mrf.mxu2 }
 0x9a4   : > { %v2234_v63 = vpack.i.bf16 %v1774_v19, %v1772_v45 }
 0x9a6   : > { %2235 = vrot.lane.b32.xlu1 %v2234_v63, %s2426_s13 }
 0x9a7   : > { %v1797_v46 = vpop.f32.mrf.mxu3 }
 0x9ae   : > { %v2206_v54 = vpop.permute.xlu2 %2205 }
 0x9af   : > { %v2208_v62 = vunpack.i.h.bf16 %v2206_v54  ;;  %v2207_v28 = vunpack.i.l.bf16 %v2206_v54  ;;  %v1799_v34 = vpop.f32.mrf.mxu3 }
 0x9b0   : > { %v2249_v14 = vpack.i.bf16 %v1799_v34, %v1797_v46 }
 0x9b1   : > { %v1915_v24 = vsel %vm1914_vm13, %v1906_v58, %v2207_v28  ;;  %v1916_v42 = vsel %vm1914_vm13, %v1907_v32, %v2208_v62  ;;  %v2257_v58 = vld [vmem:[%s3212_s6] ss:$0 sm:$0xff] }
 0x9b2   : > { %v1923_v59 = vpack.c.bf16 %v1916_v42, %v1915_v24  ;;  %2250 = vrot.lane.b32.xlu1 %v2249_v14, %s2426_s13 }
 0x9b4   : > { %2134 = vmatmul.msk.bf16.vlgmr.msra.gmra.mxu0 %vm331_vm0, %v1923_v59 }
 0x9b6   : > { %v2231_v25 = vpop.permute.xlu2 %2230 }
 0x9b7   : > { %v2233_v36 = vunpack.i.h.bf16 %v2231_v25  ;;  %v2232_v43 = vunpack.i.l.bf16 %v2231_v25 }
 0x9b9   : > { %v1910_v12 = vsel %vm729_vm12, %v1902_v0, %v2232_v43  ;;  %v1911_v48 = vsel %vm729_vm12, %v1903_v18, %v2233_v36 }
 0x9be   : > { %v2241_v19 = vpop.permute.xlu2 %2240 }
 0x9bf   : > { %v2243_v46 = vunpack.i.h.bf16 %v2241_v19  ;;  %v2242_v40 = vunpack.i.l.bf16 %v2241_v19 }
 0x9c1   : > { %v1905_v31 = vsel %vm627_vm11, %v2815_v52, %v2243_v46  ;;  %v1904_v54 = vsel %vm627_vm11, %v2811_v44, %v2242_v40 }
 0x9e2   : > { %v2221_v49 = vpop.permute.xlu0 %2220 }
 0x9e3   : > { %v2223_v30 = vunpack.i.h.bf16 %v2221_v49  ;;  %v2222_v60 = vunpack.i.l.bf16 %v2221_v49 }
 0x9e5   : > { %v1917_v56 = vsel %vm1914_vm13, %v1908_v61, %v2222_v60  ;;  %v1918_v57 = vsel %vm1914_vm13, %v1909_v50, %v2223_v30 }
 0x9e6   : > { %v1924_v22 = vpack.c.bf16 %v1918_v57, %v1917_v56 }
 0x9e8   : > { %2135 = vmatmul.msk.bf16.gmra.mxu0 %vm331_vm0, %v1924_v22 }
 0x9ea   : > { %v2246_v63 = vpop.permute.xlu0 %2245 }
 0x9eb   : > { %v2248_v47 = vunpack.i.h.bf16 %v2246_v63  ;;  %v2247_v53 = vunpack.i.l.bf16 %v2246_v63 }
 0x9ed   : > { %v1913_v21 = vsel %vm729_vm12, %v1905_v31, %v2248_v47  ;;  %v1912_v26 = vsel %vm729_vm12, %v1904_v54, %v2247_v53 }
 0xa18   : > { %v2236_v37 = vpop.permute.xlu1 %2235 }
 0xa19   : > { %v2238_v13 = vunpack.i.h.bf16 %v2236_v37  ;;  %v2237_v51 = vunpack.i.l.bf16 %v2236_v37 }
 0xa1b   : > { %v1919_v55 = vsel %vm1914_vm13, %v1910_v12, %v2237_v51  ;;  %v1920_v45 = vsel %vm1914_vm13, %v1911_v48, %v2238_v13 }
 0xa1c   : > { %v1925_v27 = vpack.c.bf16 %v1920_v45, %v1919_v55 }
 0xa1e   : > { %2136 = vmatmul.msk.bf16.gmra.mxu0 %vm331_vm0, %v1925_v27 }
 0xa24   : > { %v2251_v38 = vpop.permute.xlu1 %2250 }
 0xa25   : > { %v2253_v15 = vunpack.i.h.bf16 %v2251_v38  ;;  %v2252_v20 = vunpack.i.l.bf16 %v2251_v38 }
 0xa27   : > { %v1921_v62 = vsel %vm1914_vm13, %v1912_v26, %v2252_v20  ;;  %v1922_v28 = vsel %vm1914_vm13, %v1913_v21, %v2253_v15 }
 0xa28   : > { %v1926_v34 = vpack.c.bf16 %v1922_v28, %v1921_v62 }
 0xa2e   : > { %2137 = vmatmul.msk.bf16.gmra.mxu0 %vm331_vm0, %v1926_v34 }
 0xa31   : > { %v1968_v32 = vpop.f32.mrf.mxu0 }
 0xa32   : > { %v1969_v52 = vadd.f32 %v2257_v58, %v1968_v32 }
 0xa34   : > { %v1988_v14 = vadd.f32 %v2492_v5, %v1969_v52 }
 0xa36   : > { %v1996_v44 = vpack.c.bf16 %v1988_v14, %v1988_v14 }
 0xa38   : > { %2005 = vst.msk [vmem:[%s3178_s22] sm:$0xf] %vm2004_vm14, %v1996_v44 }
 0xa39   : > { %v1970_v24 = vpop.f32.mrf.mxu0 }
 0xa3a   : > { %v1971_v42 = vadd.f32 %v2257_v58, %v1970_v24 }
 0xa3c   : > { %v1989_v59 = vadd.f32 %v2504_v11, %v1971_v42 }
 0xa3e   : > { %v1997_v39 = vpack.c.bf16 %v1989_v59, %v1989_v59 }
 0xa40   : > { %2006 = vst.msk [vmem:[%s3178_s22 + $0x4] sm:$0xf] %vm2004_vm14, %v1997_v39 }
 0xa65   : > { %v1973_v5 = vpop.f32.mrf.mxu0 }
 0xa66   : > { %v1974_v7 = vadd.f32 %v2257_v58, %v1973_v5 }
 0xa68   : > { %v1990_v35 = vadd.f32 %v2490_v4, %v1974_v7 }
 0xa6a   : > { %v1998_v33 = vpack.c.bf16 %v1990_v35, %v1990_v35 }
 0xa6c   : > { %2007 = vst.msk [vmem:[%s3178_s22 + $0x8] sm:$0xf] %vm2004_vm14, %v1998_v33 }
 0xa6d   : > { %v1975_v1 = vpop.f32.mrf.mxu0 }
 0xa6e   : > { %v1976_v23 = vadd.f32 %v2257_v58, %v1975_v1 }
 0xa70   : > { %v1991_v49 = vadd.f32 %v2502_v10, %v1976_v23 }
 0xa72   : > { %v1999_v2 = vpack.c.bf16 %v1991_v49, %v1991_v49 }
 0xa74   : > { %2008 = vst.msk [vmem:[%s3178_s22 + $0xc] sm:$0xf] %vm2004_vm14, %v1999_v2 }
 0xa9b   : > { %v1978_v11 = vpop.f32.mrf.mxu0 }
 0xa9c   : > { %v1979_v29 = vadd.f32 %v2257_v58, %v1978_v11 }
 0xa9e   : > { %v1992_v30 = vadd.f32 %v2512_v16, %v1979_v29 }
 0xaa0   : > { %v2000_v60 = vpack.c.bf16 %v1992_v30, %v1992_v30 }
 0xaa2   : > { %2009 = vst.msk [vmem:[%s3178_s22 + $0x10] sm:$0xf] %vm2004_vm14, %v2000_v60 }
 0xaa3   : > { %v1980_v4 = vpop.f32.mrf.mxu0 }
 0xaa4   : > { %v1981_v61 = vadd.f32 %v2257_v58, %v1980_v4 }
 0xaa6   : > { %v1993_v50 = vadd.f32 %v2514_v17, %v1981_v61 }
 0xaa8   : > { %v2001_v56 = vpack.c.bf16 %v1993_v50, %v1993_v50 }
 0xaaa   : > { %2010 = vst.msk [vmem:[%s3178_s22 + $0x14] sm:$0xf] %vm2004_vm14, %v2001_v56 }
 0xaab   : > { %v1983_v10 = vpop.f32.mrf.mxu0 }
 0xaac   : > { %v1984_v57 = vadd.f32 %v2257_v58, %v1983_v10 }
 0xaae   : > { %v1994_v22 = vadd.f32 %v2488_v3, %v1984_v57 }
 0xab0   : > { %v2002_v8 = vpack.c.bf16 %v1994_v22, %v1994_v22 }
 0xab2   : > { %2011 = vst.msk [vmem:[%s3178_s22 + $0x18] sm:$0xf] %vm2004_vm14, %v2002_v8 }
 0xab3   : > { %v1985_v25 = vpop.f32.mrf.mxu0 }
 0xab4   : > { %v1986_v16 = vadd.f32 %v2257_v58, %v1985_v25 }
 0xab6   : > { %v1995_v41 = vadd.f32 %v2500_v9, %v1986_v16 }
 0xab8   : > { %v2003_v6 = vpack.c.bf16 %v1995_v41, %v1995_v41 }
 0xaba   : > { %2012 = vst.msk [vmem:[%s3178_s22 + $0x1c] sm:$0xf] %vm2004_vm14, %v2003_v6 }
 0xabb PF: > { %s18_s27 = sadd.s32 1, %s2410_s27  }
 0xabc   : > { %p15_p4 = scmp.ge.s32.totalorder %s18_s27, 4  }
 0xabe   :  { %17 = sbr.rel (!%p15_p4) target bundleno = 1 (0x1), region = 82 }

// kernel: rstb_forward.6
= control target key start
LH: loop header
LB: loop body
LE: loop exit
PB: predicated region body
PF: predicated region fallthrough
CT: control target
= control target key end

     0   :  { %s2552_s30 = smov 0   ;;  %s3382_s0 = inlined_call_operand.vmem [shape: bf16[8,16,32], index: 0, kind: input, shape index: {}]   ;;  %s3383_s1 = inlined_call_operand.vmem [shape: f32[1,32], index: 1, kind: input, shape index: {}]   ;;  %s3384_s2 = inlined_call_operand.vmem [shape: f32[1,32], index: 2, kind: input, shape index: {}]   ;;  %s3385_s3 = inlined_call_operand.vmem [shape: bf16[32,96], index: 3, kind: input, shape index: {}]   ;;  %s3386_s4 = inlined_call_operand.vmem [shape: f32[1,96], index: 4, kind: input, shape index: {}]   ;;  %s3387_s5 = inlined_call_operand.vmem [shape: bf16[32,32], index: 5, kind: input, shape index: {}]   ;;  %s3388_s6 = inlined_call_operand.vmem [shape: f32[1,32], index: 6, kind: input, shape index: {}]   ;;  %s3389_s7 = inlined_call_operand.vmem [shape: f32[4,16,16], index: 7, kind: input, shape index: {}]   ;;  %s3390_s8 = inlined_call_operand.vmem [shape: f32[4,16,16], index: 8, kind: input, shape index: {}]   ;;  %s3391_s9 = inlined_call_operand.vmem [shape: bf16[8,16,32], index: 9, kind: output, shape index: {}]  }
   0x1 LB: > { %s2138_s10 = sadd.s32 4294967295, %s2485_s30   ;;  %p2142_p0 = scmp.ge.s32.totalorder %s2485_s30, 1  ;;  %s2485_s30 = sphi %s2552_s30, %s19_s30  }
   0x2   : > { %p289_p1 = scmp.lt.s32.totalorder %s2485_s30, 3 }
   0x4   : > { %p290_p2 = pnand %p2142_p0, %p289_p1 }
   0x5   : > { %s2143_s11 = sshll.u32 (!%p290_p2), %s2138_s10, 2  ;;  %s2488_s26 = smov (!%p290_p2), 96  }
   0x6   : > { %293 = sbr.rel (%p290_p2) target bundleno = 2755 (0xac3), region = 56  ;;  %p328_p3 = scmp.lt.s32.totalorder (!%p290_p2), %s2143_s11, 7 }
   0x7   : > { %s2489_s27 = smov (!%p290_p2), 64   ;;  %s2490_s13 = smov (!%p290_p2), 88  }
   0x8   : > { %s2491_s14 = smov (!%p290_p2), 120   ;;  %s2493_s19 = smov (!%p290_p2), 80  }
   0x9   : > { %s2494_s20 = smov (!%p290_p2), 112   ;;  %s2495_s21 = smov (!%p290_p2), 48  }
   0xa   : > { %s2497_s28 = smov (!%p290_p2), 72  }
   0xb   : > { %s3401_s11 = smov (!%p328_p3, %s2143_s11), 7  ;;  %vm358_vm0 = vcmask 261120   ;;  %v2487_v20 = vmov 32.0  }
   0xc   : > { %s2207_s12 = sshll.u32 %s3401_s11, 3  ;;  %2325 = vrcp.f32 %v2487_v20 }
   0xd   : > { %s332_s15 = scalar_lea.vmem %s3382_s0, %s2207_s12  ;;  %s3354_s24 = scalar_lea.vmem %s3391_s9, %s2207_s12 }
   0xe   : > { %v2231_v0 = vld [vmem:[%s332_s15 + $0x18] sm:$0xff]   ;;  %v2229_v1 = vld [vmem:[%s332_s15 + $0x8] sm:$0xff]   ;;  %v2214_v2 = vld [vmem:[%s332_s15] sm:$0xff]  }
   0xf   : > { %v2568_v3 = vunpack.c.l.bf16 %v2231_v0  ;;  %v2570_v4 = vunpack.c.l.bf16 %v2229_v1  ;;  %v2572_v5 = vunpack.c.l.bf16 %v2214_v2  ;;  %v2580_v9 = vunpack.c.h.bf16 %v2231_v0  ;;  %v2230_v15 = vld [vmem:[%s332_s15 + $0x10] sm:$0xff]   ;;  %s2501_s15 = smov 24  }
  0x10   : > { %v2582_v10 = vunpack.c.h.bf16 %v2229_v1  ;;  %v2584_v11 = vunpack.c.h.bf16 %v2214_v2  ;;  %v2592_v16 = vunpack.c.l.bf16 %v2230_v15  ;;  %v2594_v17 = vunpack.c.h.bf16 %v2230_v15 }
  0x11   : > { %v377_v6 = vsel %vm358_vm0, %v2568_v3, 0.0  ;;  %v365_v7 = vsel %vm358_vm0, %v2570_v4, 0.0  ;;  %v359_v8 = vsel %vm358_vm0, %v2572_v5, 0.0  ;;  %v380_v12 = vsel %vm358_vm0, %v2580_v9, 0.0 }
  0x12   : > { %378 = vadd.xlane.f32.xlu2 %v377_v6  ;;  %366 = vadd.xlane.f32.xlu0 %v365_v7  ;;  %v368_v13 = vsel %vm358_vm0, %v2582_v10, 0.0  ;;  %v362_v14 = vsel %vm358_vm0, %v2584_v11, 0.0  ;;  %v371_v18 = vsel %vm358_vm0, %v2592_v16, 0.0  ;;  %v374_v19 = vsel %vm358_vm0, %v2594_v17, 0.0  ;;  %v2326_v21 = vpop.eup %2325 }
  0x13   : > { %360 = vadd.xlane.f32.xlu1 %v359_v8  ;;  %v384_v22 = vmul.f32 32.0, %v2326_v21  ;;  %vm388_vm1 = vweird.f32 %v2326_v21 }
  0x15   : > { %v385_v23 = vsub.f32 1.0, %v384_v22 }
  0x17   : > { %v386_v24 = vmul.f32 %v2326_v21, %v385_v23 }
  0x19   : > { %v387_v25 = vadd.f32 %v2326_v21, %v386_v24 }
  0x1a   : > { %381 = vadd.xlane.f32.xlu2 %v380_v12  ;;  %369 = vadd.xlane.f32.xlu0 %v368_v13  ;;  %v2210_v12 = vld [vmem:[%s3385_s3 + $0x8] sm:$0xff] }
  0x1b   : > { %363 = vadd.xlane.f32.xlu1 %v362_v14  ;;  %v2600_v26 = vsel %vm388_vm1, %v2326_v21, %v387_v25  ;;  %608 = vmatpush.bf16.msra.mxu0 %v2210_v12 }
  0x1c   : > { %2232 = vmatpush.bf16.msra.mxu1 %v2210_v12  ;;  %2234 = vmatpush.bf16.msra.mxu3 %v2210_v12 }
  0x1d   : > { %2233 = vmatpush.bf16.msra.mxu2 %v2210_v12 }
  0x22   : > { %372 = vadd.xlane.f32.xlu0 %v371_v18  ;;  %v2209_v18 = vld [vmem:[%s3385_s3] sm:$0xff] }
  0x23   : > { %375 = vadd.xlane.f32.xlu1 %v374_v19  ;;  %609 = vmatpush.bf16.msra.mxu0 %v2209_v18 }
  0x24   : > { %2235 = vmatpush.bf16.msra.mxu1 %v2209_v18  ;;  %2237 = vmatpush.bf16.msra.mxu3 %v2209_v18 }
  0x25   : > { %2236 = vmatpush.bf16.msra.mxu2 %v2209_v18 }
  0x85   : > { %v379_v27 = vpop.xlane.xlu2 %378  ;;  %v367_v28 = vpop.xlane.xlu0 %366 }
  0x86   : > { %v392_v29 = vmul.f32 %v2600_v26, %v367_v28  ;;  %v361_v30 = vpop.xlane.xlu1 %360  ;;  %v396_v40 = vmul.f32 %v2600_v26, %v379_v27 }
  0x87   : > { %v390_v31 = vmul.f32 %v2600_v26, %v361_v30 }
  0x88   : > { %v2605_v32 = vsub.f32 %v2570_v4, %v392_v29  ;;  %v2630_v48 = vsub.f32 %v2568_v3, %v396_v40 }
  0x89   : > { %v2608_v33 = vsub.f32 %v2572_v5, %v390_v31 }
  0x8a   : > { %v408_v34 = vmul.f32 %v2605_v32, %v2605_v32  ;;  %v412_v57 = vmul.f32 %v2630_v48, %v2630_v48 }
  0x8b   : > { %v406_v35 = vmul.f32 %v2608_v33, %v2608_v33 }
  0x8c   : > { %v420_v36 = vsel %vm358_vm0, %v408_v34, 0.0  ;;  %v432_v61 = vsel %vm358_vm0, %v412_v57, 0.0 }
  0x8d   : > { %v382_v37 = vpop.xlane.xlu2 %381  ;;  %421 = vadd.xlane.f32.xlu2 %v420_v36  ;;  %v370_v38 = vpop.xlane.xlu0 %369  ;;  %v414_v39 = vsel %vm358_vm0, %v406_v35, 0.0 }
  0x8e   : > { %v397_v41 = vmul.f32 %v2600_v26, %v382_v37  ;;  %v393_v42 = vmul.f32 %v2600_v26, %v370_v38  ;;  %415 = vadd.xlane.f32.xlu1 %v414_v39  ;;  %v364_v43 = vpop.xlane.xlu1 %363 }
  0x8f   : > { %v391_v44 = vmul.f32 %v2600_v26, %v364_v43 }
  0x90   : > { %v2621_v45 = vsub.f32 %v2580_v9, %v397_v41  ;;  %v2624_v46 = vsub.f32 %v2582_v10, %v393_v42 }
  0x91   : > { %v2627_v47 = vsub.f32 %v2584_v11, %v391_v44 }
  0x92   : > { %v409_v49 = vmul.f32 %v2624_v46, %v2624_v46  ;;  %v413_v50 = vmul.f32 %v2621_v45, %v2621_v45 }
  0x93   : > { %v407_v51 = vmul.f32 %v2627_v47, %v2627_v47 }
  0x94   : > { %v423_v52 = vsel %vm358_vm0, %v409_v49, 0.0  ;;  %v435_v53 = vsel %vm358_vm0, %v413_v50, 0.0 }
  0x95   : > { %424 = vadd.xlane.f32.xlu0 %v423_v52  ;;  %v373_v54 = vpop.xlane.xlu0 %372  ;;  %v417_v55 = vsel %vm358_vm0, %v407_v51, 0.0 }
  0x96   : > { %v394_v56 = vmul.f32 %v2600_v26, %v373_v54  ;;  %436 = vadd.xlane.f32.xlu1 %v435_v53  ;;  %418 = vadd.xlane.f32.xlu2 %v417_v55  ;;  %v376_v58 = vpop.xlane.xlu1 %375 }
  0x97   : > { %v395_v59 = vmul.f32 %v2600_v26, %v376_v58 }
  0x98   : > { %v2646_v60 = vsub.f32 %v2592_v16, %v394_v56 }
  0x99   : > { %v2652_v63 = vsub.f32 %v2594_v17, %v395_v59 }
  0x9a   : > { %v410_v62 = vmul.f32 %v2646_v60, %v2646_v60 }
  0x9b   : > { %v411_v1 = vmul.f32 %v2652_v63, %v2652_v63 }
  0x9c   : > { %v426_v0 = vsel %vm358_vm0, %v410_v62, 0.0 }
  0x9d   : > { %433 = vadd.xlane.f32.xlu0 %v432_v61  ;;  %v429_v2 = vsel %vm358_vm0, %v411_v1, 0.0 }
  0x9e   : > { %427 = vadd.xlane.f32.xlu2 %v426_v0 }
  0xa5   : > { %430 = vadd.xlane.f32.xlu0 %v429_v2 }
 0x100   : > { %v422_v6 = vpop.xlane.xlu2 %421 }
 0x101   : > { %v440_v7 = vmul.f32 %v422_v6, %v2600_v26  ;;  %v416_v8 = vpop.xlane.xlu1 %415 }
 0x102   : > { %v438_v13 = vmul.f32 %v416_v8, %v2600_v26 }
 0x103   : > { %v448_v14 = vadd.f32 1e-05, %v440_v7 }
 0x104   : > { %v446_v15 = vadd.f32 1e-05, %v438_v13 }
 0x105   : > { %2327 = vrsqrt.f32 %v448_v14  ;;  %vm480_vm4 = vweird.f32 %v448_v14 }
 0x106   : > { %2329 = vrsqrt.f32 %v446_v15  ;;  %vm460_vm6 = vweird.f32 %v446_v15 }
 0x108   : > { %v425_v19 = vpop.xlane.xlu0 %424 }
 0x109   : > { %v441_v20 = vmul.f32 %v425_v19, %v2600_v26  ;;  %v419_v21 = vpop.xlane.xlu2 %418  ;;  %v437_v22 = vpop.xlane.xlu1 %436  ;;  %v2703_v19 = vld [vmem:[%s3383_s1] ss:$0 sm:$0xff] }
 0x10a   : > { %v439_v23 = vmul.f32 %v419_v21, %v2600_v26  ;;  %v445_v24 = vmul.f32 %v437_v22, %v2600_v26 }
 0x10b   : > { %v2328_v25 = vpop.eup %2327  ;;  %v449_v27 = vadd.f32 1e-05, %v441_v20 }
 0x10c   : > { %v2330_v28 = vpop.eup %2329  ;;  %v475_v29 = vmul.f32 %v2328_v25, %v448_v14  ;;  %v2669_v30 = vadd.f32 1e-05, %v439_v23  ;;  %v453_v31 = vadd.f32 1e-05, %v445_v24  ;;  %vm481_vm2 = vweird.f32 %v2328_v25 }
 0x10d   : > { %v455_v34 = vmul.f32 %v2330_v28, %v446_v15  ;;  %2331 = vrsqrt.f32 %v449_v27  ;;  %vm461_vm3 = vweird.f32 %v2330_v28  ;;  %vm2682_vm5 = vmor %vm480_vm4, %vm481_vm2  ;;  %vm490_vm8 = vweird.f32 %v449_v27 }
 0x10e   : > { %v476_v35 = vmul.f32 %v2328_v25, %v475_v29  ;;  %2333 = vrsqrt.f32 %v2669_v30  ;;  %vm2689_vm7 = vmor %vm460_vm6, %vm461_vm3  ;;  %vm530_vm10 = vweird.f32 %v453_v31  ;;  %vm470_vm14 = vweird.f32 %v2669_v30 }
 0x10f   : > { %v456_v36 = vmul.f32 %v2330_v28, %v455_v34  ;;  %2335 = vrsqrt.f32 %v453_v31 }
 0x110   : > { %v477_v37 = vmul.f32 0.5, %v476_v35  ;;  %v434_v38 = vpop.xlane.xlu0 %433  ;;  %v2322_v35 = vld [vmem:[%s3384_s2] ss:$0 sm:$0xff] }
 0x111   : > { %v457_v39 = vmul.f32 0.5, %v456_v36  ;;  %v444_v40 = vmul.f32 %v434_v38, %v2600_v26  ;;  %v428_v41 = vpop.xlane.xlu2 %427 }
 0x112   : > { %v478_v42 = vsub.f32 1.5, %v477_v37  ;;  %v442_v43 = vmul.f32 %v428_v41, %v2600_v26 }
 0x113   : > { %v2332_v44 = vpop.eup %2331  ;;  %v458_v49 = vsub.f32 1.5, %v457_v39  ;;  %v2674_v50 = vadd.f32 1e-05, %v444_v40 }
 0x114   : > { %v2334_v51 = vpop.eup %2333  ;;  %v479_v52 = vmul.f32 %v2328_v25, %v478_v42  ;;  %v485_v53 = vmul.f32 %v2332_v44, %v449_v27  ;;  %v2676_v54 = vadd.f32 1e-05, %v442_v43  ;;  %vm491_vm9 = vweird.f32 %v2332_v44 }
 0x115   : > { %v2678_v55 = vpop.eup %2335  ;;  %v459_v56 = vmul.f32 %v2330_v28, %v458_v49  ;;  %v465_v57 = vmul.f32 %v2334_v51, %v2669_v30  ;;  %2337 = vrsqrt.f32 %v2674_v50  ;;  %vm471_vm12 = vweird.f32 %v2334_v51  ;;  %vm492_vm13 = vmor %vm490_vm8, %vm491_vm9 }
 0x116   : > { %v486_v59 = vmul.f32 %v2332_v44, %v485_v53  ;;  %v525_v61 = vmul.f32 %v2678_v55, %v453_v31  ;;  %v483_v62 = vsel %vm2682_vm5, %v2328_v25, %v479_v52  ;;  %2339 = vrsqrt.f32 %v2676_v54  ;;  %vm472_vm2 = vmor %vm470_vm14, %vm471_vm12 }
 0x117   : > { %v466_v1 = vmul.f32 %v2334_v51, %v465_v57  ;;  %v463_v2 = vsel %vm2689_vm7, %v2330_v28, %v459_v56  ;;  %v536_v14 = vmul.f32 %v483_v62, %v2605_v32  ;;  %vm531_vm11 = vweird.f32 %v2678_v55 }
 0x118   : > { %v487_v6 = vmul.f32 0.5, %v486_v59  ;;  %v526_v7 = vmul.f32 %v2678_v55, %v525_v61  ;;  %v431_v8 = vpop.xlane.xlu0 %430  ;;  %v534_v23 = vmul.f32 %v463_v2, %v2608_v33  ;;  %vm2711_vm15 = vmor %vm530_vm10, %vm531_vm11  ;;  %vm520_vm1 = vweird.f32 %v2674_v50 }
 0x119   : > { %v467_v12 = vmul.f32 0.5, %v466_v1  ;;  %v443_v13 = vmul.f32 %v431_v8, %v2600_v26  ;;  %v548_v30 = vmul.f32 %v2703_v19, %v536_v14  ;;  %vm500_vm4 = vweird.f32 %v2676_v54 }
 0x11a   : > { %v488_v15 = vsub.f32 1.5, %v487_v6  ;;  %v527_v18 = vmul.f32 0.5, %v526_v7  ;;  %v546_v38 = vmul.f32 %v2703_v19, %v534_v23  ;;  %vm662_vm11 = vcmask 64512  }
 0x11b   : > { %v2338_v20 = vpop.eup %2337  ;;  %v468_v21 = vsub.f32 1.5, %v467_v12  ;;  %v451_v22 = vadd.f32 1e-05, %v443_v13  ;;  %v560_v49 = vadd.f32 %v2322_v35, %v548_v30  ;;  %vm772_vm12 = vcmask 130048  }
 0x11c   : > { %v489_v24 = vmul.f32 %v2332_v44, %v488_v15  ;;  %v528_v26 = vsub.f32 1.5, %v527_v18  ;;  %v515_v32 = vmul.f32 %v2338_v20, %v2674_v50  ;;  %v2340_v29 = vpop.eup %2339  ;;  %vm521_vm3 = vweird.f32 %v2338_v20 }
 0x11d   : > { %v469_v25 = vmul.f32 %v2334_v51, %v468_v21  ;;  %2341 = vrsqrt.f32 %v451_v22  ;;  %v495_v37 = vmul.f32 %v2340_v29, %v2676_v54  ;;  %vm522_vm5 = vmor %vm520_vm1, %vm521_vm3  ;;  %vm501_vm6 = vweird.f32 %v2340_v29 }
 0x11e   : > { %v493_v33 = vsel %vm492_vm13, %v2332_v44, %v489_v24  ;;  %v529_v27 = vmul.f32 %v2678_v55, %v528_v26  ;;  %v516_v34 = vmul.f32 %v2338_v20, %v515_v32  ;;  %v558_v57 = vadd.f32 %v2322_v35, %v546_v38  ;;  %vm502_vm7 = vmor %vm500_vm4, %vm501_vm6  ;;  %v2323_v32 = vld [vmem:[%s3386_s4] ss:$0 sm:$0xff] }
 0x11f   : > { %v537_v31 = vmul.f32 %v493_v33, %v2624_v46  ;;  %v473_v36 = vsel %vm472_vm2, %v2334_v51, %v469_v25  ;;  %v496_v42 = vmul.f32 %v2340_v29, %v495_v37  ;;  %vm510_vm8 = vweird.f32 %v451_v22 }
 0x120   : > { %v535_v39 = vmul.f32 %v473_v36, %v2627_v47  ;;  %v533_v40 = vsel %vm2711_vm15, %v2678_v55, %v529_v27  ;;  %v517_v41 = vmul.f32 0.5, %v516_v34  ;;  %vm1981_vm13 = vcmask 195584  }
 0x121   : > { %v549_v43 = vmul.f32 %v2703_v19, %v537_v31  ;;  %v497_v47 = vmul.f32 0.5, %v496_v42  ;;  %v541_v53 = vmul.f32 %v533_v40, %v2621_v45  ;;  %vm2071_vm14 = vcmask 257024  }
 0x122   : > { %v518_v44 = vsub.f32 1.5, %v517_v41  ;;  %v547_v46 = vmul.f32 %v2703_v19, %v535_v39 }
 0x123   : > { %v2342_v51 = vpop.eup %2341  ;;  %v561_v52 = vadd.f32 %v2322_v35, %v549_v43  ;;  %v498_v59 = vsub.f32 1.5, %v497_v47  ;;  %v553_v6 = vmul.f32 %v2703_v19, %v541_v53 }
 0x124   : > { %v519_v55 = vmul.f32 %v2338_v20, %v518_v44  ;;  %v505_v56 = vmul.f32 %v2342_v51, %v451_v22  ;;  %v559_v58 = vadd.f32 %v2322_v35, %v547_v46  ;;  %vm511_vm9 = vweird.f32 %v2342_v51 }
 0x125   : > { %v567_v61 = vpack.c.bf16 %v561_v52, %v560_v49  ;;  %v499_v2 = vmul.f32 %v2340_v29, %v498_v59  ;;  %vm512_vm10 = vmor %vm510_vm8, %vm511_vm9  ;;  %v565_v14 = vadd.f32 %v2322_v35, %v553_v6 }
 0x126   : > { %v523_v62 = vsel %vm522_vm5, %v2338_v20, %v519_v55  ;;  %v506_v0 = vmul.f32 %v2342_v51, %v505_v56  ;;  %v566_v1 = vpack.c.bf16 %v559_v58, %v558_v57 }
 0x127   : > { %v540_v50 = vmul.f32 %v523_v62, %v2630_v48  ;;  %2158 = vmatmul.msk.bf16.vlgmr.msra.gmra.mxu1 %vm358_vm0, %v567_v61  ;;  %v503_v7 = vsel %vm502_vm7, %v2340_v29, %v499_v2 }
 0x128   : > { %v507_v45 = vmul.f32 0.5, %v506_v0  ;;  %2157 = vmatmul.msk.bf16.vlgmr.msra.gmra.mxu0 %vm358_vm0, %v566_v1  ;;  %v538_v54 = vmul.f32 %v503_v7, %v2646_v60 }
 0x129   : > { %v552_v8 = vmul.f32 %v2703_v19, %v540_v50 }
 0x12a   : > { %v508_v12 = vsub.f32 1.5, %v507_v45  ;;  %v550_v21 = vmul.f32 %v2703_v19, %v538_v54 }
 0x12b   : > { %v564_v13 = vadd.f32 %v2322_v35, %v552_v8 }
 0x12c   : > { %v509_v48 = vmul.f32 %v2342_v51, %v508_v12  ;;  %v562_v23 = vadd.f32 %v2322_v35, %v550_v21 }
 0x12d   : > { %v569_v15 = vpack.c.bf16 %v565_v14, %v564_v13  ;;  %v631_v14 = vld [vmem:[%s3389_s7] sm:$0xff] }
 0x12e   : > { %v513_v18 = vsel %vm512_vm10, %v2342_v51, %v509_v48 }
 0x12f   : > { %v539_v20 = vmul.f32 %v513_v18, %v2652_v63  ;;  %2160 = vmatmul.msk.bf16.vlgmr.msra.gmra.mxu3 %vm358_vm0, %v569_v15  ;;  %v2782_v15 = vld [vmem:[%s3390_s8] sm:$0xff] }
 0x131   : > { %v551_v22 = vmul.f32 %v2703_v19, %v539_v20 }
 0x133   : > { %v563_v24 = vadd.f32 %v2322_v35, %v551_v22  ;;  %v632_v22 = vld [vmem:[%s3389_s7 + $0x8] sm:$0xff] }
 0x135   : > { %v568_v26 = vpack.c.bf16 %v563_v24, %v562_v23  ;;  %v2792_v24 = vld [vmem:[%s3390_s8 + $0x8] sm:$0xff] }
 0x137   : > { %2159 = vmatmul.msk.bf16.vlgmr.msra.gmra.mxu2 %vm358_vm0, %v568_v26 }
 0x1a4   : > { %v616_v60 = vpop.f32.mrf.mxu1 }
 0x1a5   : > { %v611_v25 = vpop.f32.mrf.mxu0  ;;  %v617_v28 = vadd.f32 %v2323_v32, %v616_v60 }
 0x1a6   : > { %v612_v29 = vadd.f32 %v2323_v32, %v611_v25 }
 0x1a7   : > { %v649_v33 = vpack.c.bf16 %v617_v28, %v617_v28  ;;  %v2799_v28 = vld [vmem:[%s3390_s8 + $0x20] sm:$0xff] }
 0x1a8   : > { %v647_v30 = vpack.c.bf16 %v612_v29, %v612_v29 }
 0x1a9   : > { %v685_v35 = vunpack.c.l.b16 %v649_v33  ;;  %v2804_v33 = vld [vmem:[%s3390_s8 + $0x10] sm:$0xff] }
 0x1aa   : > { %v657_v38 = vunpack.c.l.b16 %v647_v30 }
 0x1ac   : > { %v618_v63 = vpop.f32.mrf.mxu1 }
 0x1ad   : > { %v613_v27 = vpop.f32.mrf.mxu0  ;;  %v619_v34 = vadd.f32 %v2323_v32, %v618_v63 }
 0x1ae   : > { %v614_v31 = vadd.f32 %v2323_v32, %v613_v27 }
 0x1af   : > { %v650_v19 = vpack.c.bf16 %v619_v34, %v619_v34 }
 0x1b0   : > { %v648_v36 = vpack.c.bf16 %v614_v31, %v614_v31 }
 0x1b1   : > { %v686_v37 = vunpack.c.l.b16 %v650_v19 }
 0x1b2   : > { %v658_v39 = vunpack.c.l.b16 %v648_v36  ;;  %v626_v40 = vpop.f32.mrf.mxu3 }
 0x1b3   : > { %v2750_v41 = vpack.c.b16 %v686_v37, %v685_v35  ;;  %v627_v43 = vadd.f32 %v2323_v32, %v626_v40  ;;  %v2816_v37 = vld [vmem:[%s3390_s8 + $0x30] sm:$0xff] }
 0x1b4   : > { %v2752_v42 = vpack.c.b16 %v658_v39, %v657_v38  ;;  %v2821_v38 = vld [vmem:[%s3390_s8 + $0x18] sm:$0xff] }
 0x1b5   : > { %688 = vrot.lane.b32.xlu1 %v2750_v41, %s2488_s26  ;;  %v653_v49 = vpack.c.bf16 %v627_v43, %v627_v43 }
 0x1b6   : > { %660 = vrot.lane.b32.xlu2 %v2752_v42, %s2488_s26 }
 0x1b7   : > { %v739_v52 = vunpack.c.l.b16 %v653_v49 }
 0x1ba   : > { %v621_v44 = vpop.f32.mrf.mxu2  ;;  %v628_v46 = vpop.f32.mrf.mxu3 }
 0x1bb   : > { %v629_v51 = vadd.f32 %v2323_v32, %v628_v46  ;;  %v622_v53 = vadd.f32 %v2323_v32, %v621_v44 }
 0x1bd   : > { %v654_v47 = vpack.c.bf16 %v629_v51, %v629_v51  ;;  %874 = vrot.lane.b32.xlu1 %v2752_v42, %s2489_s27  ;;  %v651_v58 = vpack.c.bf16 %v622_v53, %v622_v53 }
 0x1bf   : > { %v740_v55 = vunpack.c.l.b16 %v654_v47  ;;  %v712_v62 = vunpack.c.l.b16 %v651_v58 }
 0x1c1   : > { %v2758_v56 = vpack.c.b16 %v740_v55, %v739_v52  ;;  %v2833_v52 = vld [vmem:[%s3390_s8 + $0x28] sm:$0xff]  ;;  %v2838_v55 = vld [vmem:[%s3390_s8 + $0x38] sm:$0xff] }
 0x1c2   : > { %v623_v57 = vpop.f32.mrf.mxu2 }
 0x1c3   : > { %v624_v59 = vadd.f32 %v2323_v32, %v623_v57  ;;  %742 = vrot.lane.b32.xlu0 %v2758_v56, %s2488_s26 }
 0x1c5   : > { %v652_v61 = vpack.c.bf16 %v624_v59, %v624_v59 }
 0x1c7   : > { %v713_v0 = vunpack.c.l.b16 %v652_v61 }
 0x1c9   : > { %v2761_v1 = vpack.c.b16 %v713_v0, %v712_v62 }
 0x1cb   : > { %715 = vrot.lane.b32.xlu2 %v2761_v1, %s2488_s26  ;;  %s2496_s26 = smov 104  }
 0x210   : > { %v661_v50 = vpop.permute.xlu2 %660 }
 0x211   : > { %v667_v2 = vsel %vm662_vm11, %v661_v50, 0 }
 0x212   : > { %676 = vmatpush.bf16.xpose.msrb.mxu1 %v667_v2 }
 0x219   : > { %2161 = vmatmul.msk.bf16.vlgmr.msrb.gmra.mxu1 %vm662_vm11, %v2752_v42 }
 0x225   : > { %v716_v6 = vpop.permute.xlu2 %715 }
 0x226   : > { %v721_v45 = vsel %vm662_vm11, %v716_v6, 0 }
 0x227   : > { %730 = vmatpush.bf16.xpose.msrb.mxu3 %v721_v45  ;;  %v689_v7 = vpop.permute.xlu1 %688 }
 0x228   : > { %v694_v8 = vsel %vm662_vm11, %v689_v7, 0 }
 0x229   : > { %703 = vmatpush.bf16.xpose.msrb.mxu2 %v694_v8 }
 0x22e   : > { %2163 = vmatmul.msk.bf16.vlgmr.msrb.gmra.mxu3 %vm662_vm11, %v2761_v1 }
 0x22f   : > { %v875_v12 = vpop.permute.xlu1 %874 }
 0x230   : > { %2162 = vmatmul.msk.bf16.vlgmr.msrb.gmra.mxu2 %vm662_vm11, %v2750_v41 }
 0x231   : > { %887 = vmatpush.bf16.msra.mxu2 %v875_v12 }
 0x235   : > { %v743_v54 = vpop.permute.xlu0 %742 }
 0x236   : > { %v748_v13 = vsel %vm662_vm11, %v743_v54, 0 }
 0x237   : > { %757 = vmatpush.bf16.xpose.msra.mxu1 %v748_v13 }
 0x23e   : > { %2164 = vmatmul.msk.bf16.vlgmr.msra.gmra.mxu1 %vm662_vm11, %v2758_v56 }
 0x296   : > { %v678_v48 = vpop.f32.mrf.mxu1 }
 0x297   : > { %v679_v18 = vadd.f32 %v678_v48, %v631_v14 }
 0x299   : > { %v764_v20 = vadd.f32 %v679_v18, %v2782_v15 }
 0x29b   : > { %v773_v21 = vsel %vm772_vm12, %v764_v20, -inf }
 0x29c   : > { %774 = vmax.xlane.f32.xlu1 %v773_v21 }
 0x29e   : > { %v680_v23 = vpop.f32.mrf.mxu1 }
 0x29f   : > { %v681_v26 = vadd.f32 %v680_v23, %v632_v22 }
 0x2a1   : > { %v765_v60 = vadd.f32 %v681_v26, %v2792_v24 }
 0x2a3   : > { %v776_v32 = vsel %vm772_vm12, %v765_v60, -inf }
 0x2a4   : > { %777 = vmax.xlane.f32.xlu0 %v776_v32 }
 0x2b1   : > { %v732_v25 = vpop.f32.mrf.mxu3 }
 0x2b2   : > { %v733_v29 = vadd.f32 %v732_v25, %v631_v14 }
 0x2b3   : > { %v705_v63 = vpop.f32.mrf.mxu2 }
 0x2b4   : > { %v706_v27 = vadd.f32 %v705_v63, %v631_v14  ;;  %v2807_v34 = vadd.f32 %v733_v29, %v2799_v28 }
 0x2b6   : > { %v785_v30 = vsel %vm772_vm12, %v2807_v34, -inf  ;;  %v766_v31 = vadd.f32 %v706_v27, %v2804_v33 }
 0x2b7   : > { %786 = vmax.xlane.f32.xlu1 %v785_v30 }
 0x2b8   : > { %v779_v19 = vsel %vm772_vm12, %v766_v31, -inf }
 0x2b9   : > { %780 = vmax.xlane.f32.xlu2 %v779_v19  ;;  %v734_v43 = vpop.f32.mrf.mxu3 }
 0x2ba   : > { %v735_v49 = vadd.f32 %v734_v43, %v632_v22 }
 0x2bb   : > { %v707_v36 = vpop.f32.mrf.mxu2  ;;  %v759_v35 = vpop.f32.mrf.mxu1 }
 0x2bc   : > { %v708_v39 = vadd.f32 %v707_v36, %v632_v22  ;;  %v760_v40 = vadd.f32 %v759_v35, %v631_v14  ;;  %v769_v58 = vadd.f32 %v735_v49, %v2833_v52 }
 0x2be   : > { %v2824_v44 = vadd.f32 %v760_v40, %v2816_v37  ;;  %v767_v46 = vadd.f32 %v708_v39, %v2821_v38  ;;  %v788_v61 = vsel %vm772_vm12, %v769_v58, -inf }
 0x2c0   : > { %v791_v51 = vsel %vm772_vm12, %v2824_v44, -inf  ;;  %v782_v47 = vsel %vm772_vm12, %v767_v46, -inf }
 0x2c1   : > { %792 = vmax.xlane.f32.xlu0 %v791_v51  ;;  %783 = vmax.xlane.f32.xlu1 %v782_v47 }
 0x2c3   : > { %v761_v53 = vpop.f32.mrf.mxu1 }
 0x2c4   : > { %v762_v57 = vadd.f32 %v761_v53, %v632_v22 }
 0x2c6   : > { %v2842_v59 = vadd.f32 %v762_v57, %v2838_v55 }
 0x2c8   : > { %v794_v62 = vsel %vm772_vm12, %v2842_v59, -inf }
 0x2c9   : > { %789 = vmax.xlane.f32.xlu0 %v788_v61  ;;  %795 = vmax.xlane.f32.xlu2 %v794_v62 }
 0x2da   : > { %971 = vrot.lane.b32.xlu1 %v2752_v42, %s2490_s13 }
 0x2e2   : > { %969 = vrot.lane.b32.xlu1 %v2752_v42, %s2491_s14 }
 0x2ea   : > { %924 = vrot.lane.b32.xlu1 %v2761_v1, %s2489_s27 }
 0x30f   : > { %v775_v0 = vpop.xlane.xlu1 %774 }
 0x310   : > { %v797_v50 = vsub.f32 %v764_v20, %v775_v0 }
 0x312   : > { %v805_v2 = vmul.f32 1.442695, %v797_v50 }
 0x314   : > { %2343 = vpow2.f32 %v805_v2 }
 0x317   : > { %v778_v6 = vpop.xlane.xlu0 %777 }
 0x318   : > { %v798_v45 = vsub.f32 %v765_v60, %v778_v6 }
 0x31a   : > { %v2853_v7 = vpop.eup %2343  ;;  %v807_v8 = vmul.f32 1.442695, %v798_v45 }
 0x31b   : > { %v821_v12 = vsel %vm772_vm12, %v2853_v7, 0.0 }
 0x31c   : > { %2345 = vpow2.f32 %v807_v8  ;;  %822 = vadd.xlane.f32.xlu2 %v821_v12 }
 0x322   : > { %v2857_v54 = vpop.eup %2345 }
 0x323   : > { %v824_v13 = vsel %vm772_vm12, %v2857_v54, 0.0 }
 0x324   : > { %825 = vadd.xlane.f32.xlu1 %v824_v13 }
 0x32a   : > { %v787_v22 = vpop.xlane.xlu1 %786 }
 0x32b   : > { %v801_v60 = vsub.f32 %v2807_v34, %v787_v22 }
 0x32c   : > { %v781_v14 = vpop.xlane.xlu2 %780 }
 0x32d   : > { %v799_v48 = vsub.f32 %v766_v31, %v781_v14  ;;  %v813_v25 = vmul.f32 1.442695, %v801_v60 }
 0x32f   : > { %v809_v18 = vmul.f32 1.442695, %v799_v48 }
 0x331   : > { %2347 = vpow2.f32 %v809_v18 }
 0x332   : > { %2349 = vpow2.f32 %v813_v25 }
 0x334   : > { %949 = vrot.lane.b32.xlu2 %v2758_v56, %s2489_s27  ;;  %v784_v23 = vpop.xlane.xlu1 %783  ;;  %v793_v29 = vpop.xlane.xlu0 %792 }
 0x335   : > { %v800_v63 = vsub.f32 %v767_v46, %v784_v23  ;;  %v803_v36 = vsub.f32 %v2824_v44, %v793_v29 }
 0x337   : > { %v2863_v20 = vpop.eup %2347  ;;  %v811_v30 = vmul.f32 1.442695, %v800_v63  ;;  %v817_v34 = vmul.f32 1.442695, %v803_v36 }
 0x338   : > { %v827_v21 = vsel %vm772_vm12, %v2863_v20, 0.0  ;;  %v2882_v31 = vpop.eup %2349 }
 0x339   : > { %828 = vadd.xlane.f32.xlu0 %v827_v21  ;;  %2351 = vpow2.f32 %v811_v30  ;;  %v833_v35 = vsel %vm772_vm12, %v2882_v31, 0.0 }
 0x33a   : > { %2353 = vpow2.f32 %v817_v34 }
 0x33c   : > { %995 = vrot.lane.b32.xlu2 %v2750_v41, %s2490_s13  ;;  %v790_v19 = vpop.xlane.xlu0 %789  ;;  %v796_v40 = vpop.xlane.xlu2 %795 }
 0x33d   : > { %1019 = vrot.lane.b32.xlu1 %v2761_v1, %s2490_s13  ;;  %v802_v39 = vsub.f32 %v769_v58, %v790_v19  ;;  %v804_v46 = vsub.f32 %v2842_v59, %v796_v40 }
 0x33f   : > { %v2352_v43 = vpop.eup %2351  ;;  %v815_v49 = vmul.f32 1.442695, %v802_v39  ;;  %v819_v47 = vmul.f32 1.442695, %v804_v46 }
 0x340   : > { %v830_v51 = vsel %vm772_vm12, %v2352_v43, 0.0  ;;  %v2889_v53 = vpop.eup %2353 }
 0x341   : > { %2355 = vpow2.f32 %v815_v49  ;;  %v839_v57 = vsel %vm772_vm12, %v2889_v53, 0.0 }
 0x342   : > { %2357 = vpow2.f32 %v819_v47 }
 0x345   : > { %1017 = vrot.lane.b32.xlu1 %v2761_v1, %s2491_s14 }
 0x347   : > { %v2891_v44 = vpop.eup %2355 }
 0x348   : > { %v836_v58 = vsel %vm772_vm12, %v2891_v44, 0.0  ;;  %v2897_v61 = vpop.eup %2357 }
 0x349   : > { %v842_v59 = vsel %vm772_vm12, %v2897_v61, 0.0 }
 0x34c   : > { %v2873_v26 = vpop.permute.xlu1 %971 }
 0x34d   : > { %1041 = vrot.lane.b32.xlu1 %v2758_v56, %s2491_s14  ;;  %899 = vrot.lane.b32.xlu0 %v2750_v41, %s2489_s27  ;;  %s2492_s27 = smov 56   ;;  %v977_v29 = vsel %vm662_vm11, %v2873_v26, 0 }
 0x354   : > { %v2880_v32 = vpop.permute.xlu1 %969 }
 0x35c   : > { %v925_v27 = vpop.permute.xlu1 %924 }
 0x35d   : > { %937 = vmatpush.bf16.msrb.mxu1 %v925_v27 }
 0x365   : > { %834 = vadd.xlane.f32.xlu2 %v833_v35 }
 0x36d   : > { %831 = vadd.xlane.f32.xlu2 %v830_v51 }
 0x375   : > { %840 = vadd.xlane.f32.xlu2 %v839_v57 }
 0x377   : > { %837 = vadd.xlane.f32.xlu0 %v836_v58 }
 0x37d   : > { %843 = vadd.xlane.f32.xlu2 %v842_v59 }
 0x38b   : > { %1043 = vrot.lane.b32.xlu0 %v2758_v56, %s2490_s13  ;;  %s2498_s13 = smov 40  }
 0x38f   : > { %v823_v62 = vpop.xlane.xlu2 %822 }
 0x390   : > { %2359 = vrcp.f32 %v823_v62 }
 0x393   : > { %1174 = vrot.lane.b32.xlu0 %v2752_v42, %s2492_s27 }
 0x395   : > { %993 = vrot.lane.b32.xlu2 %v2750_v41, %s2491_s14  ;;  %s2499_s14 = smov 8  }
 0x396   : > { %v2360_v2 = vpop.eup %2359 }
 0x397   : > { %v950_v0 = vpop.permute.xlu2 %949  ;;  %v826_v50 = vpop.xlane.xlu1 %825  ;;  %v853_v6 = vmul.f32 %v2360_v2, %v2853_v7 }
 0x398   : > { %2361 = vrcp.f32 %v826_v50  ;;  %962 = vmatpush.bf16.msrb.mxu2 %v950_v0 }
 0x399   : > { %v861_v8 = vpack.c.bf16 %v853_v6, %v853_v6 }
 0x39b   : > { %v871_v18 = vunpack.c.l.b16 %v861_v8 }
 0x39e   : > { %v2362_v45 = vpop.eup %2361 }
 0x39f   : > { %v854_v12 = vmul.f32 %v2362_v45, %v2857_v54  ;;  %v996_v13 = vpop.permute.xlu2 %995 }
 0x3a0   : > { %v1001_v14 = vsel %vm662_vm11, %v996_v13, 0 }
 0x3a1   : > { %v862_v48 = vpack.c.bf16 %v854_v12, %v854_v12  ;;  %1010 = vmatpush.bf16.xpose.msra.mxu1 %v1001_v14 }
 0x3a3   : > { %v872_v21 = vunpack.c.l.b16 %v862_v48 }
 0x3a5   : > { %v873_v22 = vpack.c.b16 %v872_v21, %v871_v18 }
 0x3a7   : > { %2165 = vmatmul.msk.bf16.vlgmr.msra.gmra.mxu2 %vm772_vm12, %v873_v22 }
 0x3ac   : > { %v829_v25 = vpop.xlane.xlu0 %828 }
 0x3ad   : > { %2363 = vrcp.f32 %v829_v25 }
 0x3af   : > { %v1020_v23 = vpop.permute.xlu1 %1019 }
 0x3b0   : > { %v1025_v60 = vsel %vm662_vm11, %v1020_v23, 0 }
 0x3b1   : > { %1034 = vmatpush.bf16.xpose.msra.mxu2 %v1025_v60 }
 0x3b3   : > { %v2364_v27 = vpop.eup %2363 }
 0x3b4   : > { %v855_v30 = vmul.f32 %v2364_v27, %v2863_v20 }
 0x3b6   : > { %v863_v36 = vpack.c.bf16 %v855_v30, %v855_v30 }
 0x3b8   : > { %v896_v26 = vunpack.c.l.b16 %v863_v36 }
 0x3bf   : > { %v900_v7 = vpop.permute.xlu0 %899 }
 0x3c0   : > { %912 = vmatpush.bf16.msra.mxu3 %v900_v7 }
 0x3c4   : > { %986 = vmatpush.bf16.xpose.msrb.mxu3 %v977_v29 }
 0x3d8   : > { %v835_v54 = vpop.xlane.xlu2 %834 }
 0x3e0   : > { %v832_v63 = vpop.xlane.xlu2 %831 }
 0x3e1   : > { %2365 = vrcp.f32 %v832_v63 }
 0x3e2   : > { %2367 = vrcp.f32 %v835_v54  ;;  %v633_v54 = vld [vmem:[%s3389_s7 + $0x10] sm:$0xff] }
 0x3e7   : > { %v2366_v19 = vpop.eup %2365 }
 0x3e8   : > { %v856_v35 = vmul.f32 %v2366_v19, %v2352_v43  ;;  %v841_v39 = vpop.xlane.xlu2 %840  ;;  %v2368_v49 = vpop.eup %2367 }
 0x3e9   : > { %2369 = vrcp.f32 %v841_v39  ;;  %v857_v51 = vmul.f32 %v2368_v49, %v2882_v31 }
 0x3ea   : > { %v864_v34 = vpack.c.bf16 %v856_v35, %v856_v35  ;;  %v838_v40 = vpop.xlane.xlu0 %837 }
 0x3eb   : > { %2371 = vrcp.f32 %v838_v40  ;;  %v865_v59 = vpack.c.bf16 %v857_v51, %v857_v51 }
 0x3ec   : > { %v897_v46 = vunpack.c.l.b16 %v864_v34  ;;  %v634_v34 = vld [vmem:[%s3389_s7 + $0x18] sm:$0xff] }
 0x3ed   : > { %v921_v50 = vunpack.c.l.b16 %v865_v59 }
 0x3ee   : > { %v898_v47 = vpack.c.b16 %v897_v46, %v896_v26 }
 0x3ef   : > { %v2370_v57 = vpop.eup %2369 }
 0x3f0   : > { %2166 = vmatmul.msk.bf16.vlgmr.msra.gmra.mxu3 %vm772_vm12, %v898_v47  ;;  %v844_v58 = vpop.xlane.xlu2 %843  ;;  %v859_v62 = vmul.f32 %v2370_v57, %v2889_v53  ;;  %v1018_v53 = vpop.permute.xlu1 %1017 }
 0x3f1   : > { %v2372_v20 = vpop.eup %2371  ;;  %2373 = vrcp.f32 %v844_v58 }
 0x3f2   : > { %v858_v43 = vmul.f32 %v2372_v20, %v2891_v44  ;;  %v867_v45 = vpack.c.bf16 %v859_v62, %v859_v62 }
 0x3f4   : > { %v866_v0 = vpack.c.bf16 %v858_v43, %v858_v43  ;;  %v946_v13 = vunpack.c.l.b16 %v867_v45 }
 0x3f6   : > { %v922_v2 = vunpack.c.l.b16 %v866_v0 }
 0x3f7   : > { %v2374_v6 = vpop.eup %2373 }
 0x3f8   : > { %v923_v8 = vpack.c.b16 %v922_v2, %v921_v50  ;;  %v860_v31 = vmul.f32 %v2374_v6, %v2897_v61  ;;  %v994_v22 = vpop.permute.xlu2 %993  ;;  %v1042_v61 = vpop.permute.xlu1 %1041 }
 0x3fa   : > { %v868_v12 = vpack.c.bf16 %v860_v31, %v860_v31  ;;  %2167 = vmatmul.msk.bf16.vlgmr.msrb.gmra.mxu1 %vm772_vm12, %v923_v8 }
 0x3fc   : > { %v947_v14 = vunpack.c.l.b16 %v868_v12 }
 0x3fd   : > { %v1044_v48 = vpop.permute.xlu0 %1043 }
 0x3fe   : > { %v948_v18 = vpack.c.b16 %v947_v14, %v946_v13  ;;  %v1049_v21 = vsel %vm662_vm11, %v1044_v48, 0 }
 0x3ff   : > { %1058 = vmatpush.bf16.xpose.msra.mxu3 %v1049_v21 }
 0x400   : > { %2168 = vmatmul.msk.bf16.vlgmr.msrb.gmra.mxu2 %vm772_vm12, %v948_v18  ;;  %2169 = vmatmul.msk.bf16.vlgmr.msrb.gmra.mxu3 %vm662_vm11, %v2880_v32 }
 0x405   : > { %v1175_v44 = vpop.permute.xlu0 %1174 }
 0x406   : > { %1187 = vmatpush.bf16.msrb.mxu0 %v1175_v44 }
 0x40a   : > { %2170 = vmatmul.msk.bf16.vlgmr.msra.gmra.mxu1 %vm662_vm11, %v994_v22 }
 0x410   : > { %2171 = vmatmul.msk.bf16.vlgmr.msra.gmra.mxu2 %vm662_vm11, %v1018_v53  ;;  %2172 = vmatmul.msk.bf16.vlgmr.msra.gmra.mxu3 %vm662_vm11, %v1042_v61 }
 0x42a   : > { %v2928_v23 = vpop.f32.mrf.mxu2 }
 0x432   : > { %v2934_v7 = vpop.f32.mrf.mxu2 }
 0x473   : > { %v2930_v60 = vpop.f32.mrf.mxu3 }
 0x477   : > { %v2932_v25 = vpop.f32.mrf.mxu1 }
 0x47b   : > { %v2936_v32 = vpop.f32.mrf.mxu3 }
 0x47f   : > { %v2938_v29 = vpop.f32.mrf.mxu1 }
 0x483   : > { %v2943_v63 = vpop.f32.mrf.mxu2  ;;  %v988_v27 = vpop.f32.mrf.mxu3 }
 0x484   : > { %v989_v30 = vadd.f32 %v988_v27, %v633_v54 }
 0x486   : > { %v1065_v19 = vadd.f32 %v989_v30, %v2782_v15 }
 0x487   : > { %v1012_v36 = vpop.f32.mrf.mxu1 }
 0x488   : > { %v1013_v35 = vadd.f32 %v1012_v36, %v633_v54  ;;  %v1073_v39 = vsel %vm772_vm12, %v1065_v19, -inf }
 0x489   : > { %1074 = vmax.xlane.f32.xlu2 %v1073_v39 }
 0x48a   : > { %v1067_v40 = vadd.f32 %v1013_v35, %v2804_v33 }
 0x48b   : > { %v2951_v49 = vpop.f32.mrf.mxu2  ;;  %v990_v26 = vpop.f32.mrf.mxu3 }
 0x48c   : > { %v991_v46 = vadd.f32 %v990_v26, %v634_v34  ;;  %v1079_v51 = vsel %vm772_vm12, %v1067_v40, -inf }
 0x48d   : > { %1080 = vmax.xlane.f32.xlu1 %v1079_v51 }
 0x48e   : > { %v1066_v58 = vadd.f32 %v991_v46, %v2792_v24 }
 0x48f   : > { %v1014_v47 = vpop.f32.mrf.mxu1 }
 0x490   : > { %v1015_v57 = vadd.f32 %v1014_v47, %v634_v34  ;;  %v1076_v2 = vsel %vm772_vm12, %v1066_v58, -inf }
 0x492   : > { %v1068_v20 = vadd.f32 %v1015_v57, %v2821_v38 }
 0x493   : > { %v1036_v59 = vpop.f32.mrf.mxu2  ;;  %v1060_v43 = vpop.f32.mrf.mxu3 }
 0x494   : > { %v1037_v62 = vadd.f32 %v1036_v59, %v633_v54  ;;  %v1061_v0 = vadd.f32 %v1060_v43, %v633_v54  ;;  %v1082_v50 = vsel %vm772_vm12, %v1068_v20, -inf }
 0x495   : > { %1083 = vmax.xlane.f32.xlu2 %v1082_v50  ;;  %1077 = vmax.xlane.f32.xlu1 %v1076_v2 }
 0x496   : > { %v1069_v6 = vadd.f32 %v1037_v62, %v2799_v28  ;;  %v1071_v8 = vadd.f32 %v1061_v0, %v2816_v37 }
 0x498   : > { %v1085_v45 = vsel %vm772_vm12, %v1069_v6, -inf  ;;  %v1091_v48 = vsel %vm772_vm12, %v1071_v8, -inf }
 0x499   : > { %1086 = vmax.xlane.f32.xlu0 %v1085_v45 }
 0x49b   : > { %v1038_v31 = vpop.f32.mrf.mxu2  ;;  %v1062_v12 = vpop.f32.mrf.mxu3 }
 0x49c   : > { %v1039_v13 = vadd.f32 %v1038_v31, %v634_v34  ;;  %v1063_v14 = vadd.f32 %v1062_v12, %v634_v34 }
 0x49d   : > { %1092 = vmax.xlane.f32.xlu1 %v1091_v48 }
 0x49e   : > { %v1070_v18 = vadd.f32 %v1039_v13, %v2833_v52  ;;  %v1072_v21 = vadd.f32 %v1063_v14, %v2838_v55 }
 0x4a0   : > { %v1088_v53 = vsel %vm772_vm12, %v1070_v18, -inf  ;;  %v1094_v44 = vsel %vm772_vm12, %v1072_v21, -inf }
 0x4a1   : > { %1089 = vmax.xlane.f32.xlu2 %v1088_v53  ;;  %1095 = vmax.xlane.f32.xlu0 %v1094_v44 }
 0x4b5   : > { %1224 = vrot.lane.b32.xlu0 %v2761_v1, %s2492_s27 }
 0x4b6   : > { %1199 = vrot.lane.b32.xlu1 %v2750_v41, %s2492_s27 }
 0x4b9   : > { %1271 = vrot.lane.b32.xlu2 %v2752_v42, %s2493_s19 }
 0x4be   : > { %1269 = vrot.lane.b32.xlu1 %v2752_v42, %s2494_s20 }
 0x4c6   : > { %1319 = vrot.lane.b32.xlu1 %v2761_v1, %s2493_s19 }
 0x4ce   : > { %1295 = vrot.lane.b32.xlu1 %v2750_v41, %s2493_s19 }
 0x4d6   : > { %1249 = vrot.lane.b32.xlu1 %v2758_v56, %s2492_s27  ;;  %s2500_s27 = smov 16  }
 0x4fc   : > { %v1075_v22 = vpop.xlane.xlu2 %1074 }
 0x4fd   : > { %v1097_v61 = vsub.f32 %v1065_v19, %v1075_v22 }
 0x4ff   : > { %v1105_v54 = vmul.f32 1.442695, %v1097_v61 }
 0x500   : > { %v1081_v27 = vpop.xlane.xlu1 %1080 }
 0x501   : > { %2375 = vpow2.f32 %v1105_v54  ;;  %v1099_v30 = vsub.f32 %v1067_v40, %v1081_v27 }
 0x503   : > { %v1109_v36 = vmul.f32 1.442695, %v1099_v30 }
 0x505   : > { %2377 = vpow2.f32 %v1109_v36 }
 0x507   : > { %v2980_v35 = vpop.eup %2375 }
 0x508   : > { %v1121_v39 = vsel %vm772_vm12, %v2980_v35, 0.0  ;;  %v1078_v34 = vpop.xlane.xlu1 %1077  ;;  %v1084_v26 = vpop.xlane.xlu2 %1083 }
 0x509   : > { %1122 = vadd.xlane.f32.xlu2 %v1121_v39  ;;  %v1098_v46 = vsub.f32 %v1066_v58, %v1078_v34  ;;  %v1100_v47 = vsub.f32 %v1068_v20, %v1084_v26 }
 0x50b   : > { %v1107_v51 = vmul.f32 1.442695, %v1098_v46  ;;  %v2984_v59 = vpop.eup %2377  ;;  %v1111_v40 = vmul.f32 1.442695, %v1100_v47 }
 0x50c   : > { %v1087_v57 = vpop.xlane.xlu0 %1086  ;;  %v1127_v62 = vsel %vm772_vm12, %v2984_v59, 0.0 }
 0x50d   : > { %v1101_v19 = vsub.f32 %v1069_v6, %v1087_v57  ;;  %2379 = vpow2.f32 %v1107_v51 }
 0x50f   : > { %v1113_v43 = vmul.f32 1.442695, %v1101_v19 }
 0x510   : > { %v1093_v0 = vpop.xlane.xlu1 %1092 }
 0x511   : > { %2381 = vpow2.f32 %v1113_v43  ;;  %1128 = vadd.xlane.f32.xlu2 %v1127_v62  ;;  %v1103_v50 = vsub.f32 %v1071_v8, %v1093_v0 }
 0x512   : > { %2383 = vpow2.f32 %v1111_v40 }
 0x513   : > { %v1117_v2 = vmul.f32 1.442695, %v1103_v50  ;;  %v2988_v45 = vpop.eup %2379 }
 0x514   : > { %v1090_v58 = vpop.xlane.xlu2 %1089  ;;  %v1096_v20 = vpop.xlane.xlu0 %1095  ;;  %v1124_v6 = vsel %vm772_vm12, %v2988_v45, 0.0 }
 0x515   : > { %2385 = vpow2.f32 %v1117_v2  ;;  %v1102_v31 = vsub.f32 %v1070_v18, %v1090_v58  ;;  %v1104_v12 = vsub.f32 %v1072_v21, %v1096_v20  ;;  %1125 = vadd.xlane.f32.xlu1 %v1124_v6 }
 0x517   : > { %v2992_v13 = vpop.eup %2381  ;;  %v1119_v14 = vmul.f32 1.442695, %v1104_v12  ;;  %v1115_v48 = vmul.f32 1.442695, %v1102_v31 }
 0x518   : > { %v1133_v8 = vsel %vm772_vm12, %v2992_v13, 0.0  ;;  %v2996_v53 = vpop.eup %2383 }
 0x519   : > { %1134 = vadd.xlane.f32.xlu2 %v1133_v8  ;;  %2387 = vpow2.f32 %v1119_v14  ;;  %v1130_v61 = vsel %vm772_vm12, %v2996_v53, 0.0 }
 0x51a   : > { %2389 = vpow2.f32 %v1115_v48 }
 0x51b   : > { %v2386_v44 = vpop.eup %2385 }
 0x51c   : > { %v1272_v22 = vpop.permute.xlu2 %1271  ;;  %v1139_v18 = vsel %vm772_vm12, %v2386_v44, 0.0 }
 0x51d   : > { %v1277_v21 = vsel %vm662_vm11, %v1272_v22, 0  ;;  %1140 = vadd.xlane.f32.xlu0 %v1139_v18  ;;  %1131 = vadd.xlane.f32.xlu1 %v1130_v61 }
 0x51e   : > { %1286 = vmatpush.bf16.xpose.msra.mxu0 %v1277_v21 }
 0x51f   : > { %v3002_v54 = vpop.eup %2387 }
 0x520   : > { %v1142_v27 = vsel %vm772_vm12, %v3002_v54, 0.0  ;;  %v3006_v30 = vpop.eup %2389 }
 0x521   : > { %1143 = vadd.xlane.f32.xlu2 %v1142_v27  ;;  %v1136_v36 = vsel %vm772_vm12, %v3006_v30, 0.0 }
 0x525   : > { %1137 = vadd.xlane.f32.xlu1 %v1136_v36 }
 0x527   : > { %v1225_v39 = vpop.permute.xlu0 %1224 }
 0x528   : > { %1237 = vmatpush.bf16.msrb.mxu2 %v1225_v39  ;;  %v1200_v34 = vpop.permute.xlu1 %1199 }
 0x529   : > { %1212 = vmatpush.bf16.msrb.mxu1 %v1200_v34 }
 0x530   : > { %v3010_v26 = vpop.permute.xlu1 %1269 }
 0x531   : > { %1317 = vrot.lane.b32.xlu0 %v2761_v1, %s2494_s20 }
 0x538   : > { %v1320_v46 = vpop.permute.xlu1 %1319 }
 0x539   : > { %v1325_v51 = vsel %vm662_vm11, %v1320_v46, 0  ;;  %1343 = vrot.lane.b32.xlu2 %v2758_v56, %s2493_s19 }
 0x53a   : > { %1334 = vmatpush.bf16.xpose.msra.mxu2 %v1325_v51 }
 0x53e   : > { %1293 = vrot.lane.b32.xlu1 %v2750_v41, %s2494_s20 }
 0x540   : > { %v1296_v47 = vpop.permute.xlu1 %1295 }
 0x541   : > { %v1301_v57 = vsel %vm662_vm11, %v1296_v47, 0  ;;  %1474 = vrot.lane.b32.xlu2 %v2752_v42, %s2495_s21 }
 0x542   : > { %1310 = vmatpush.bf16.xpose.msra.mxu1 %v1301_v57 }
 0x546   : > { %1341 = vrot.lane.b32.xlu1 %v2758_v56, %s2494_s20 }
 0x548   : > { %v1250_v19 = vpop.permute.xlu1 %1249 }
 0x549   : > { %1262 = vmatpush.bf16.msrb.mxu3 %v1250_v19 }
 0x57c   : > { %v1123_v43 = vpop.xlane.xlu2 %1122 }
 0x57d   : > { %2391 = vrcp.f32 %v1123_v43 }
 0x583   : > { %v2392_v0 = vpop.eup %2391 }
 0x584   : > { %v1129_v40 = vpop.xlane.xlu2 %1128  ;;  %v1153_v2 = vmul.f32 %v2392_v0, %v2980_v35 }
 0x586   : > { %v1161_v12 = vpack.c.bf16 %v1153_v2, %v1153_v2 }
 0x588   : > { %v1126_v62 = vpop.xlane.xlu1 %1125  ;;  %v1171_v22 = vunpack.c.l.b16 %v1161_v12 }
 0x589   : > { %2393 = vrcp.f32 %v1126_v62 }
 0x58a   : > { %2395 = vrcp.f32 %v1129_v40 }
 0x58c   : > { %v1135_v50 = vpop.xlane.xlu2 %1134 }
 0x58f   : > { %v2394_v58 = vpop.eup %2393 }
 0x590   : > { %v1141_v20 = vpop.xlane.xlu0 %1140  ;;  %v2396_v31 = vpop.eup %2395  ;;  %v1154_v6 = vmul.f32 %v2394_v58, %v2988_v45 }
 0x591   : > { %2397 = vrcp.f32 %v1141_v20  ;;  %v1132_v14 = vpop.xlane.xlu1 %1131  ;;  %v1155_v8 = vmul.f32 %v2396_v31, %v2984_v59 }
 0x592   : > { %2399 = vrcp.f32 %v1132_v14  ;;  %v1162_v48 = vpack.c.bf16 %v1154_v6, %v1154_v6 }
 0x593   : > { %2401 = vrcp.f32 %v1135_v50  ;;  %v1163_v36 = vpack.c.bf16 %v1155_v8, %v1155_v8 }
 0x594   : > { %v1172_v18 = vunpack.c.l.b16 %v1162_v48  ;;  %v1144_v21 = vpop.xlane.xlu2 %1143 }
 0x595   : > { %2403 = vrcp.f32 %v1144_v21  ;;  %v1196_v59 = vunpack.c.l.b16 %v1163_v36 }
 0x596   : > { %v1173_v27 = vpack.c.b16 %v1172_v18, %v1171_v22 }
 0x597   : > { %v2398_v61 = vpop.eup %2397 }
 0x598   : > { %v2400_v35 = vpop.eup %2399  ;;  %v1159_v39 = vmul.f32 %v2398_v61, %v2386_v44  ;;  %2173 = vmatmul.msk.bf16.vlgmr.msrb.gmra.mxu0 %vm772_vm12, %v1173_v27 }
 0x599   : > { %v1156_v34 = vmul.f32 %v2400_v35, %v2996_v53  ;;  %v1138_v45 = vpop.xlane.xlu1 %1137  ;;  %v2402_v46 = vpop.eup %2401 }
 0x59a   : > { %2405 = vrcp.f32 %v1138_v45  ;;  %v1157_v57 = vmul.f32 %v2402_v46, %v2992_v13  ;;  %v1167_v19 = vpack.c.bf16 %v1159_v39, %v1159_v39 }
 0x59b   : > { %v1164_v51 = vpack.c.bf16 %v1156_v34, %v1156_v34  ;;  %v2404_v47 = vpop.eup %2403 }
 0x59c   : > { %v1160_v40 = vmul.f32 %v2404_v47, %v3002_v54  ;;  %v1344_v62 = vpop.permute.xlu2 %1343  ;;  %v1165_v2 = vpack.c.bf16 %v1157_v57, %v1157_v57  ;;  %v1246_v58 = vunpack.c.l.b16 %v1167_v19 }
 0x59d   : > { %v1197_v43 = vunpack.c.l.b16 %v1164_v51  ;;  %v1349_v0 = vsel %vm662_vm11, %v1344_v62, 0 }
 0x59e   : > { %v1168_v50 = vpack.c.bf16 %v1160_v40, %v1160_v40  ;;  %1358 = vmatpush.bf16.xpose.msra.mxu3 %v1349_v0  ;;  %v1221_v6 = vunpack.c.l.b16 %v1165_v2 }
 0x59f   : > { %v1198_v44 = vpack.c.b16 %v1197_v43, %v1196_v59  ;;  %v636_v59 = vld [vmem:[%s3389_s7 + $0x28] sm:$0xff] }
 0x5a0   : > { %v2406_v53 = vpop.eup %2405  ;;  %v1247_v20 = vunpack.c.l.b16 %v1168_v50 }
 0x5a1   : > { %v1158_v31 = vmul.f32 %v2406_v53, %v3006_v30  ;;  %2174 = vmatmul.msk.bf16.vlgmr.msrb.gmra.mxu1 %vm772_vm12, %v1198_v44 }
 0x5a2   : > { %v1248_v12 = vpack.c.b16 %v1247_v20, %v1246_v58 }
 0x5a3   : > { %v1166_v13 = vpack.c.bf16 %v1158_v31, %v1158_v31  ;;  %v1318_v30 = vpop.permute.xlu0 %1317 }
 0x5a4   : > { %v1475_v48 = vpop.permute.xlu2 %1474  ;;  %2176 = vmatmul.msk.bf16.vlgmr.msrb.gmra.mxu3 %vm772_vm12, %v1248_v12 }
 0x5a5   : > { %v1222_v14 = vunpack.c.l.b16 %v1166_v13  ;;  %1487 = vmatpush.bf16.msrb.mxu0 %v1475_v48 }
 0x5a7   : > { %v1223_v54 = vpack.c.b16 %v1222_v14, %v1221_v6 }
 0x5a8   : > { %2177 = vmatmul.msk.bf16.vlgmr.msra.gmra.mxu0 %vm662_vm11, %v3010_v26  ;;  %v635_v26 = vld [vmem:[%s3389_s7 + $0x20] sm:$0xff] }
 0x5a9   : > { %2175 = vmatmul.msk.bf16.vlgmr.msrb.gmra.mxu2 %vm772_vm12, %v1223_v54 }
 0x5b0   : > { %v1294_v8 = vpop.permute.xlu1 %1293 }
 0x5b1   : > { %2178 = vmatmul.msk.bf16.vlgmr.msra.gmra.mxu1 %vm662_vm11, %v1294_v8 }
 0x5b8   : > { %v1342_v22 = vpop.permute.xlu1 %1341 }
 0x5b9   : > { %2179 = vmatmul.msk.bf16.vlgmr.msra.gmra.mxu2 %vm662_vm11, %v1318_v30  ;;  %2180 = vmatmul.msk.bf16.vlgmr.msra.gmra.mxu3 %vm662_vm11, %v1342_v22 }
 0x615   : > { %v3041_v18 = vpop.f32.mrf.mxu0 }
 0x61d   : > { %v3043_v21 = vpop.f32.mrf.mxu0 }
 0x61e   : > { %v3045_v61 = vpop.f32.mrf.mxu1  ;;  %v2261_v27 = vpack.i.bf16 %v3043_v21, %v3041_v18 }
 0x625   : > { %v1288_v36 = vpop.f32.mrf.mxu0 }
 0x626   : > { %v3052_v35 = vpop.f32.mrf.mxu1  ;;  %v1289_v34 = vadd.f32 %v1288_v36, %v635_v26 }
 0x627   : > { %v2276_v39 = vpack.i.bf16 %v3052_v35, %v3045_v61  ;;  %v3056_v45 = vpop.f32.mrf.mxu3 }
 0x628   : > { %v1365_v46 = vadd.f32 %v1289_v34, %v2782_v15 }
 0x62a   : > { %v1373_v51 = vsel %vm772_vm12, %v1365_v46, -inf }
 0x62b   : > { %1374 = vmax.xlane.f32.xlu0 %v1373_v51 }
 0x62c   : > { %v3060_v47 = vpop.f32.mrf.mxu2 }
 0x62d   : > { %v1290_v57 = vpop.f32.mrf.mxu0 }
 0x62e   : > { %v1291_v19 = vadd.f32 %v1290_v57, %v636_v59  ;;  %v1312_v43 = vpop.f32.mrf.mxu1 }
 0x62f   : > { %v3065_v40 = vpop.f32.mrf.mxu3  ;;  %v1313_v62 = vadd.f32 %v1312_v43, %v635_v26 }
 0x630   : > { %v1366_v15 = vadd.f32 %v1291_v19, %v2792_v24 }
 0x631   : > { %v1367_v44 = vadd.f32 %v1313_v62, %v2804_v33 }
 0x632   : > { %v1376_v50 = vsel %vm772_vm12, %v1366_v15, -inf }
 0x633   : > { %1377 = vmax.xlane.f32.xlu1 %v1376_v50  ;;  %v1379_v2 = vsel %vm772_vm12, %v1367_v44, -inf }
 0x634   : > { %v3072_v53 = vpop.f32.mrf.mxu2  ;;  %1380 = vmax.xlane.f32.xlu2 %v1379_v2 }
 0x635   : > { %v2291_v58 = vpack.i.bf16 %v3072_v53, %v3060_v47 }
 0x636   : > { %v1314_v20 = vpop.f32.mrf.mxu1 }
 0x637   : > { %v1315_v31 = vadd.f32 %v1314_v20, %v636_v59 }
 0x639   : > { %v1368_v12 = vadd.f32 %v1315_v31, %v2821_v38 }
 0x63b   : > { %v1382_v24 = vsel %vm772_vm12, %v1368_v12, -inf }
 0x63c   : > { %v1336_v13 = vpop.f32.mrf.mxu2  ;;  %1383 = vmax.xlane.f32.xlu0 %v1382_v24  ;;  %v1360_v33 = vpop.f32.mrf.mxu3 }
 0x63d   : > { %v1337_v6 = vadd.f32 %v1336_v13, %v635_v26  ;;  %v1361_v48 = vadd.f32 %v1360_v33, %v635_v26 }
 0x63f   : > { %v1369_v14 = vadd.f32 %v1337_v6, %v2799_v28  ;;  %v1371_v22 = vadd.f32 %v1361_v48, %v2816_v37 }
 0x641   : > { %v1385_v54 = vsel %vm772_vm12, %v1369_v14, -inf  ;;  %v1391_v34 = vsel %vm772_vm12, %v1371_v22, -inf }
 0x642   : > { %1386 = vmax.xlane.f32.xlu1 %v1385_v54 }
 0x644   : > { %v1338_v8 = vpop.f32.mrf.mxu2  ;;  %v1362_v28 = vpop.f32.mrf.mxu3 }
 0x645   : > { %v1339_v30 = vadd.f32 %v1338_v8, %v636_v59  ;;  %v1363_v37 = vadd.f32 %v1362_v28, %v636_v59 }
 0x647   : > { %v1370_v36 = vadd.f32 %v1339_v30, %v2833_v52  ;;  %v3094_v52 = vadd.f32 %v1363_v37, %v2838_v55 }
 0x649   : > { %v1388_v38 = vsel %vm772_vm12, %v1370_v36, -inf  ;;  %v1394_v26 = vsel %vm772_vm12, %v3094_v52, -inf }
 0x64a   : > { %1389 = vmax.xlane.f32.xlu0 %v1388_v38  ;;  %1392 = vmax.xlane.f32.xlu1 %v1391_v34 }
 0x64c   : > { %1569 = vrot.lane.b32.xlu2 %v2752_v42, %s2496_s26 }
 0x65e   : > { %1571 = vrot.lane.b32.xlu0 %v2752_v42, %s2497_s28 }
 0x663   : > { %1499 = vrot.lane.b32.xlu1 %v2750_v41, %s2495_s21 }
 0x66b   : > { %1595 = vrot.lane.b32.xlu1 %v2750_v41, %s2497_s28 }
 0x673   : > { %1619 = vrot.lane.b32.xlu1 %v2761_v1, %s2497_s28 }
 0x675   : > { %1395 = vmax.xlane.f32.xlu2 %v1394_v26 }
 0x67b   : > { %1593 = vrot.lane.b32.xlu1 %v2750_v41, %s2496_s26 }
 0x683   : > { %1549 = vrot.lane.b32.xlu1 %v2758_v56, %s2495_s21 }
 0x68d   : > { %1524 = vrot.lane.b32.xlu2 %v2761_v1, %s2495_s21 }
 0x69e   : > { %v1375_v51 = vpop.xlane.xlu0 %1374 }
 0x69f   : > { %v1397_v59 = vsub.f32 %v1365_v46, %v1375_v51 }
 0x6a1   : > { %v1405_v55 = vmul.f32 1.442695, %v1397_v59 }
 0x6a3   : > { %2407 = vpow2.f32 %v1405_v55 }
 0x6a6   : > { %v1378_v57 = vpop.xlane.xlu1 %1377 }
 0x6a7   : > { %v1398_v19 = vsub.f32 %v1366_v15, %v1378_v57  ;;  %v1381_v43 = vpop.xlane.xlu2 %1380 }
 0x6a8   : > { %v1399_v62 = vsub.f32 %v1367_v44, %v1381_v43 }
 0x6a9   : > { %v3106_v50 = vpop.eup %2407  ;;  %v1407_v2 = vmul.f32 1.442695, %v1398_v19 }
 0x6aa   : > { %v1409_v20 = vmul.f32 1.442695, %v1399_v62  ;;  %v1421_v31 = vsel %vm772_vm12, %v3106_v50, 0.0 }
 0x6ab   : > { %2409 = vpow2.f32 %v1407_v2  ;;  %1422 = vadd.xlane.f32.xlu0 %v1421_v31 }
 0x6ac   : > { %2411 = vpow2.f32 %v1409_v20 }
 0x6af   : > { %v1384_v13 = vpop.xlane.xlu0 %1383  ;;  %v1570_v31 = vpop.permute.xlu2 %1569 }
 0x6b0   : > { %v1400_v24 = vsub.f32 %v1368_v12, %v1384_v13 }
 0x6b1   : > { %v3110_v6 = vpop.eup %2409 }
 0x6b2   : > { %v3112_v46 = vpop.eup %2411  ;;  %v1411_v33 = vmul.f32 1.442695, %v1400_v24  ;;  %v1424_v15 = vsel %vm772_vm12, %v3110_v6, 0.0 }
 0x6b3   : > { %1425 = vadd.xlane.f32.xlu1 %v1424_v15  ;;  %v1427_v44 = vsel %vm772_vm12, %v3112_v46, 0.0 }
 0x6b4   : > { %2413 = vpow2.f32 %v1411_v33  ;;  %1428 = vadd.xlane.f32.xlu0 %v1427_v44 }
 0x6b5   : > { %v1387_v48 = vpop.xlane.xlu1 %1386 }
 0x6b6   : > { %v1401_v54 = vsub.f32 %v1369_v14, %v1387_v48 }
 0x6b8   : > { %v1413_v8 = vmul.f32 1.442695, %v1401_v54 }
 0x6ba   : > { %2415 = vpow2.f32 %v1413_v8  ;;  %v3118_v30 = vpop.eup %2413 }
 0x6bb   : > { %v1430_v12 = vsel %vm772_vm12, %v3118_v30, 0.0 }
 0x6bc   : > { %1431 = vadd.xlane.f32.xlu1 %v1430_v12 }
 0x6bd   : > { %v1390_v38 = vpop.xlane.xlu0 %1389  ;;  %v1393_v34 = vpop.xlane.xlu1 %1392 }
 0x6be   : > { %v1402_v28 = vsub.f32 %v1370_v36, %v1390_v38  ;;  %v1403_v37 = vsub.f32 %v1371_v22, %v1393_v34 }
 0x6c0   : > { %v3122_v26 = vpop.eup %2415  ;;  %v1415_v51 = vmul.f32 1.442695, %v1402_v28  ;;  %v1417_v59 = vmul.f32 1.442695, %v1403_v37 }
 0x6c1   : > { %v1433_v55 = vsel %vm772_vm12, %v3122_v26, 0.0 }
 0x6c2   : > { %2417 = vpow2.f32 %v1415_v51  ;;  %1434 = vadd.xlane.f32.xlu0 %v1433_v55 }
 0x6c3   : > { %2419 = vpow2.f32 %v1417_v59 }
 0x6c8   : > { %v3126_v14 = vpop.eup %2417 }
 0x6c9   : > { %v3128_v57 = vpop.eup %2419  ;;  %v1436_v19 = vsel %vm772_vm12, %v3126_v14, 0.0 }
 0x6ca   : > { %1437 = vadd.xlane.f32.xlu1 %v1436_v19  ;;  %v1439_v22 = vsel %vm772_vm12, %v3128_v57, 0.0 }
 0x6cb   : > { %1440 = vadd.xlane.f32.xlu0 %v1439_v22 }
 0x6d0   : > { %v1572_v36 = vpop.permute.xlu0 %1571 }
 0x6d1   : > { %v1577_v43 = vsel %vm662_vm11, %v1572_v36, 0 }
 0x6d2   : > { %1586 = vmatpush.bf16.xpose.msra.mxu0 %v1577_v43 }
 0x6d5   : > { %v1500_v62 = vpop.permute.xlu1 %1499 }
 0x6d6   : > { %1512 = vmatpush.bf16.msrb.mxu1 %v1500_v62 }
 0x6dd   : > { %v1596_v2 = vpop.permute.xlu1 %1595 }
 0x6de   : > { %v1601_v20 = vsel %vm662_vm11, %v1596_v2, 0 }
 0x6df   : > { %1643 = vrot.lane.b32.xlu0 %v2758_v56, %s2497_s28  ;;  %1610 = vmatpush.bf16.xpose.msra.mxu1 %v1601_v20 }
 0x6e3   : > { %1617 = vrot.lane.b32.xlu1 %v2761_v1, %s2496_s26 }
 0x6e5   : > { %v1620_v13 = vpop.permute.xlu1 %1619 }
 0x6e6   : > { %v1625_v54 = vsel %vm662_vm11, %v1620_v13, 0 }
 0x6e8   : > { %v1396_v24 = vpop.xlane.xlu2 %1395 }
 0x6e9   : > { %v1404_v33 = vsub.f32 %v3094_v52, %v1396_v24 }
 0x6eb   : > { %v1419_v15 = vmul.f32 1.442695, %v1404_v33 }
 0x6ed   : > { %v1594_v44 = vpop.permute.xlu1 %1593  ;;  %2421 = vpow2.f32 %v1419_v15 }
 0x6f0   : > { %v1525_v48 = vpop.permute.xlu2 %1524 }
 0x6f1   : > { %1537 = vmatpush.bf16.msrb.mxu2 %v1525_v48 }
 0x6f3   : > { %v3142_v8 = vpop.eup %2421 }
 0x6f4   : > { %v1442_v38 = vsel %vm772_vm12, %v3142_v8, 0.0 }
 0x6f5   : > { %1634 = vmatpush.bf16.xpose.msra.mxu2 %v1625_v54  ;;  %v1550_v12 = vpop.permute.xlu1 %1549  ;;  %1443 = vadd.xlane.f32.xlu2 %v1442_v38 }
 0x6f6   : > { %1562 = vmatpush.bf16.msrb.mxu3 %v1550_v12 }
 0x70d   : > { %1641 = vrot.lane.b32.xlu2 %v2758_v56, %s2496_s26 }
 0x71e   : > { %v1423_v52 = vpop.xlane.xlu0 %1422 }
 0x71f   : > { %2423 = vrcp.f32 %v1423_v52 }
 0x725   : > { %v2424_v28 = vpop.eup %2423 }
 0x726   : > { %v1426_v34 = vpop.xlane.xlu1 %1425  ;;  %v1453_v51 = vmul.f32 %v2424_v28, %v3106_v50 }
 0x727   : > { %2425 = vrcp.f32 %v1426_v34  ;;  %v1429_v37 = vpop.xlane.xlu0 %1428 }
 0x728   : > { %2427 = vrcp.f32 %v1429_v37  ;;  %v1461_v55 = vpack.c.bf16 %v1453_v51, %v1453_v51 }
 0x72a   : > { %v1471_v62 = vunpack.c.l.b16 %v1461_v55 }
 0x72d   : > { %v2426_v59 = vpop.eup %2425 }
 0x72e   : > { %v1454_v19 = vmul.f32 %v2426_v59, %v3110_v6  ;;  %v2428_v36 = vpop.eup %2427 }
 0x72f   : > { %v1432_v22 = vpop.xlane.xlu1 %1431  ;;  %v1455_v20 = vmul.f32 %v2428_v36, %v3112_v46 }
 0x730   : > { %v1462_v43 = vpack.c.bf16 %v1454_v19, %v1454_v19  ;;  %2429 = vrcp.f32 %v1432_v22 }
 0x731   : > { %v1463_v15 = vpack.c.bf16 %v1455_v20, %v1455_v20 }
 0x732   : > { %v1472_v2 = vunpack.c.l.b16 %v1462_v43 }
 0x733   : > { %v1496_v54 = vunpack.c.l.b16 %v1463_v15 }
 0x734   : > { %v1473_v13 = vpack.c.b16 %v1472_v2, %v1471_v62 }
 0x735   : > { %v1435_v24 = vpop.xlane.xlu0 %1434 }
 0x736   : > { %v2430_v33 = vpop.eup %2429  ;;  %2181 = vmatmul.msk.bf16.vlgmr.msrb.gmra.mxu0 %vm772_vm12, %v1473_v13  ;;  %2431 = vrcp.f32 %v1435_v24 }
 0x737   : > { %v1456_v50 = vmul.f32 %v2430_v33, %v3118_v30 }
 0x739   : > { %v1464_v48 = vpack.c.bf16 %v1456_v50, %v1456_v50 }
 0x73b   : > { %v1497_v6 = vunpack.c.l.b16 %v1464_v48 }
 0x73c   : > { %v2432_v38 = vpop.eup %2431 }
 0x73d   : > { %v1438_v12 = vpop.xlane.xlu1 %1437  ;;  %v1498_v52 = vpack.c.b16 %v1497_v6, %v1496_v54  ;;  %v1457_v46 = vmul.f32 %v2432_v38, %v3122_v26 }
 0x73e   : > { %2433 = vrcp.f32 %v1438_v12  ;;  %v1441_v59 = vpop.xlane.xlu0 %1440 }
 0x73f   : > { %2182 = vmatmul.msk.bf16.vlgmr.msrb.gmra.mxu1 %vm772_vm12, %v1498_v52  ;;  %v1465_v28 = vpack.c.bf16 %v1457_v46, %v1457_v46  ;;  %2435 = vrcp.f32 %v1441_v59  ;;  %v2471_v46 = vld [vmem:[%s3390_s8] sm:$0xff] }
 0x741   : > { %v1521_v30 = vunpack.c.l.b16 %v1465_v28 }
 0x744   : > { %v2434_v34 = vpop.eup %2433 }
 0x745   : > { %v1458_v37 = vmul.f32 %v2434_v34, %v3126_v14  ;;  %v2436_v43 = vpop.eup %2435 }
 0x746   : > { %2185 = vmatmul.msk.bf16.vlgmr.msra.gmra.mxu0 %vm662_vm11, %v1570_v31  ;;  %v1459_v31 = vmul.f32 %v2436_v43, %v3128_v57 }
 0x747   : > { %v1466_v51 = vpack.c.bf16 %v1458_v37, %v1458_v37  ;;  %v638_v37 = vld [vmem:[%s3389_s7 + $0x38] sm:$0xff] }
 0x748   : > { %v1467_v2 = vpack.c.bf16 %v1459_v31, %v1459_v31 }
 0x749   : > { %v1522_v55 = vunpack.c.l.b16 %v1466_v51 }
 0x74a   : > { %v1546_v24 = vunpack.c.l.b16 %v1467_v2 }
 0x74b   : > { %v1523_v19 = vpack.c.b16 %v1522_v55, %v1521_v30 }
 0x74d   : > { %2183 = vmatmul.msk.bf16.vlgmr.msrb.gmra.mxu2 %vm772_vm12, %v1523_v19  ;;  %v2472_v19 = vld [vmem:[%s3390_s8 + $0x8] sm:$0xff] }
 0x74f   : > { %2186 = vmatmul.msk.bf16.vlgmr.msra.gmra.mxu1 %vm662_vm11, %v1594_v44 }
 0x751   : > { %v1644_v22 = vpop.permute.xlu0 %1643 }
 0x752   : > { %v1649_v36 = vsel %vm662_vm11, %v1644_v22, 0 }
 0x753   : > { %1658 = vmatpush.bf16.xpose.msra.mxu3 %v1649_v36 }
 0x755   : > { %v1618_v26 = vpop.permute.xlu1 %1617 }
 0x75d   : > { %2187 = vmatmul.msk.bf16.vlgmr.msra.gmra.mxu2 %vm662_vm11, %v1618_v26  ;;  %v2473_v26 = vld [vmem:[%s3390_s8 + $0x10] sm:$0xff] }
 0x768   : > { %v1444_v14 = vpop.xlane.xlu2 %1443 }
 0x769   : > { %2437 = vrcp.f32 %v1444_v14 }
 0x76f   : > { %v2438_v62 = vpop.eup %2437 }
 0x770   : > { %v1460_v20 = vmul.f32 %v2438_v62, %v3142_v8  ;;  %v1642_v15 = vpop.permute.xlu2 %1641  ;;  %v637_v8 = vld [vmem:[%s3389_s7 + $0x30] sm:$0xff] }
 0x772   : > { %v1468_v13 = vpack.c.bf16 %v1460_v20, %v1460_v20 }
 0x774   : > { %v1547_v44 = vunpack.c.l.b16 %v1468_v13  ;;  %v2474_v13 = vld [vmem:[%s3390_s8 + $0x18] sm:$0xff] }
 0x776   : > { %v1548_v33 = vpack.c.b16 %v1547_v44, %v1546_v24 }
 0x778   : > { %2184 = vmatmul.msk.bf16.vlgmr.msrb.gmra.mxu3 %vm772_vm12, %v1548_v33 }
 0x788   : > { %2188 = vmatmul.msk.bf16.vlgmr.msra.gmra.mxu3 %vm662_vm11, %v1642_v15 }
 0x7b3   : > { %v3165_v50 = vpop.f32.mrf.mxu0 }
 0x7bb   : > { %v3167_v48 = vpop.f32.mrf.mxu0 }
 0x7bc   : > { %v2266_v57 = vpack.i.bf16 %v3167_v48, %v3165_v50  ;;  %v3171_v54 = vpop.f32.mrf.mxu1 }
 0x7c3   : > { %v1588_v6 = vpop.f32.mrf.mxu0 }
 0x7c4   : > { %v1589_v12 = vadd.f32 %v1588_v6, %v637_v8  ;;  %v3176_v38 = vpop.f32.mrf.mxu1 }
 0x7c5   : > { %v2281_v52 = vpack.i.bf16 %v3176_v38, %v3171_v54 }
 0x7c6   : > { %v1665_v34 = vadd.f32 %v2471_v46, %v1589_v12  ;;  %v2475_v12 = vld [vmem:[%s3390_s8 + $0x20] sm:$0xff] }
 0x7c8   : > { %v1673_v28 = vsel %vm772_vm12, %v1665_v34, -inf }
 0x7c9   : > { %1674 = vmax.xlane.f32.xlu1 %v1673_v28 }
 0x7cb   : > { %v1590_v51 = vpop.f32.mrf.mxu0 }
 0x7cc   : > { %v1591_v30 = vadd.f32 %v1590_v51, %v638_v37  ;;  %v1612_v59 = vpop.f32.mrf.mxu1 }
 0x7cd   : > { %v1613_v55 = vadd.f32 %v1612_v59, %v637_v8  ;;  %v2476_v59 = vld [vmem:[%s3390_s8 + $0x28] sm:$0xff] }
 0x7ce   : > { %v1666_v22 = vadd.f32 %v2472_v19, %v1591_v30 }
 0x7cf   : > { %v1667_v14 = vadd.f32 %v2473_v26, %v1613_v55 }
 0x7d0   : > { %v3190_v36 = vpop.f32.mrf.mxu2  ;;  %v1676_v43 = vsel %vm772_vm12, %v1666_v22, -inf }
 0x7d1   : > { %1677 = vmax.xlane.f32.xlu0 %v1676_v43  ;;  %v1679_v31 = vsel %vm772_vm12, %v1667_v14, -inf }
 0x7d2   : > { %1680 = vmax.xlane.f32.xlu2 %v1679_v31 }
 0x7d4   : > { %v1614_v62 = vpop.f32.mrf.mxu1 }
 0x7d5   : > { %v1615_v2 = vadd.f32 %v1614_v62, %v638_v37 }
 0x7d7   : > { %v1668_v24 = vadd.f32 %v2474_v13, %v1615_v2  ;;  %v2477_v13 = vld [vmem:[%s3390_s8 + $0x30] sm:$0xff] }
 0x7d8   : > { %v3197_v20 = vpop.f32.mrf.mxu2 }
 0x7d9   : > { %v2296_v44 = vpack.i.bf16 %v3197_v20, %v3190_v36  ;;  %v1682_v33 = vsel %vm772_vm12, %v1668_v24, -inf  ;;  %v2212_v36 = vld [vmem:[%s3387_s5 + $0x8] sm:$0xff] }
 0x7da   : > { %1683 = vmax.xlane.f32.xlu1 %v1682_v33 }
 0x7e0   : > { %v1636_v15 = vpop.f32.mrf.mxu2 }
 0x7e1   : > { %v1637_v6 = vadd.f32 %v1636_v15, %v637_v8 }
 0x7e3   : > { %v1669_v46 = vadd.f32 %v2475_v12, %v1637_v6 }
 0x7e5   : > { %v1685_v28 = vsel %vm772_vm12, %v1669_v46, -inf }
 0x7e6   : > { %1686 = vmax.xlane.f32.xlu1 %v1685_v28  ;;  %v2478_v28 = vld [vmem:[%s3390_s8 + $0x38] sm:$0xff] }
 0x7e8   : > { %v1638_v51 = vpop.f32.mrf.mxu2 }
 0x7e9   : > { %v1639_v30 = vadd.f32 %v1638_v51, %v638_v37 }
 0x7eb   : > { %v3212_v55 = vadd.f32 %v2476_v59, %v1639_v30 }
 0x7ed   : > { %v1688_v19 = vsel %vm772_vm12, %v3212_v55, -inf }
 0x7ee   : > { %1689 = vmax.xlane.f32.xlu0 %v1688_v19 }
 0x7fb   : > { %v3216_v26 = vpop.f32.mrf.mxu3 }
 0x803   : > { %v3218_v43 = vpop.f32.mrf.mxu3 }
 0x80b   : > { %v1660_v62 = vpop.f32.mrf.mxu3 }
 0x80c   : > { %v1661_v2 = vadd.f32 %v1660_v62, %v637_v8 }
 0x80e   : > { %v1671_v33 = vadd.f32 %v2477_v13, %v1661_v2 }
 0x810   : > { %v1691_v15 = vsel %vm772_vm12, %v1671_v33, -inf }
 0x811   : > { %1692 = vmax.xlane.f32.xlu1 %v1691_v15 }
 0x813   : > { %v1662_v6 = vpop.f32.mrf.mxu3 }
 0x814   : > { %v1663_v12 = vadd.f32 %v1662_v6, %v638_v37 }
 0x816   : > { %v1672_v51 = vadd.f32 %v2478_v28, %v1663_v12 }
 0x818   : > { %v1694_v30 = vsel %vm772_vm12, %v1672_v51, -inf }
 0x819   : > { %1695 = vmax.xlane.f32.xlu2 %v1694_v30 }
 0x831   : > { %1774 = vrot.lane.b32.xlu2 %v2752_v42, %s2498_s13 }
 0x83c   : > { %v1675_v8 = vpop.xlane.xlu1 %1674 }
 0x83d   : > { %v1697_v59 = vsub.f32 %v1665_v34, %v1675_v8 }
 0x83f   : > { %v1705_v19 = vmul.f32 1.442695, %v1697_v59 }
 0x841   : > { %2439 = vpow2.f32 %v1705_v19 }
 0x844   : > { %v1678_v62 = vpop.xlane.xlu0 %1677 }
 0x845   : > { %v1698_v2 = vsub.f32 %v1666_v22, %v1678_v62  ;;  %v1681_v13 = vpop.xlane.xlu2 %1680 }
 0x846   : > { %v1699_v37 = vsub.f32 %v1667_v14, %v1681_v13 }
 0x847   : > { %v2440_v15 = vpop.eup %2439  ;;  %v1707_v6 = vmul.f32 1.442695, %v1698_v2 }
 0x848   : > { %v1709_v31 = vmul.f32 1.442695, %v1699_v37  ;;  %v1721_v12 = vsel %vm772_vm12, %v2440_v15, 0.0 }
 0x849   : > { %2441 = vpow2.f32 %v1707_v6  ;;  %1722 = vadd.xlane.f32.xlu0 %v1721_v12 }
 0x84a   : > { %2443 = vpow2.f32 %v1709_v31 }
 0x84d   : > { %v1684_v28 = vpop.xlane.xlu1 %1683 }
 0x84e   : > { %v1700_v30 = vsub.f32 %v1668_v24, %v1684_v28 }
 0x84f   : > { %v2442_v0 = vpop.eup %2441 }
 0x850   : > { %v3233_v42 = vpop.eup %2443  ;;  %v1711_v34 = vmul.f32 1.442695, %v1700_v30  ;;  %v1724_v8 = vsel %vm772_vm12, %v2442_v0, 0.0 }
 0x851   : > { %1725 = vadd.xlane.f32.xlu1 %v1724_v8  ;;  %v1727_v22 = vsel %vm772_vm12, %v3233_v42, 0.0 }
 0x852   : > { %2445 = vpow2.f32 %v1711_v34  ;;  %1728 = vadd.xlane.f32.xlu0 %v1727_v22 }
 0x858   : > { %v3238_v14 = vpop.eup %2445 }
 0x859   : > { %v1687_v59 = vpop.xlane.xlu1 %1686  ;;  %v1730_v31 = vsel %vm772_vm12, %v3238_v14, 0.0 }
 0x85a   : > { %v1701_v19 = vsub.f32 %v1669_v46, %v1687_v59  ;;  %1731 = vadd.xlane.f32.xlu1 %v1730_v31 }
 0x85c   : > { %v1713_v24 = vmul.f32 1.442695, %v1701_v19 }
 0x85e   : > { %2447 = vpow2.f32 %v1713_v24 }
 0x861   : > { %v1690_v6 = vpop.xlane.xlu0 %1689 }
 0x862   : > { %v1702_v12 = vsub.f32 %v3212_v55, %v1690_v6 }
 0x864   : > { %v3242_v62 = vpop.eup %2447  ;;  %v1715_v34 = vmul.f32 1.442695, %v1702_v12 }
 0x865   : > { %v1733_v2 = vsel %vm772_vm12, %v3242_v62, 0.0 }
 0x866   : > { %1734 = vadd.xlane.f32.xlu0 %v1733_v2 }
 0x873   : > { %1824 = vrot.lane.b32.xlu1 %v2761_v1, %s2498_s13 }
 0x87a   : > { %1799 = vrot.lane.b32.xlu0 %v2750_v41, %s2498_s13 }
 0x884   : > { %v1693_v13 = vpop.xlane.xlu1 %1692 }
 0x885   : > { %v1703_v46 = vsub.f32 %v1671_v33, %v1693_v13 }
 0x887   : > { %v1717_v37 = vmul.f32 1.442695, %v1703_v46 }
 0x889   : > { %2449 = vpow2.f32 %v1717_v37 }
 0x88a   : > { %2451 = vpow2.f32 %v1715_v34 }
 0x88c   : > { %v1696_v28 = vpop.xlane.xlu2 %1695 }
 0x88d   : > { %v1704_v22 = vsub.f32 %v1672_v51, %v1696_v28 }
 0x88f   : > { %v3251_v30 = vpop.eup %2449  ;;  %v1719_v59 = vmul.f32 1.442695, %v1704_v22 }
 0x890   : > { %v1739_v8 = vsel %vm772_vm12, %v3251_v30, 0.0  ;;  %v2452_v41 = vpop.eup %2451 }
 0x891   : > { %1740 = vadd.xlane.f32.xlu2 %v1739_v8  ;;  %2453 = vpow2.f32 %v1719_v59  ;;  %v1736_v33 = vsel %vm772_vm12, %v2452_v41, 0.0 }
 0x894   : > { %v1775_v1 = vpop.permute.xlu2 %1774 }
 0x895   : > { %1787 = vmatpush.bf16.msrb.mxu0 %v1775_v1 }
 0x897   : > { %v2454_v19 = vpop.eup %2453 }
 0x898   : > { %v1742_v55 = vsel %vm772_vm12, %v2454_v19, 0.0 }
 0x899   : > { %2032 = vmatpush.bf16.msra.mxu0 %v2212_v36 }
 0x89d   : > { %1737 = vadd.xlane.f32.xlu1 %v1736_v33 }
 0x8a4   : > { %1743 = vadd.xlane.f32.xlu0 %v1742_v55 }
 0x8b6   : > { %1849 = vrot.lane.b32.xlu1 %v2758_v56, %s2498_s13 }
 0x8bc   : > { %v1723_v31 = vpop.xlane.xlu0 %1722 }
 0x8bd   : > { %2455 = vrcp.f32 %v1723_v31 }
 0x8be   : > { %2262 = vrot.lane.b32.xlu1 %v2261_v27, %s2499_s14 }
 0x8c3   : > { %v2456_v24 = vpop.eup %2455 }
 0x8c4   : > { %v1726_v51 = vpop.xlane.xlu1 %1725  ;;  %v1753_v2 = vmul.f32 %v2456_v24, %v2440_v15 }
 0x8c5   : > { %2457 = vrcp.f32 %v1726_v51  ;;  %v1729_v50 = vpop.xlane.xlu0 %1728 }
 0x8c6   : > { %2267 = vrot.lane.b32.xlu1 %v2266_v57, %s2500_s27  ;;  %v1761_v56 = vpack.c.bf16 %v1753_v2, %v1753_v2 }
 0x8c8   : > { %v1771_v18 = vunpack.c.l.b16 %v1761_v56 }
 0x8cb   : > { %v2458_v13 = vpop.eup %2457 }
 0x8cc   : > { %v1754_v46 = vmul.f32 %v2458_v13, %v2442_v0 }
 0x8cd   : > { %v1732_v6 = vpop.xlane.xlu1 %1731 }
 0x8ce   : > { %v1762_v37 = vpack.c.bf16 %v1754_v46, %v1754_v46  ;;  %2277 = vrot.lane.b32.xlu1 %v2276_v39, %s2499_s14  ;;  %2459 = vrcp.f32 %v1732_v6 }
 0x8cf   : > { %2461 = vrcp.f32 %v1729_v50 }
 0x8d0   : > { %v1772_v21 = vunpack.c.l.b16 %v1762_v37 }
 0x8d2   : > { %v1773_v27 = vpack.c.b16 %v1772_v21, %v1771_v18 }
 0x8d4   : > { %2189 = vmatmul.msk.bf16.vlgmr.msrb.gmra.mxu0 %vm772_vm12, %v1773_v27  ;;  %v2460_v0 = vpop.eup %2459 }
 0x8d5   : > { %v2462_v61 = vpop.eup %2461  ;;  %v1756_v35 = vmul.f32 %v2460_v0, %v3238_v14  ;;  %v3399_v0 = vpack.i.bf16 %v3218_v43, %v3216_v26 }
 0x8d6   : > { %2282 = vrot.lane.b32.xlu1 %v2281_v52, %s2500_s27  ;;  %v1755_v39 = vmul.f32 %v2462_v61, %v3233_v42 }
 0x8d7   : > { %v1764_v57 = vpack.c.bf16 %v1756_v35, %v1756_v35 }
 0x8d8   : > { %v1763_v54 = vpack.c.bf16 %v1755_v39, %v1755_v39 }
 0x8d9   : > { %v1735_v48 = vpop.xlane.xlu0 %1734  ;;  %v1797_v38 = vunpack.c.l.b16 %v1764_v57 }
 0x8da   : > { %v1796_v52 = vunpack.c.l.b16 %v1763_v54  ;;  %2463 = vrcp.f32 %v1735_v48 }
 0x8dc   : > { %v1798_v28 = vpack.c.b16 %v1797_v38, %v1796_v52 }
 0x8de   : > { %2292 = vrot.lane.b32.xlu1 %v2291_v58, %s2499_s14 }
 0x8e0   : > { %v2464_v53 = vpop.eup %2463 }
 0x8e1   : > { %v1757_v14 = vmul.f32 %v2464_v53, %v3242_v62 }
 0x8e3   : > { %v1765_v8 = vpack.c.bf16 %v1757_v14, %v1757_v14 }
 0x8e5   : > { %v1825_v15 = vpop.permute.xlu1 %1824  ;;  %v1821_v33 = vunpack.c.l.b16 %v1765_v8 }
 0x8e6   : > { %1837 = vmatpush.bf16.msrb.mxu2 %v1825_v15 }
 0x8ec   : > { %v1800_v12 = vpop.permute.xlu0 %1799 }
 0x8ed   : > { %1812 = vmatpush.bf16.msrb.mxu1 %v1800_v12 }
 0x8f0   : > { %2190 = vmatmul.msk.bf16.vlgmr.msrb.gmra.mxu1 %vm772_vm12, %v1798_v28 }
 0x904   : > { %v1741_v58 = vpop.xlane.xlu2 %1740 }
 0x910   : > { %v1738_v47 = vpop.xlane.xlu1 %1737 }
 0x911   : > { %2465 = vrcp.f32 %v1738_v47 }
 0x912   : > { %2467 = vrcp.f32 %v1741_v58 }
 0x917   : > { %v1744_v42 = vpop.xlane.xlu0 %1743  ;;  %v2466_v34 = vpop.eup %2465 }
 0x918   : > { %2469 = vrcp.f32 %v1744_v42  ;;  %v1758_v22 = vmul.f32 %v2466_v34, %v2452_v41  ;;  %v2468_v59 = vpop.eup %2467 }
 0x919   : > { %v1759_v2 = vmul.f32 %v2468_v59, %v3251_v30  ;;  %v3398_v30 = vpack.i.bf16 %v3065_v40, %v3056_v45  ;;  %v2211_v45 = vld [vmem:[%s3387_s5] sm:$0xff] }
 0x91a   : > { %v1766_v1 = vpack.c.bf16 %v1758_v22, %v1758_v22  ;;  %2033 = vmatpush.bf16.msra.mxu0 %v2211_v45 }
 0x91b   : > { %v1767_v56 = vpack.c.bf16 %v1759_v2, %v1759_v2 }
 0x91c   : > { %v1822_v55 = vunpack.c.l.b16 %v1766_v1 }
 0x91d   : > { %v1846_v46 = vunpack.c.l.b16 %v1767_v56 }
 0x91e   : > { %v2470_v31 = vpop.eup %2469  ;;  %v1823_v51 = vpack.c.b16 %v1822_v55, %v1821_v33 }
 0x91f   : > { %v1760_v24 = vmul.f32 %v2470_v31, %v2454_v19 }
 0x920   : > { %2191 = vmatmul.msk.bf16.vlgmr.msrb.gmra.mxu2 %vm772_vm12, %v1823_v51 }
 0x921   : > { %v1768_v13 = vpack.c.bf16 %v1760_v24, %v1760_v24 }
 0x923   : > { %v1847_v62 = vunpack.c.l.b16 %v1768_v13 }
 0x925   : > { %v1848_v18 = vpack.c.b16 %v1847_v62, %v1846_v46 }
 0x928   : > { %v1850_v37 = vpop.permute.xlu1 %1849 }
 0x929   : > { %1862 = vmatpush.bf16.msrb.mxu3 %v1850_v37 }
 0x92c   : > { %2192 = vmatmul.msk.bf16.vlgmr.msrb.gmra.mxu3 %vm772_vm12, %v1848_v18 }
 0x930   : > { %v2263_v20 = vpop.permute.xlu1 %2262 }
 0x931   : > { %v2265_v26 = vunpack.i.h.bf16 %v2263_v20  ;;  %v2264_v43 = vunpack.i.l.bf16 %v2263_v20 }
 0x933   : > { %v1966_v54 = vsel %vm662_vm11, %v2934_v7, %v2265_v26  ;;  %v1965_v38 = vsel %vm662_vm11, %v2928_v23, %v2264_v43 }
 0x938   : > { %v2268_v39 = vpop.permute.xlu1 %2267 }
 0x939   : > { %v2270_v48 = vunpack.i.h.bf16 %v2268_v39  ;;  %v2269_v57 = vunpack.i.l.bf16 %v2268_v39 }
 0x93b   : > { %v1973_v47 = vsel %vm772_vm12, %v1965_v38, %v2269_v57  ;;  %v1974_v53 = vsel %vm772_vm12, %v1966_v54, %v2270_v48 }
 0x940   : > { %v2278_v7 = vpop.permute.xlu1 %2277 }
 0x941   : > { %v2280_v23 = vunpack.i.h.bf16 %v2278_v7  ;;  %v2279_v22 = vunpack.i.l.bf16 %v2278_v7 }
 0x943   : > { %v1968_v55 = vsel %vm662_vm11, %v2936_v32, %v2280_v23  ;;  %v1967_v31 = vsel %vm662_vm11, %v2930_v60, %v2279_v22 }
 0x948   : > { %v2283_v8 = vpop.permute.xlu1 %2282 }
 0x949   : > { %v2285_v1 = vunpack.i.h.bf16 %v2283_v8  ;;  %v2284_v59 = vunpack.i.l.bf16 %v2283_v8 }
 0x94b   : > { %v1975_v2 = vsel %vm772_vm12, %v1967_v31, %v2284_v59  ;;  %v1976_v13 = vsel %vm772_vm12, %v1968_v55, %v2285_v1 }
 0x950   : > { %v2293_v37 = vpop.permute.xlu1 %2292 }
 0x951   : > { %v1789_v41 = vpop.f32.mrf.mxu0  ;;  %v2294_v32 = vunpack.i.l.bf16 %v2293_v37 }
 0x959   : > { %v1791_v21 = vpop.f32.mrf.mxu0 }
 0x95a   : > { %v2271_v27 = vpack.i.bf16 %v1791_v21, %v1789_v41  ;;  %v2295_v41 = vunpack.i.h.bf16 %v2293_v37 }
 0x95c   : > { %2272 = vrot.lane.b32.xlu2 %v2271_v27, %s2501_s15 }
 0x964   : > { %2297 = vrot.lane.b32.xlu2 %v2296_v44, %s2500_s27 }
 0x96c   : > { %2307 = vrot.lane.b32.xlu2 %v3398_v30, %s2499_s14  ;;  %v1970_v30 = vsel %vm662_vm11, %v2938_v29, %v2295_v41 }
 0x96d   : > { %v1814_v19 = vpop.f32.mrf.mxu1 }
 0x975   : > { %v1816_v6 = vpop.f32.mrf.mxu1 }
 0x976   : > { %v2286_v50 = vpack.i.bf16 %v1816_v6, %v1814_v19  ;;  %v1969_v19 = vsel %vm662_vm11, %v2932_v25, %v2294_v32 }
 0x978   : > { %2287 = vrot.lane.b32.xlu0 %v2286_v50, %s2501_s15 }
 0x980   : > { %2312 = vrot.lane.b32.xlu0 %v3399_v0, %s2500_s27 }
 0x9a3   : > { %v1839_v40 = vpop.f32.mrf.mxu2 }
 0x9ab   : > { %v1841_v44 = vpop.f32.mrf.mxu2 }
 0x9ac   : > { %v2301_v61 = vpack.i.bf16 %v1841_v44, %v1839_v40 }
 0x9ae   : > { %2302 = vrot.lane.b32.xlu1 %v2301_v61, %s2501_s15 }
 0x9af   : > { %v1864_v35 = vpop.f32.mrf.mxu3 }
 0x9b6   : > { %v2273_v15 = vpop.permute.xlu2 %2272 }
 0x9b7   : > { %v2275_v52 = vunpack.i.h.bf16 %v2273_v15  ;;  %v2274_v12 = vunpack.i.l.bf16 %v2273_v15  ;;  %v1866_v28 = vpop.f32.mrf.mxu3 }
 0x9b8   : > { %v2316_v58 = vpack.i.bf16 %v1866_v28, %v1864_v35 }
 0x9b9   : > { %v1982_v14 = vsel %vm1981_vm13, %v1973_v47, %v2274_v12  ;;  %v1983_v42 = vsel %vm1981_vm13, %v1974_v53, %v2275_v52  ;;  %v2324_v47 = vld [vmem:[%s3388_s6] ss:$0 sm:$0xff] }
 0x9ba   : > { %v1990_v34 = vpack.c.bf16 %v1983_v42, %v1982_v14  ;;  %2317 = vrot.lane.b32.xlu1 %v2316_v58, %s2501_s15 }
 0x9bc   : > { %2201 = vmatmul.msk.bf16.vlgmr.msra.gmra.mxu0 %vm358_vm0, %v1990_v34 }
 0x9be   : > { %v2298_v18 = vpop.permute.xlu2 %2297 }
 0x9bf   : > { %v2300_v21 = vunpack.i.h.bf16 %v2298_v18  ;;  %v2299_v27 = vunpack.i.l.bf16 %v2298_v18 }
 0x9c1   : > { %v1977_v0 = vsel %vm772_vm12, %v1969_v19, %v2299_v27  ;;  %v1978_v36 = vsel %vm772_vm12, %v1970_v30, %v2300_v21 }
 0x9c6   : > { %v2308_v44 = vpop.permute.xlu2 %2307 }
 0x9c7   : > { %v2310_v35 = vunpack.i.h.bf16 %v2308_v44  ;;  %v2309_v29 = vunpack.i.l.bf16 %v2308_v44 }
 0x9c9   : > { %v1972_v57 = vsel %vm662_vm11, %v2951_v49, %v2310_v35  ;;  %v1971_v15 = vsel %vm662_vm11, %v2943_v63, %v2309_v29 }
 0x9ea   : > { %v2288_v33 = vpop.permute.xlu0 %2287 }
 0x9eb   : > { %v2290_v51 = vunpack.i.h.bf16 %v2288_v33  ;;  %v2289_v24 = vunpack.i.l.bf16 %v2288_v33 }
 0x9ed   : > { %v1984_v56 = vsel %vm1981_vm13, %v1975_v2, %v2289_v24  ;;  %v1985_v62 = vsel %vm1981_vm13, %v1976_v13, %v2290_v51 }
 0x9ee   : > { %v1991_v46 = vpack.c.bf16 %v1985_v62, %v1984_v56 }
 0x9f0   : > { %2202 = vmatmul.msk.bf16.gmra.mxu0 %vm358_vm0, %v1991_v46 }
 0x9f2   : > { %v2313_v61 = vpop.permute.xlu0 %2312 }
 0x9f3   : > { %v2315_v39 = vunpack.i.h.bf16 %v2313_v61  ;;  %v2314_v26 = vunpack.i.l.bf16 %v2313_v61 }
 0x9f5   : > { %v1980_v54 = vsel %vm772_vm12, %v1972_v57, %v2315_v39  ;;  %v1979_v38 = vsel %vm772_vm12, %v1971_v15, %v2314_v26 }
 0xa20   : > { %v2303_v60 = vpop.permute.xlu1 %2302 }
 0xa21   : > { %v2305_v6 = vunpack.i.h.bf16 %v2303_v60  ;;  %v2304_v50 = vunpack.i.l.bf16 %v2303_v60 }
 0xa23   : > { %v1986_v45 = vsel %vm1981_vm13, %v1977_v0, %v2304_v50  ;;  %v1987_v40 = vsel %vm1981_vm13, %v1978_v36, %v2305_v6 }
 0xa24   : > { %v1992_v20 = vpack.c.bf16 %v1987_v40, %v1986_v45 }
 0xa26   : > { %2203 = vmatmul.msk.bf16.gmra.mxu0 %vm358_vm0, %v1992_v20 }
 0xa2c   : > { %v2318_v25 = vpop.permute.xlu1 %2317 }
 0xa2d   : > { %v2320_v43 = vunpack.i.h.bf16 %v2318_v25  ;;  %v2319_v48 = vunpack.i.l.bf16 %v2318_v25 }
 0xa2f   : > { %v1988_v52 = vsel %vm1981_vm13, %v1979_v38, %v2319_v48  ;;  %v1989_v12 = vsel %vm1981_vm13, %v1980_v54, %v2320_v43 }
 0xa30   : > { %v1993_v28 = vpack.c.bf16 %v1989_v12, %v1988_v52 }
 0xa36   : > { %2204 = vmatmul.msk.bf16.gmra.mxu0 %vm358_vm0, %v1993_v28 }
 0xa39   : > { %v2035_v53 = vpop.f32.mrf.mxu0 }
 0xa3a   : > { %v2036_v49 = vadd.f32 %v2324_v47, %v2035_v53 }
 0xa3c   : > { %v2055_v58 = vadd.f32 %v2572_v5, %v2036_v49 }
 0xa3e   : > { %v2063_v63 = vpack.c.bf16 %v2055_v58, %v2055_v58 }
 0xa40   : > { %2072 = vst.msk [vmem:[%s3354_s24] sm:$0xf] %vm2071_vm14, %v2063_v63 }
 0xa41   : > { %v2037_v14 = vpop.f32.mrf.mxu0 }
 0xa42   : > { %v2038_v42 = vadd.f32 %v2324_v47, %v2037_v14 }
 0xa44   : > { %v2056_v34 = vadd.f32 %v2584_v11, %v2038_v42 }
 0xa46   : > { %v2064_v7 = vpack.c.bf16 %v2056_v34, %v2056_v34 }
 0xa48   : > { %2073 = vst.msk [vmem:[%s3354_s24 + $0x4] sm:$0xf] %vm2071_vm14, %v2064_v7 }
 0xa6d   : > { %v2040_v5 = vpop.f32.mrf.mxu0 }
 0xa6e   : > { %v2041_v8 = vadd.f32 %v2324_v47, %v2040_v5 }
 0xa70   : > { %v2057_v23 = vadd.f32 %v2570_v4, %v2041_v8 }
 0xa72   : > { %v2065_v22 = vpack.c.bf16 %v2057_v23, %v2057_v23 }
 0xa74   : > { %2074 = vst.msk [vmem:[%s3354_s24 + $0x8] sm:$0xf] %vm2071_vm14, %v2065_v22 }
 0xa75   : > { %v2042_v1 = vpop.f32.mrf.mxu0 }
 0xa76   : > { %v2043_v59 = vadd.f32 %v2324_v47, %v2042_v1 }
 0xa78   : > { %v2058_v33 = vadd.f32 %v2582_v10, %v2043_v59 }
 0xa7a   : > { %v2066_v55 = vpack.c.bf16 %v2058_v33, %v2058_v33 }
 0xa7c   : > { %2075 = vst.msk [vmem:[%s3354_s24 + $0xc] sm:$0xf] %vm2071_vm14, %v2066_v55 }
 0xaa3   : > { %v2045_v11 = vpop.f32.mrf.mxu0 }
 0xaa4   : > { %v2046_v31 = vadd.f32 %v2324_v47, %v2045_v11 }
 0xaa6   : > { %v2059_v51 = vadd.f32 %v2592_v16, %v2046_v31 }
 0xaa8   : > { %v2067_v24 = vpack.c.bf16 %v2059_v51, %v2059_v51 }
 0xaaa   : > { %2076 = vst.msk [vmem:[%s3354_s24 + $0x10] sm:$0xf] %vm2071_vm14, %v2067_v24 }
 0xaab   : > { %v2047_v4 = vpop.f32.mrf.mxu0 }
 0xaac   : > { %v2048_v2 = vadd.f32 %v2324_v47, %v2047_v4 }
 0xaae   : > { %v2060_v13 = vadd.f32 %v2594_v17, %v2048_v2 }
 0xab0   : > { %v2068_v56 = vpack.c.bf16 %v2060_v13, %v2060_v13 }
 0xab2   : > { %2077 = vst.msk [vmem:[%s3354_s24 + $0x14] sm:$0xf] %vm2071_vm14, %v2068_v56 }
 0xab3   : > { %v2050_v10 = vpop.f32.mrf.mxu0 }
 0xab4   : > { %v2051_v62 = vadd.f32 %v2324_v47, %v2050_v10 }
 0xab6   : > { %v2061_v46 = vadd.f32 %v2568_v3, %v2051_v62 }
 0xab8   : > { %v2069_v37 = vpack.c.bf16 %v2061_v46, %v2061_v46 }
 0xaba   : > { %2078 = vst.msk [vmem:[%s3354_s24 + $0x18] sm:$0xf] %vm2071_vm14, %v2069_v37 }
 0xabb   : > { %v2052_v18 = vpop.f32.mrf.mxu0 }
 0xabc   : > { %v2053_v16 = vadd.f32 %v2324_v47, %v2052_v18 }
 0xabe   : > { %v2062_v41 = vadd.f32 %v2580_v9, %v2053_v16 }
 0xac0   : > { %v2070_v32 = vpack.c.bf16 %v2062_v41, %v2062_v41 }
 0xac2   : > { %2079 = vst.msk [vmem:[%s3354_s24 + $0x1c] sm:$0xf] %vm2071_vm14, %v2070_v32 }
 0xac3 PF: > { %s19_s30 = sadd.s32 1, %s2485_s30  }
 0xac4   : > { %p16_p4 = scmp.ge.s32.totalorder %s19_s30, 4  }
 0xac6   :  { %18 = sbr.rel (!%p16_p4) target bundleno = 1 (0x1), region = 86 }

</bundles_post_ra>
